<compile_context>
chip_gen: v5e
topology: v5e:2x2
jax: 0.10.0
libtpu: 0.0.40
codegen_flags: <defaults>
</compile_context>

<pallas_src>
import functools

import jax
import jax.numpy as jnp
from jax.experimental import pallas as pl
from jax.experimental.pallas import tpu as pltpu

EPS = 1e-6
CYC_RS = (8, 4, 2, 1)   # out_cyc=True chains out_cyc_r = previous radius


def _round_up(v, m):
    return ((v + m - 1) // m) * m


def _choose_tile_n(N):
    """Keypoint (lane) tile size: full lane density for large N, minimal
    padding for small N."""
    if N <= 128:
        return _round_up(N, 8)
    return 256


def _choose_tile_h(H, W, TN, budget_bytes=1 << 20):
    """Largest divisor of H whose (TH, W, TN) f32 block stays under ~1 MiB so
    the in-kernel temporaries + double-buffered input fit comfortably in the
    scoped VMEM on every chip generation."""
    for th in range(H, 0, -1):
        if H % th == 0 and th * W * TN * 4 <= budget_bytes:
            return th
    return 1


def _make_stats_kernel(H, W, TH, thresholds):
    """Per-(keypoint-tile, H-block) kernel accumulating pooled statistics.

    feats_ref : (TH, W, TN)  feature-map rows, lane axis = keypoints
    xy_ref    : (2, TN)      rows = (x, y) ground-truth coordinates
    stats_ref : (2*S + 2, TN) f32, resident across the H-block (reduction) axis
        rows [0, S)   : sum of fnorm over {dist^2 < thresholds[s]}
        rows [S, 2S)  : pixel count of  {dist^2 < thresholds[s]}
        row  2S       : sum of fnorm over all pixels
        row  2S + 1   : fnorm gathered at the gt point (dist^2 == 0)
    """
    S = len(thresholds)

    def reduce_hw(a):
        # (TH, W, TN) -> (1, TN): add the TH slabs (plain VPU adds), then one
        # sublane reduce over W.  The lane (keypoint) axis is never reduced.
        return jnp.sum(jnp.sum(a, axis=0), axis=0, keepdims=True)

    def kernel(feats_ref, xy_ref, stats_ref):
        h_blk = pl.program_id(1)

        @pl.when(h_blk == 0)
        def _init():
            stats_ref[...] = jnp.zeros_like(stats_ref)

        feats = feats_ref[...].astype(jnp.float32)           # (TH, W, TN)
        tn = feats.shape[-1]
        x = xy_ref[0:1, :].reshape(1, 1, tn)                 # (1, 1, TN)
        y = xy_ref[1:2, :].reshape(1, 1, tn)

        # ---- layerNormaFun: mean/var over the last (W) dim only ----
        mean = jnp.mean(feats, axis=1, keepdims=True)         # (TH, 1, TN)
        cent = feats - mean
        var = jnp.mean(cent * cent, axis=1, keepdims=True)
        inv = 1.0 / (jnp.sqrt(var + EPS) + EPS)               # per-row, cheap
        fnorm = cent * inv                                    # (TH, W, TN)

        # ---- squared distance of every pixel to its gt point ----
        # Built from small per-row / per-column tensors + one broadcasting add.
        h_base = h_blk * TH
        hh = (jax.lax.broadcasted_iota(jnp.int32, (TH, 1, tn), 0)
              + h_base).astype(jnp.float32)                   # (TH, 1, TN)
        ww = jax.lax.broadcasted_iota(
            jnp.int32, (1, W, tn), 1).astype(jnp.float32)     # (1, W, TN)
        dy2 = (hh - y) * (hh - y)                             # (TH, 1, TN)
        dx2 = (ww - x) * (ww - x)                             # (1, W, TN)
        dist2 = dy2 + dx2                                     # (TH, W, TN)

        zero = jnp.float32(0.0)
        one = jnp.float32(1.0)

        # Cumulative-disc sums: nested radii -> every scale's fg/bg is a
        # difference of these (done in the JAX epilogue).
        for s, thr in enumerate(thresholds):
            inside = dist2 < thr
            stats_ref[s:s + 1, :] += reduce_hw(jnp.where(inside, fnorm, zero))
            stats_ref[S + s:S + s + 1, :] += reduce_hw(jnp.where(inside, one, zero))

        stats_ref[2 * S:2 * S + 1, :] += reduce_hw(fnorm)
        # PointMax gather: the (integral, in-range) gt pixel is dist2 == 0.
        stats_ref[2 * S + 1:2 * S + 2, :] += reduce_hw(
            jnp.where(dist2 == zero, fnorm, zero))

    return kernel


@functools.partial(jax.jit, static_argnames=("cyc_rs",))
def multiscale_spatial_softmax(feats, xyens, cyc_rs=CYC_RS):
    B, C, H, W = feats.shape
    N = B * C
    S = len(cyc_rs)
    thresholds = tuple(float(r * r) for r in cyc_rs)      # e.g. (64, 16, 4, 1)

    xy = xyens.reshape(N, 3).astype(jnp.float32)
    x, y, e = xy[:, 0], xy[:, 1], xy[:, 2]

    TN = _choose_tile_n(N)
    N_pad = _round_up(N, TN)
    TH = _choose_tile_h(H, W, TN)

    # Lane-dense layout: keypoints on the 128-wide lane axis.
    f_t = jnp.transpose(feats.reshape(N, H, W), (1, 2, 0))    # (H, W, N), native dtype
    xy_t = jnp.stack([x, y], axis=0)                          # (2, N)
    if N_pad != N:
        f_t = jnp.pad(f_t, ((0, 0), (0, 0), (0, N_pad - N)))
        xy_t = jnp.pad(xy_t, ((0, 0), (0, N_pad - N)))

    num_stats = 2 * S + 2
    kernel = _make_stats_kernel(H, W, TH, thresholds)
    stats = pl.pallas_call(
        kernel,
        out_shape=jax.ShapeDtypeStruct((num_stats, N_pad), jnp.float32),
        grid_spec=pltpu.PrefetchScalarGridSpec(
            num_scalar_prefetch=0,
            grid=(N_pad // TN, H // TH),          # (keypoint tiles, H blocks)
            in_specs=[
                pl.BlockSpec((TH, W, TN), lambda i, h: (h, 0, i)),
                pl.BlockSpec((2, TN), lambda i, h: (0, i)),
            ],
            out_specs=pl.BlockSpec((num_stats, TN), lambda i, h: (0, i)),
        ),
        compiler_params=pltpu.CompilerParams(
            dimension_semantics=("parallel", "arbitrary"),
            vmem_limit_bytes=32 * 1024 * 1024),
    )(f_t, xy_t)

    # ---------------- tiny O(N) epilogue in plain JAX ----------------
    stats = stats[:, :N]
    disc_f = stats[0:S]                 # (S, N) fnorm sums inside each radius
    disc_c = stats[S:2 * S]             # (S, N) pixel counts inside each radius
    tot_f = stats[2 * S]                # (N,)   total fnorm sum
    point_feat = stats[2 * S + 1]       # (N,)   fnorm at the gt point
    tot_c = jnp.float32(H * W)

    total = jnp.float32(0.0)
    # per-scale SpatialSoftmax ('avg' pooling, temper=1, weight=1)
    for s in range(S):
        fg_sum, fg_cnt = disc_f[s], disc_c[s]
        if s == 0:
            bg_sum, bg_cnt = tot_f - disc_f[0], tot_c - disc_c[0]
        else:
            bg_sum = disc_f[s - 1] - disc_f[s]
            bg_cnt = disc_c[s - 1] - disc_c[s]
        fg_avg = fg_sum / (fg_cnt + EPS)
        bg_avg = bg_sum / (bg_cnt + EPS)
        # softmaxFgBgSubMax: one GLOBAL max over both pooled tensors (all N rows)
        maxx = jnp.maximum(jnp.max(fg_avg), jnp.max(bg_avg))
        fge = jnp.exp(fg_avg - maxx)
        bge = jnp.exp(bg_avg - maxx)
        prob = fge / (fge + bge + EPS)
        losses = -jnp.log(prob + EPS)
        total = total + jnp.sum(losses * e) / (jnp.sum(e) + EPS)

    # ---- PointMax (w=1, suppressionBg=False) ----
    valid = (x >= 0.0) & (x < float(W)) & (y >= 0.0) & (y < float(H))
    ind = ((e > 0.0) & valid).astype(jnp.float32)
    ploss = -jnp.log(jax.nn.sigmoid(point_feat) + EPS)
    total = total + jnp.sum(ploss * ind) / (jnp.sum(ind) + EPS)

    return total / jnp.float32(S + 1)


def reference(feats, xyens, cyc_rs=CYC_RS):
    """Pure-JAX reference mirroring the PyTorch forward semantics."""
    B, C, H, W = feats.shape
    N = B * C
    f = feats.reshape(N, H, W).astype(jnp.float32)
    xy = xyens.reshape(N, 3).astype(jnp.float32)
    x, y, e = xy[:, 0], xy[:, 1], xy[:, 2]

    mean = f.mean(-1, keepdims=True)
    c = f - mean
    var = (c * c).mean(-1, keepdims=True)
    fn = c / (jnp.sqrt(var + EPS) + EPS)

    hh = jnp.arange(H, dtype=jnp.float32)[:, None]
    ww = jnp.arange(W, dtype=jnp.float32)[None, :]
    d2 = (hh[None] - y[:, None, None]) ** 2 + (ww[None] - x[:, None, None]) ** 2

    total = jnp.float32(0.0)
    for s, r in enumerate(cyc_rs):
        r2 = float(r * r)
        fg = (d2 < r2).astype(jnp.float32)
        if s == 0:
            bg = (d2 >= r2).astype(jnp.float32)
        else:
            o2 = float(cyc_rs[s - 1] ** 2)
            bg = ((d2 >= r2) & (d2 < o2)).astype(jnp.float32)
        fga = (fn * fg).sum((1, 2)) / (fg.sum((1, 2)) + EPS)
        bga = (fn * bg).sum((1, 2)) / (bg.sum((1, 2)) + EPS)
        m = jnp.maximum(fga.max(), bga.max())
        prob = jnp.exp(fga - m) / (jnp.exp(fga - m) + jnp.exp(bga - m) + EPS)
        total = total + (-jnp.log(prob + EPS) * e).sum() / (e.sum() + EPS)

    vx = (x >= 0) & (x < W)
    vy = (y >= 0) & (y < H)
    xc = jnp.where(vx, x, 0.0)
    yc = jnp.where(vy, y, 0.0)
    oh = ((hh[None] == yc[:, None, None]) & (ww[None] == xc[:, None, None])).astype(jnp.float32)
    pf = (fn * oh).sum((1, 2))
    ind = ((e > 0) & vx & vy).astype(jnp.float32)
    ploss = -jnp.log(jax.nn.sigmoid(pf) + EPS)
    total = total + (ploss * ind).sum() / (ind.sum() + EPS)
    return total / float(len(cyc_rs) + 1)


if __name__ == "__main__":
    B, C, H, W = 2, 4, 16, 16
    key = jax.random.PRNGKey(0)
    k1, k2, k3, k4 = jax.random.split(key, 4)

    feats = jax.random.normal(k1, (B, C, H, W), dtype=jnp.float32)
    xs = jax.random.randint(k2, (B, C), -2, W).astype(jnp.float32)
    ys = jax.random.randint(k3, (B, C), -2, H).astype(jnp.float32)
    es = jax.random.bernoulli(k4, 0.8, (B, C)).astype(jnp.float32)
    es = es.at[0, 0].set(1.0)  # guarantee at least one existing point
    xyens = jnp.stack([xs, ys, es], axis=-1)   # (B, C, 3)

    out = multiscale_spatial_softmax(feats, xyens)
    out = jax.block_until_ready(out)

    ref = jax.block_until_ready(reference(feats, xyens))
    assert jnp.allclose(out, ref, rtol=1e-5, atol=1e-5), (out, ref)

    print("KERNEL_OK")
</pallas_src>

<mosaic_0001>
module attributes {stable_mosaic.version = 11 : i64} {
  func.func @kernel(%arg0: i32, %arg1: i32, %arg2: memref<16x16x8xf32, #tpu.memory_space<vmem>>, %arg3: memref<2x8xf32, #tpu.memory_space<vmem>>, %arg4: memref<10x8xf32, #tpu.memory_space<vmem>>) attributes {dimension_semantics = [#tpu.dimension_semantics<parallel>, #tpu.dimension_semantics<arbitrary>], iteration_bounds = array<i64: 1, 1>, scalar_prefetch = 0 : i64, scratch_operands = 0 : i64, tpu.core_type = #tpu.core_type<tc>, window_params = [{transform_indices = @transform_0, window_bounds = array<i64: 16, 16, 8>}, {transform_indices = @transform_1, window_bounds = array<i64: 2, 8>}, {transform_indices = @transform_2, window_bounds = array<i64: 10, 8>}]} {
    %c0_i32 = arith.constant 0 : i32
    %0 = arith.cmpi eq, %arg1, %c0_i32 : i32
    %1 = arith.extui %0 : i1 to i32
    %c0_i32_0 = arith.constant 0 : i32
    %2 = arith.cmpi ne, %1, %c0_i32_0 : i32
    scf.if %2 {
      %cst_82 = arith.constant 0.000000e+00 : f32
      %140 = vector.broadcast %cst_82 : f32 to vector<10x8xf32>
      %c0_83 = arith.constant 0 : index
      %c0_84 = arith.constant 0 : index
      %141 = vector.load %arg4[%c0_83, %c0_84] : memref<10x8xf32, #tpu.memory_space<vmem>>, vector<10x8xf32>
      tpu.vector_store %arg4[%c0_83, %c0_84], %140 {strides = array<i32>} : memref<10x8xf32, #tpu.memory_space<vmem>>, vector<10x8xf32>,
    } else {
    }
    %c0 = arith.constant 0 : index
    %c0_1 = arith.constant 0 : index
    %c0_2 = arith.constant 0 : index
    %3 = vector.load %arg2[%c0, %c0_1, %c0_2] : memref<16x16x8xf32, #tpu.memory_space<vmem>>, vector<16x16x8xf32>
    %c0_3 = arith.constant 0 : index
    %c0_4 = arith.constant 0 : index
    %4 = vector.load %arg3[%c0_3, %c0_4] : memref<2x8xf32, #tpu.memory_space<vmem>>, vector<1x8xf32>
    %5 = vector.shape_cast %4 : vector<1x8xf32> to vector<1x1x8xf32>
    %c1 = arith.constant 1 : index
    %c0_5 = arith.constant 0 : index
    %6 = vector.load %arg3[%c1, %c0_5] : memref<2x8xf32, #tpu.memory_space<vmem>>, vector<1x8xf32>
    %7 = vector.shape_cast %6 : vector<1x8xf32> to vector<1x1x8xf32>
    %cst = arith.constant dense<0.000000e+00> : vector<16x8xf32>
    %8 = vector.multi_reduction <add>, %3, %cst [1] : vector<16x16x8xf32> to vector<16x8xf32>
    %9 = vector.shape_cast %8 : vector<16x8xf32> to vector<16x1x8xf32>
    %cst_6 = arith.constant 1.600000e+01 : f32
    %10 = vector.broadcast %cst_6 : f32 to vector<16x1x8xf32>
    %11 = arith.divf %9, %10 : vector<16x1x8xf32>
    %12 = vector.broadcast %11 : vector<16x1x8xf32> to vector<16x16x8xf32>
    %13 = arith.subf %3, %12 : vector<16x16x8xf32>
    %14 = arith.mulf %13, %13 : vector<16x16x8xf32>
    %cst_7 = arith.constant dense<0.000000e+00> : vector<16x8xf32>
    %15 = vector.multi_reduction <add>, %14, %cst_7 [1] : vector<16x16x8xf32> to vector<16x8xf32>
    %16 = vector.shape_cast %15 : vector<16x8xf32> to vector<16x1x8xf32>
    %cst_8 = arith.constant 1.600000e+01 : f32
    %17 = vector.broadcast %cst_8 : f32 to vector<16x1x8xf32>
    %18 = arith.divf %16, %17 : vector<16x1x8xf32>
    %cst_9 = arith.constant 9.99999997E-7 : f32
    %19 = vector.broadcast %cst_9 : f32 to vector<16x1x8xf32>
    %20 = arith.addf %18, %19 : vector<16x1x8xf32>
    %21 = math.sqrt %20 : vector<16x1x8xf32>
    %cst_10 = arith.constant 9.99999997E-7 : f32
    %22 = vector.broadcast %cst_10 : f32 to vector<16x1x8xf32>
    %23 = arith.addf %21, %22 : vector<16x1x8xf32>
    %cst_11 = arith.constant 1.000000e+00 : f32
    %24 = vector.broadcast %cst_11 : f32 to vector<16x1x8xf32>
    %25 = arith.divf %24, %23 : vector<16x1x8xf32>
    %26 = vector.broadcast %25 : vector<16x1x8xf32> to vector<16x16x8xf32>
    %27 = arith.mulf %13, %26 : vector<16x16x8xf32>
    %c16_i32 = arith.constant 16 : i32
    %28 = arith.muli %arg1, %c16_i32 : i32
    %29 = tpu.iota {dimensions = array<i32: 0>} : vector<16x1x8xi32>
    %30 = vector.broadcast %28 : i32 to vector<16x1x8xi32>
    %31 = arith.addi %29, %30 : vector<16x1x8xi32>
    %32 = arith.sitofp %31 : vector<16x1x8xi32> to vector<16x1x8xf32>
    %33 = tpu.iota {dimensions = array<i32: 1>} : vector<1x16x8xi32>
    %34 = arith.sitofp %33 : vector<1x16x8xi32> to vector<1x16x8xf32>
    %35 = vector.broadcast %7 : vector<1x1x8xf32> to vector<16x1x8xf32>
    %36 = arith.subf %32, %35 : vector<16x1x8xf32>
    %37 = vector.broadcast %7 : vector<1x1x8xf32> to vector<16x1x8xf32>
    %38 = arith.subf %32, %37 : vector<16x1x8xf32>
    %39 = arith.mulf %36, %38 : vector<16x1x8xf32>
    %40 = vector.broadcast %5 : vector<1x1x8xf32> to vector<1x16x8xf32>
    %41 = arith.subf %34, %40 : vector<1x16x8xf32>
    %42 = vector.broadcast %5 : vector<1x1x8xf32> to vector<1x16x8xf32>
    %43 = arith.subf %34, %42 : vector<1x16x8xf32>
    %44 = arith.mulf %41, %43 : vector<1x16x8xf32>
    %45 = vector.broadcast %39 : vector<16x1x8xf32> to vector<16x16x8xf32>
    %46 = vector.broadcast %44 : vector<1x16x8xf32> to vector<16x16x8xf32>
    %47 = arith.addf %45, %46 : vector<16x16x8xf32>
    %cst_12 = arith.constant 6.400000e+01 : f32
    %48 = vector.broadcast %cst_12 : f32 to vector<16x16x8xf32>
    %49 = arith.cmpf olt, %47, %48 : vector<16x16x8xf32>
    %c0_13 = arith.constant 0 : index
    %c0_14 = arith.constant 0 : index
    %50 = vector.load %arg4[%c0_13, %c0_14] : memref<10x8xf32, #tpu.memory_space<vmem>>, vector<1x8xf32>
    %cst_15 = arith.constant 0.000000e+00 : f32
    %51 = vector.broadcast %cst_15 : f32 to vector<16x16x8xf32>
    %52 = arith.select %49, %27, %51 : vector<16x16x8xi1>, vector<16x16x8xf32>
    %cst_16 = arith.constant dense<0.000000e+00> : vector<16x8xf32>
    %53 = vector.multi_reduction <add>, %52, %cst_16 [0] : vector<16x16x8xf32> to vector<16x8xf32>
    %cst_17 = arith.constant dense<0.000000e+00> : vector<8xf32>
    %54 = vector.multi_reduction <add>, %53, %cst_17 [0] : vector<16x8xf32> to vector<8xf32>
    %55 = vector.shape_cast %54 : vector<8xf32> to vector<1x8xf32>
    %56 = arith.addf %50, %55 : vector<1x8xf32>
    %c0_18 = arith.constant 0 : index
    %c0_19 = arith.constant 0 : index
    %57 = vector.load %arg4[%c0_18, %c0_19] : memref<10x8xf32, #tpu.memory_space<vmem>>, vector<1x8xf32>
    tpu.vector_store %arg4[%c0_18, %c0_19], %56 {strides = array<i32>} : memref<10x8xf32, #tpu.memory_space<vmem>>, vector<1x8xf32>,
    %c4 = arith.constant 4 : index
    %c0_20 = arith.constant 0 : index
    %58 = vector.load %arg4[%c4, %c0_20] : memref<10x8xf32, #tpu.memory_space<vmem>>, vector<1x8xf32>
    %cst_21 = arith.constant 1.000000e+00 : f32
    %cst_22 = arith.constant 0.000000e+00 : f32
    %59 = vector.broadcast %cst_21 : f32 to vector<16x16x8xf32>
    %60 = vector.broadcast %cst_22 : f32 to vector<16x16x8xf32>
    %61 = arith.select %49, %59, %60 : vector<16x16x8xi1>, vector<16x16x8xf32>
    %cst_23 = arith.constant dense<0.000000e+00> : vector<16x8xf32>
    %62 = vector.multi_reduction <add>, %61, %cst_23 [0] : vector<16x16x8xf32> to vector<16x8xf32>
    %cst_24 = arith.constant dense<0.000000e+00> : vector<8xf32>
    %63 = vector.multi_reduction <add>, %62, %cst_24 [0] : vector<16x8xf32> to vector<8xf32>
    %64 = vector.shape_cast %63 : vector<8xf32> to vector<1x8xf32>
    %65 = arith.addf %58, %64 : vector<1x8xf32>
    %c4_25 = arith.constant 4 : index
    %c0_26 = arith.constant 0 : index
    %66 = vector.load %arg4[%c4_25, %c0_26] : memref<10x8xf32, #tpu.memory_space<vmem>>, vector<1x8xf32>
    tpu.vector_store %arg4[%c4_25, %c0_26], %65 {strides = array<i32>} : memref<10x8xf32, #tpu.memory_space<vmem>>, vector<1x8xf32>,
    %cst_27 = arith.constant 1.600000e+01 : f32
    %67 = vector.broadcast %cst_27 : f32 to vector<16x16x8xf32>
    %68 = arith.cmpf olt, %47, %67 : vector<16x16x8xf32>
    %c1_28 = arith.constant 1 : index
    %c0_29 = arith.constant 0 : index
    %69 = vector.load %arg4[%c1_28, %c0_29] : memref<10x8xf32, #tpu.memory_space<vmem>>, vector<1x8xf32>
    %cst_30 = arith.constant 0.000000e+00 : f32
    %70 = vector.broadcast %cst_30 : f32 to vector<16x16x8xf32>
    %71 = arith.select %68, %27, %70 : vector<16x16x8xi1>, vector<16x16x8xf32>
    %cst_31 = arith.constant dense<0.000000e+00> : vector<16x8xf32>
    %72 = vector.multi_reduction <add>, %71, %cst_31 [0] : vector<16x16x8xf32> to vector<16x8xf32>
    %cst_32 = arith.constant dense<0.000000e+00> : vector<8xf32>
    %73 = vector.multi_reduction <add>, %72, %cst_32 [0] : vector<16x8xf32> to vector<8xf32>
    %74 = vector.shape_cast %73 : vector<8xf32> to vector<1x8xf32>
    %75 = arith.addf %69, %74 : vector<1x8xf32>
    %c1_33 = arith.constant 1 : index
    %c0_34 = arith.constant 0 : index
    %76 = vector.load %arg4[%c1_33, %c0_34] : memref<10x8xf32, #tpu.memory_space<vmem>>, vector<1x8xf32>
    tpu.vector_store %arg4[%c1_33, %c0_34], %75 {strides = array<i32>} : memref<10x8xf32, #tpu.memory_space<vmem>>, vector<1x8xf32>,
    %c5 = arith.constant 5 : index
    %c0_35 = arith.constant 0 : index
    %77 = vector.load %arg4[%c5, %c0_35] : memref<10x8xf32, #tpu.memory_space<vmem>>, vector<1x8xf32>
    %cst_36 = arith.constant 1.000000e+00 : f32
    %cst_37 = arith.constant 0.000000e+00 : f32
    %78 = vector.broadcast %cst_36 : f32 to vector<16x16x8xf32>
    %79 = vector.broadcast %cst_37 : f32 to vector<16x16x8xf32>
    %80 = arith.select %68, %78, %79 : vector<16x16x8xi1>, vector<16x16x8xf32>
    %cst_38 = arith.constant dense<0.000000e+00> : vector<16x8xf32>
    %81 = vector.multi_reduction <add>, %80, %cst_38 [0] : vector<16x16x8xf32> to vector<16x8xf32>
    %cst_39 = arith.constant dense<0.000000e+00> : vector<8xf32>
    %82 = vector.multi_reduction <add>, %81, %cst_39 [0] : vector<16x8xf32> to vector<8xf32>
    %83 = vector.shape_cast %82 : vector<8xf32> to vector<1x8xf32>
    %84 = arith.addf %77, %83 : vector<1x8xf32>
    %c5_40 = arith.constant 5 : index
    %c0_41 = arith.constant 0 : index
    %85 = vector.load %arg4[%c5_40, %c0_41] : memref<10x8xf32, #tpu.memory_space<vmem>>, vector<1x8xf32>
    tpu.vector_store %arg4[%c5_40, %c0_41], %84 {strides = array<i32>} : memref<10x8xf32, #tpu.memory_space<vmem>>, vector<1x8xf32>,
    %cst_42 = arith.constant 4.000000e+00 : f32
    %86 = vector.broadcast %cst_42 : f32 to vector<16x16x8xf32>
    %87 = arith.cmpf olt, %47, %86 : vector<16x16x8xf32>
    %c2 = arith.constant 2 : index
    %c0_43 = arith.constant 0 : index
    %88 = vector.load %arg4[%c2, %c0_43] : memref<10x8xf32, #tpu.memory_space<vmem>>, vector<1x8xf32>
    %cst_44 = arith.constant 0.000000e+00 : f32
    %89 = vector.broadcast %cst_44 : f32 to vector<16x16x8xf32>
    %90 = arith.select %87, %27, %89 : vector<16x16x8xi1>, vector<16x16x8xf32>
    %cst_45 = arith.constant dense<0.000000e+00> : vector<16x8xf32>
    %91 = vector.multi_reduction <add>, %90, %cst_45 [0] : vector<16x16x8xf32> to vector<16x8xf32>
    %cst_46 = arith.constant dense<0.000000e+00> : vector<8xf32>
    %92 = vector.multi_reduction <add>, %91, %cst_46 [0] : vector<16x8xf32> to vector<8xf32>
    %93 = vector.shape_cast %92 : vector<8xf32> to vector<1x8xf32>
    %94 = arith.addf %88, %93 : vector<1x8xf32>
    %c2_47 = arith.constant 2 : index
    %c0_48 = arith.constant 0 : index
    %95 = vector.load %arg4[%c2_47, %c0_48] : memref<10x8xf32, #tpu.memory_space<vmem>>, vector<1x8xf32>
    tpu.vector_store %arg4[%c2_47, %c0_48], %94 {strides = array<i32>} : memref<10x8xf32, #tpu.memory_space<vmem>>, vector<1x8xf32>,
    %c6 = arith.constant 6 : index
    %c0_49 = arith.constant 0 : index
    %96 = vector.load %arg4[%c6, %c0_49] : memref<10x8xf32, #tpu.memory_space<vmem>>, vector<1x8xf32>
    %cst_50 = arith.constant 1.000000e+00 : f32
    %cst_51 = arith.constant 0.000000e+00 : f32
    %97 = vector.broadcast %cst_50 : f32 to vector<16x16x8xf32>
    %98 = vector.broadcast %cst_51 : f32 to vector<16x16x8xf32>
    %99 = arith.select %87, %97, %98 : vector<16x16x8xi1>, vector<16x16x8xf32>
    %cst_52 = arith.constant dense<0.000000e+00> : vector<16x8xf32>
    %100 = vector.multi_reduction <add>, %99, %cst_52 [0] : vector<16x16x8xf32> to vector<16x8xf32>
    %cst_53 = arith.constant dense<0.000000e+00> : vector<8xf32>
    %101 = vector.multi_reduction <add>, %100, %cst_53 [0] : vector<16x8xf32> to vector<8xf32>
    %102 = vector.shape_cast %101 : vector<8xf32> to vector<1x8xf32>
    %103 = arith.addf %96, %102 : vector<1x8xf32>
    %c6_54 = arith.constant 6 : index
    %c0_55 = arith.constant 0 : index
    %104 = vector.load %arg4[%c6_54, %c0_55] : memref<10x8xf32, #tpu.memory_space<vmem>>, vector<1x8xf32>
    tpu.vector_store %arg4[%c6_54, %c0_55], %103 {strides = array<i32>} : memref<10x8xf32, #tpu.memory_space<vmem>>, vector<1x8xf32>,
    %cst_56 = arith.constant 1.000000e+00 : f32
    %105 = vector.broadcast %cst_56 : f32 to vector<16x16x8xf32>
    %106 = arith.cmpf olt, %47, %105 : vector<16x16x8xf32>
    %c3 = arith.constant 3 : index
    %c0_57 = arith.constant 0 : index
    %107 = vector.load %arg4[%c3, %c0_57] : memref<10x8xf32, #tpu.memory_space<vmem>>, vector<1x8xf32>
    %cst_58 = arith.constant 0.000000e+00 : f32
    %108 = vector.broadcast %cst_58 : f32 to vector<16x16x8xf32>
    %109 = arith.select %106, %27, %108 : vector<16x16x8xi1>, vector<16x16x8xf32>
    %cst_59 = arith.constant dense<0.000000e+00> : vector<16x8xf32>
    %110 = vector.multi_reduction <add>, %109, %cst_59 [0] : vector<16x16x8xf32> to vector<16x8xf32>
    %cst_60 = arith.constant dense<0.000000e+00> : vector<8xf32>
    %111 = vector.multi_reduction <add>, %110, %cst_60 [0] : vector<16x8xf32> to vector<8xf32>
    %112 = vector.shape_cast %111 : vector<8xf32> to vector<1x8xf32>
    %113 = arith.addf %107, %112 : vector<1x8xf32>
    %c3_61 = arith.constant 3 : index
    %c0_62 = arith.constant 0 : index
    %114 = vector.load %arg4[%c3_61, %c0_62] : memref<10x8xf32, #tpu.memory_space<vmem>>, vector<1x8xf32>
    tpu.vector_store %arg4[%c3_61, %c0_62], %113 {strides = array<i32>} : memref<10x8xf32, #tpu.memory_space<vmem>>, vector<1x8xf32>,
    %c7 = arith.constant 7 : index
    %c0_63 = arith.constant 0 : index
    %115 = vector.load %arg4[%c7, %c0_63] : memref<10x8xf32, #tpu.memory_space<vmem>>, vector<1x8xf32>
    %cst_64 = arith.constant 1.000000e+00 : f32
    %cst_65 = arith.constant 0.000000e+00 : f32
    %116 = vector.broadcast %cst_64 : f32 to vector<16x16x8xf32>
    %117 = vector.broadcast %cst_65 : f32 to vector<16x16x8xf32>
    %118 = arith.select %106, %116, %117 : vector<16x16x8xi1>, vector<16x16x8xf32>
    %cst_66 = arith.constant dense<0.000000e+00> : vector<16x8xf32>
    %119 = vector.multi_reduction <add>, %118, %cst_66 [0] : vector<16x16x8xf32> to vector<16x8xf32>
    %cst_67 = arith.constant dense<0.000000e+00> : vector<8xf32>
    %120 = vector.multi_reduction <add>, %119, %cst_67 [0] : vector<16x8xf32> to vector<8xf32>
    %121 = vector.shape_cast %120 : vector<8xf32> to vector<1x8xf32>
    %122 = arith.addf %115, %121 : vector<1x8xf32>
    %c7_68 = arith.constant 7 : index
    %c0_69 = arith.constant 0 : index
    %123 = vector.load %arg4[%c7_68, %c0_69] : memref<10x8xf32, #tpu.memory_space<vmem>>, vector<1x8xf32>
    tpu.vector_store %arg4[%c7_68, %c0_69], %122 {strides = array<i32>} : memref<10x8xf32, #tpu.memory_space<vmem>>, vector<1x8xf32>,
    %c8 = arith.constant 8 : index
    %c0_70 = arith.constant 0 : index
    %124 = vector.load %arg4[%c8, %c0_70] : memref<10x8xf32, #tpu.memory_space<vmem>>, vector<1x8xf32>
    %cst_71 = arith.constant dense<0.000000e+00> : vector<16x8xf32>
    %125 = vector.multi_reduction <add>, %27, %cst_71 [0] : vector<16x16x8xf32> to vector<16x8xf32>
    %cst_72 = arith.constant dense<0.000000e+00> : vector<8xf32>
    %126 = vector.multi_reduction <add>, %125, %cst_72 [0] : vector<16x8xf32> to vector<8xf32>
    %127 = vector.shape_cast %126 : vector<8xf32> to vector<1x8xf32>
    %128 = arith.addf %124, %127 : vector<1x8xf32>
    %c8_73 = arith.constant 8 : index
    %c0_74 = arith.constant 0 : index
    %129 = vector.load %arg4[%c8_73, %c0_74] : memref<10x8xf32, #tpu.memory_space<vmem>>, vector<1x8xf32>
    tpu.vector_store %arg4[%c8_73, %c0_74], %128 {strides = array<i32>} : memref<10x8xf32, #tpu.memory_space<vmem>>, vector<1x8xf32>,
    %c9 = arith.constant 9 : index
    %c0_75 = arith.constant 0 : index
    %130 = vector.load %arg4[%c9, %c0_75] : memref<10x8xf32, #tpu.memory_space<vmem>>, vector<1x8xf32>
    %cst_76 = arith.constant 0.000000e+00 : f32
    %131 = vector.broadcast %cst_76 : f32 to vector<16x16x8xf32>
    %132 = arith.cmpf oeq, %47, %131 : vector<16x16x8xf32>
    %cst_77 = arith.constant 0.000000e+00 : f32
    %133 = vector.broadcast %cst_77 : f32 to vector<16x16x8xf32>
    %134 = arith.select %132, %27, %133 : vector<16x16x8xi1>, vector<16x16x8xf32>
    %cst_78 = arith.constant dense<0.000000e+00> : vector<16x8xf32>
    %135 = vector.multi_reduction <add>, %134, %cst_78 [0] : vector<16x16x8xf32> to vector<16x8xf32>
    %cst_79 = arith.constant dense<0.000000e+00> : vector<8xf32>
    %136 = vector.multi_reduction <add>, %135, %cst_79 [0] : vector<16x8xf32> to vector<8xf32>
    %137 = vector.shape_cast %136 : vector<8xf32> to vector<1x8xf32>
    %138 = arith.addf %130, %137 : vector<1x8xf32>
    %c9_80 = arith.constant 9 : index
    %c0_81 = arith.constant 0 : index
    %139 = vector.load %arg4[%c9_80, %c0_81] : memref<10x8xf32, #tpu.memory_space<vmem>>, vector<1x8xf32>
    tpu.vector_store %arg4[%c9_80, %c0_81], %138 {strides = array<i32>} : memref<10x8xf32, #tpu.memory_space<vmem>>, vector<1x8xf32>,
    return
  }
  func.func @transform_0(%arg0: i32, %arg1: i32) -> (i32, i32, i32) {
    %c0_i32 = arith.constant 0 : i32
    %c0_i32_0 = arith.constant 0 : i32
    return %arg1, %c0_i32, %arg0 : i32, i32, i32
  }
  func.func @transform_1(%arg0: i32, %arg1: i32) -> (i32, i32) {
    %c0_i32 = arith.constant 0 : i32
    %c0_i32_0 = arith.constant 0 : i32
    return %c0_i32, %arg0 : i32, i32
  }
  func.func @transform_2(%arg0: i32, %arg1: i32) -> (i32, i32) {
    %c0_i32 = arith.constant 0 : i32
    %c0_i32_0 = arith.constant 0 : i32
    return %c0_i32, %arg0 : i32, i32
  }
}

</mosaic_0001>

<bundles_post_ra>
// kernel: multiscale_spatial_softmax.1
= control target key start
LH: loop header
LB: loop body
LE: loop exit
PB: predicated region body
PF: predicated region fallthrough
CT: control target
= control target key end

     0   :  { %vm5396_vm0 = vcmask 64512   ;;  %vm17_vm1 = vcmask 58368   ;;  %v5255_v0 = vmov 0.0   ;;  %v2327_v53 = vmov 16.0   ;;  %s5252_s2 = inlined_call_operand.vmem [shape: f32[10,8], index: 2, kind: output, shape index: {}]   ;;  %s5253_s0 = inlined_call_operand.vmem [shape: f32[16,16,8], index: 0, kind: input, shape index: {}]   ;;  %s5254_s1 = inlined_call_operand.vmem [shape: f32[2,8], index: 1, kind: input, shape index: {}]  }
   0x1   :  { %16 = vst.msk [vmem:[%s5252_s2] sm:$0xff] %vm5396_vm0, %v5255_v0  ;;  %v2355_v1 = vld [vmem:[%s5253_s0] sm:$0xff]  ;;  %v2360_v2 = vld [vmem:[%s5253_s0 + $0x8] sm:$0xff]  ;;  %v2365_v3 = vld [vmem:[%s5253_s0 + $0x10] sm:$0xff]  ;;  %2260 = vrcp.f32 %v2327_v53 }
   0x2   :  { %18 = vst.msk [vmem:[%s5252_s2 + $0x8] sm:$0x3] %vm17_vm1, %v5255_v0  ;;  %v2370_v4 = vld [vmem:[%s5253_s0 + $0x18] sm:$0xff]  ;;  %v2375_v5 = vld [vmem:[%s5253_s0 + $0x20] sm:$0xff]  ;;  %v2380_v6 = vld [vmem:[%s5253_s0 + $0x28] sm:$0xff]  ;;  %v54_v7 = vsel %vm5396_vm0, %v2355_v1, 0.0 }
   0x3   :  { %v55_v8 = vsel %vm5396_vm0, %v2360_v2, 0.0  ;;  %v63_v9 = vsel %vm5396_vm0, %v2365_v3, 0.0  ;;  %v64_v10 = vsel %vm5396_vm0, %v2370_v4, 0.0  ;;  %v2393_v11 = vld [vmem:[%s5253_s0 + $0x30] sm:$0xff]  ;;  %v72_v13 = vsel %vm5396_vm0, %v2375_v5, 0.0  ;;  %v2402_v15 = vld [vmem:[%s5253_s0 + $0x38] sm:$0xff] }
   0x4   :  { %v56_v12 = vadd.f32 %v55_v8, %v54_v7  ;;  %v73_v14 = vsel %vm5396_vm0, %v2380_v6, 0.0  ;;  %v2407_v16 = vld [vmem:[%s5253_s0 + $0x40] sm:$0xff]  ;;  %v2412_v17 = vld [vmem:[%s5253_s0 + $0x48] sm:$0xff]  ;;  %v65_v18 = vadd.f32 %v64_v10, %v63_v9  ;;  %v81_v20 = vsel %vm5396_vm0, %v2393_v11, 0.0  ;;  %v2419_v21 = vld [vmem:[%s5253_s0 + $0x50] sm:$0xff] }
   0x5   :  { %v74_v19 = vadd.f32 %v73_v14, %v72_v13  ;;  %v2424_v22 = vld [vmem:[%s5253_s0 + $0x58] sm:$0xff]  ;;  %v82_v24 = vsel %vm5396_vm0, %v2402_v15, 0.0  ;;  %v90_v25 = vsel %vm5396_vm0, %v2407_v16, 0.0  ;;  %v91_v26 = vsel %vm5396_vm0, %v2412_v17, 0.0  ;;  %v2435_v27 = vld [vmem:[%s5253_s0 + $0x60] sm:$0xff]  ;;  %v2440_v28 = vld [vmem:[%s5253_s0 + $0x68] sm:$0xff] }
   0x6   :  { %v57_v23 = vrot.slane %v56_v12, 4  ;;  %v2445_v29 = vld [vmem:[%s5253_s0 + $0x70] sm:$0xff]  ;;  %v2450_v30 = vld [vmem:[%s5253_s0 + $0x78] sm:$0xff]  ;;  %v2455_v31 = vld [vmem:[%s5253_s0 + $0x80] sm:$0xff]  ;;  %v66_v33 = vrot.slane %v65_v18, 4  ;;  %v83_v35 = vadd.f32 %v82_v24, %v81_v20  ;;  %v2462_v36 = vadd.f32 %v91_v26, %v90_v25 }
   0x7   :  { %v2460_v32 = vld [vmem:[%s5253_s0 + $0x88] sm:$0xff]  ;;  %v75_v34 = vrot.slane %v74_v19, 4  ;;  %v99_v37 = vsel %vm5396_vm0, %v2419_v21, 0.0  ;;  %v2469_v38 = vld [vmem:[%s5253_s0 + $0x90] sm:$0xff]  ;;  %v100_v40 = vsel %vm5396_vm0, %v2424_v22, 0.0  ;;  %v108_v41 = vsel %vm5396_vm0, %v2435_v27, 0.0 }
   0x8   :  { %5429 = vst [vmem:[#allocation2_spill] sm:$0xff] %v2460_v32  ;;  %v2471_v39 = vadd.f32 %v57_v23, %v56_v12  ;;  %v109_v42 = vsel %vm5396_vm0, %v2440_v28, 0.0  ;;  %v2482_v43 = vld [vmem:[%s5253_s0 + $0x98] sm:$0xff]  ;;  %v2487_v44 = vld [vmem:[%s5253_s0 + $0xa0] sm:$0xff]  ;;  %v117_v45 = vsel %vm5396_vm0, %v2445_v29, 0.0  ;;  %v118_v46 = vsel %vm5396_vm0, %v2450_v30, 0.0 }
   0x9   :  { %5430 = vst [vmem:[#allocation3_spill] sm:$0xff] %v2469_v38  ;;  %v126_v47 = vsel %vm5396_vm0, %v2455_v31, 0.0  ;;  %v127_v48 = vsel %vm5396_vm0, %v2460_v32, 0.0  ;;  %v2500_v49 = vld [vmem:[%s5253_s0 + $0xa8] sm:$0xff]  ;;  %v2505_v50 = vld [vmem:[%s5253_s0 + $0xb0] sm:$0xff]  ;;  %v2510_v51 = vld [vmem:[%s5253_s0 + $0xb8] sm:$0xff]  ;;  %v67_v52 = vadd.f32 %v66_v33, %v65_v18  ;;  %v76_v57 = vadd.f32 %v75_v34, %v74_v19 }
   0xa   :  { %5431 = vst [vmem:[#allocation4_spill] sm:$0xff] %v2482_v43  ;;  %v2515_v54 = vld [vmem:[%s5253_s0 + $0xc0] sm:$0xff]  ;;  %v2520_v55 = vld [vmem:[%s5253_s0 + $0xc8] sm:$0xff]  ;;  %v2525_v56 = vld [vmem:[%s5253_s0 + $0xd0] sm:$0xff]  ;;  %v84_v58 = vrot.slane %v83_v35, 4  ;;  %v93_v59 = vrot.slane %v2462_v36, 4  ;;  %v101_v60 = vadd.f32 %v100_v40, %v99_v37  ;;  %v110_v8 = vadd.f32 %v109_v42, %v108_v41  ;;  %v2578_v41 = vpop.eup %2260 }
   0xb   :  { %5432 = vst [vmem:[#allocation5_spill] sm:$0xff] %v2487_v44  ;;  %v2531_v61 = vld [vmem:[%s5253_s0 + $0xd8] sm:$0xff]  ;;  %v2536_v62 = vld [vmem:[%s5253_s0 + $0xe0] sm:$0xff]  ;;  %v2541_v63 = vld [vmem:[%s5253_s0 + $0xe8] sm:$0xff]  ;;  %v59_v7 = vrot.slane %v2471_v39, 2  ;;  %v119_v9 = vadd.f32 %v118_v46, %v117_v45  ;;  %v128_v10 = vadd.f32 %v127_v48, %v126_v47  ;;  %v135_v13 = vsel %vm5396_vm0, %v2469_v38, 0.0 }
   0xc   :  { %5433 = vst [vmem:[#allocation6_spill] sm:$0xff] %v2500_v49  ;;  %v2547_v12 = vld [vmem:[%s5253_s0 + $0xf0] sm:$0xff]  ;;  %v136_v14 = vsel %vm5396_vm0, %v2482_v43, 0.0  ;;  %v144_v18 = vsel %vm5396_vm0, %v2487_v44, 0.0  ;;  %v145_v19 = vsel %vm5396_vm0, %v2500_v49, 0.0  ;;  %v153_v20 = vsel %vm5396_vm0, %v2505_v50, 0.0 }
   0xd   :  { %5434 = vst [vmem:[#allocation7_spill] sm:$0xff] %v2505_v50  ;;  %v154_v23 = vsel %vm5396_vm0, %v2510_v51, 0.0  ;;  %v162_v24 = vsel %vm5396_vm0, %v2515_v54, 0.0  ;;  %v163_v25 = vsel %vm5396_vm0, %v2520_v55, 0.0  ;;  %v2568_v26 = vld [vmem:[%s5253_s0 + $0xf8] sm:$0xff]  ;;  %v171_v33 = vsel %vm5396_vm0, %v2525_v56, 0.0 }
   0xe   :  { %5435 = vst [vmem:[#allocation8_spill] sm:$0xff] %v2510_v51  ;;  %v172_v34 = vsel %vm5396_vm0, %v2531_v61, 0.0  ;;  %v180_v37 = vsel %vm5396_vm0, %v2536_v62, 0.0  ;;  %v181_v40 = vsel %vm5396_vm0, %v2541_v63, 0.0  ;;  %v68_v42 = vrot.slane %v67_v52, 2 }
   0xf   :  { %5436 = vst [vmem:[#allocation9_spill] sm:$0xff] %v2515_v54  ;;  %v137_v45 = vadd.f32 %v136_v14, %v135_v13  ;;  %v146_v46 = vadd.f32 %v145_v19, %v144_v18  ;;  %v189_v47 = vsel %vm5396_vm0, %v2547_v12, 0.0  ;;  %v85_v48 = vadd.f32 %v84_v58, %v83_v35 }
  0x10   :  { %5437 = vst [vmem:[#allocation10_spill] sm:$0xff] %v2520_v55  ;;  %v102_v53 = vrot.slane %v101_v60, 4  ;;  %v111_v0 = vrot.slane %v110_v8, 4  ;;  %v164_v55 = vadd.f32 %v163_v25, %v162_v24  ;;  %v182_v54 = vadd.f32 %v181_v40, %v180_v37 }
  0x11   :  { %5438 = vst [vmem:[#allocation11_spill] sm:$0xff] %v2525_v56  ;;  %v155_v56 = vadd.f32 %v154_v23, %v153_v20  ;;  %v77_v51 = vrot.slane %v76_v57, 2  ;;  %v129_v50 = vrot.slane %v128_v10, 4  ;;  %v94_v13 = vadd.f32 %v93_v59, %v2462_v36 }
  0x12   :  { %5439 = vst [vmem:[#allocation12_spill] sm:$0xff] %v2531_v61  ;;  %v173_v61 = vadd.f32 %v172_v34, %v171_v33  ;;  %v138_v14 = vrot.slane %v137_v45, 4  ;;  %v147_v18 = vrot.slane %v146_v46, 4  ;;  %v199_v19 = vmul.f32 16.0, %v2578_v41 }
  0x13   :  { %5440 = vst [vmem:[#allocation13_spill] sm:$0xff] %v2536_v62  ;;  %v190_v62 = vsel %vm5396_vm0, %v2568_v26, 0.0  ;;  %v60_v35 = vadd.f32 %v59_v7, %v2471_v39  ;;  %v103_v58 = vadd.f32 %v102_v53, %v101_v60  ;;  %v112_v20 = vadd.f32 %v111_v0, %v110_v8 }
  0x14   :  { %5441 = vst [vmem:[#allocation14_spill] sm:$0xff] %v2541_v63  ;;  %v120_v63 = vrot.slane %v119_v9, 4  ;;  %v191_v49 = vadd.f32 %v190_v62, %v189_v47  ;;  %v156_v23 = vrot.slane %v155_v56, 4  ;;  %v165_v24 = vrot.slane %v164_v55, 4 }
  0x15   :  { %5442 = vst [vmem:[#allocation15_spill] sm:$0xff] %v2547_v12  ;;  %v174_v25 = vrot.slane %v173_v61, 4  ;;  %v183_v33 = vrot.slane %v182_v54, 4  ;;  %v200_v34 = vsub.f32 1.0, %v199_v19  ;;  %v69_v37 = vadd.f32 %v68_v42, %v67_v52 }
  0x16   :  { %5443 = vst [vmem:[#allocation16_spill] sm:$0xff] %v2568_v26  ;;  %v121_v40 = vadd.f32 %v120_v63, %v119_v9  ;;  %v130_v26 = vadd.f32 %v129_v50, %v128_v10  ;;  %v192_v12 = vrot.slane %v191_v49, 4  ;;  %v78_v62 = vadd.f32 %v77_v51, %v76_v57 }
  0x17   :  { %v86_v47 = vrot.slane %v85_v48, 2  ;;  %v139_v36 = vadd.f32 %v138_v14, %v137_v45  ;;  %v148_v59 = vadd.f32 %v147_v18, %v146_v46  ;;  %v95_v44 = vrot.slane %v94_v13, 2 }
  0x18   :  { %v104_v43 = vrot.slane %v103_v58, 2  ;;  %v113_v38 = vrot.slane %v112_v20, 2  ;;  %v157_v32 = vadd.f32 %v156_v23, %v155_v56  ;;  %v166_v39 = vadd.f32 %v165_v24, %v164_v55 }
  0x19   :  { %v175_v60 = vadd.f32 %v174_v25, %v173_v61  ;;  %v184_v0 = vadd.f32 %v183_v33, %v182_v54  ;;  %v201_v7 = vmul.f32 %v2578_v41, %v200_v34  ;;  %v61_v8 = vrot.slane %v60_v35, 1 }
  0x1a   :  { %v122_v53 = vrot.slane %v121_v40, 2  ;;  %v131_v19 = vrot.slane %v130_v26, 2  ;;  %v193_v52 = vadd.f32 %v192_v12, %v191_v49  ;;  %v70_v63 = vrot.slane %v69_v37, 1 }
  0x1b   :  { %v87_v50 = vadd.f32 %v86_v47, %v85_v48  ;;  %v140_v9 = vrot.slane %v139_v36, 2  ;;  %v149_v51 = vrot.slane %v148_v59, 2  ;;  %v96_v57 = vadd.f32 %v95_v44, %v94_v13 }
  0x1c   :  { %v105_v10 = vadd.f32 %v104_v43, %v103_v58  ;;  %v114_v42 = vadd.f32 %v113_v38, %v112_v20  ;;  %v158_v45 = vrot.slane %v157_v32, 2  ;;  %v167_v46 = vrot.slane %v166_v39, 2 }
  0x1d   :  { %v176_v14 = vrot.slane %v175_v60, 2  ;;  %v185_v56 = vrot.slane %v184_v0, 2  ;;  %v202_v55 = vadd.f32 %v2578_v41, %v201_v7  ;;  %v123_v54 = vadd.f32 %v122_v53, %v121_v40 }
  0x1e   :  { %v132_v61 = vadd.f32 %v131_v19, %v130_v26  ;;  %v194_v18 = vrot.slane %v193_v52, 2  ;;  %vm203_vm2 = vweird.f32 %v2578_v41  ;;  %v62_v23 = vadd.f32 %v61_v8, %v60_v35 }
  0x1f   :  { %v79_v49 = vrot.slane %v78_v62, 1  ;;  %v141_v12 = vadd.f32 %v140_v9, %v139_v36  ;;  %v150_v48 = vadd.f32 %v149_v51, %v148_v59  ;;  %v88_v24 = vrot.slane %v87_v50, 1 }
  0x20   :  { %v97_v25 = vrot.slane %v96_v57, 1  ;;  %v106_v44 = vrot.slane %v105_v10, 1  ;;  %v159_v43 = vadd.f32 %v158_v45, %v157_v32  ;;  %v168_v38 = vadd.f32 %v167_v46, %v166_v39 }
  0x21   :  { %v177_v13 = vadd.f32 %v176_v14, %v175_v60  ;;  %v186_v58 = vadd.f32 %v185_v56, %v184_v0  ;;  %v2591_v20 = vsel %vm203_vm2, %v2578_v41, %v202_v55  ;;  %v115_v33 = vrot.slane %v114_v42, 1 }
  0x22   :  { %v124_v34 = vrot.slane %v123_v54, 1  ;;  %v133_v26 = vrot.slane %v132_v61, 1  ;;  %v195_v40 = vadd.f32 %v194_v18, %v193_v52  ;;  %v71_v47 = vadd.f32 %v70_v63, %v69_v37 }
  0x23   :  { %v80_v7 = vadd.f32 %v79_v49, %v78_v62  ;;  %v142_v35 = vrot.slane %v141_v12, 1  ;;  %v151_v8 = vrot.slane %v150_v48, 1  ;;  %v89_v36 = vadd.f32 %v88_v24, %v87_v50 }
  0x24   :  { %v98_v59 = vadd.f32 %v97_v25, %v96_v57  ;;  %v160_v53 = vrot.slane %v159_v43, 1  ;;  %v205_v19 = vmul.f32 %v2591_v20, %v62_v23  ;;  %v107_v32 = vadd.f32 %v106_v44, %v105_v10 }
  0x25   :  { %v169_v39 = vrot.slane %v168_v38, 1  ;;  %v178_v60 = vrot.slane %v177_v13, 1  ;;  %v187_v0 = vrot.slane %v186_v58, 1  ;;  %v116_v9 = vadd.f32 %v115_v33, %v114_v42 }
  0x26   :  { %v125_v41 = vadd.f32 %v124_v34, %v123_v54  ;;  %v134_v51 = vadd.f32 %v133_v26, %v132_v61  ;;  %v196_v45 = vrot.slane %v195_v40, 1  ;;  %v143_v46 = vadd.f32 %v142_v35, %v141_v12 }
  0x27   :  { %v152_v14 = vadd.f32 %v151_v8, %v150_v48  ;;  %v206_v37 = vmul.f32 %v2591_v20, %v71_v47  ;;  %v207_v62 = vmul.f32 %v2591_v20, %v80_v7  ;;  %v161_v52 = vadd.f32 %v160_v53, %v159_v43 }
  0x28   :  { %v208_v63 = vmul.f32 %v2591_v20, %v89_v36  ;;  %v2598_v50 = vsub.f32 %v2355_v1, %v205_v19  ;;  %v2601_v57 = vsub.f32 %v2360_v2, %v205_v19  ;;  %v170_v10 = vadd.f32 %v169_v39, %v168_v38 }
  0x29   :  { %v179_v42 = vadd.f32 %v178_v60, %v177_v13  ;;  %v188_v56 = vadd.f32 %v187_v0, %v186_v58  ;;  %v209_v55 = vmul.f32 %v2591_v20, %v98_v59  ;;  %v197_v54 = vadd.f32 %v196_v45, %v195_v40  ;;  %v5444_v0 = vld [vmem:[#allocation2_spill] sm:$0xff] }
  0x2a   :  { %v210_v61 = vmul.f32 %v2591_v20, %v107_v32  ;;  %v211_v18 = vmul.f32 %v2591_v20, %v116_v9  ;;  %v212_v23 = vmul.f32 %v2591_v20, %v125_v41  ;;  %v2608_v49 = vsub.f32 %v2365_v3, %v206_v37 }
  0x2b   :  { %v2611_v1 = vsub.f32 %v2370_v4, %v206_v37  ;;  %v2614_v2 = vsub.f32 %v2375_v5, %v207_v62  ;;  %v2617_v12 = vsub.f32 %v2380_v6, %v207_v62  ;;  %v2620_v48 = vsub.f32 %v2393_v11, %v208_v63 }
  0x2c   :  { %v2623_v24 = vsub.f32 %v2402_v15, %v208_v63  ;;  %v253_v25 = vmul.f32 %v2598_v50, %v2598_v50  ;;  %v254_v3 = vmul.f32 %v2601_v57, %v2601_v57  ;;  %v213_v4 = vmul.f32 %v2591_v20, %v134_v51 }
  0x2d   :  { %v214_v5 = vmul.f32 %v2591_v20, %v143_v46  ;;  %v215_v44 = vmul.f32 %v2591_v20, %v152_v14  ;;  %v216_v6 = vmul.f32 %v2591_v20, %v161_v52  ;;  %v217_v11 = vmul.f32 %v2591_v20, %v170_v10 }
  0x2e   :  { %v218_v43 = vmul.f32 %v2591_v20, %v179_v42  ;;  %v2636_v15 = vmul.f32 %v2591_v20, %v188_v56  ;;  %v2639_v38 = vmul.f32 %v2591_v20, %v197_v54  ;;  %v255_v13 = vmul.f32 %v2608_v49, %v2608_v49  ;;  %v5448_v42 = vld [vmem:[#allocation4_spill] sm:$0xff] }
  0x2f   :  { %v256_v58 = vmul.f32 %v2611_v1, %v2611_v1  ;;  %v257_v33 = vmul.f32 %v2614_v2, %v2614_v2  ;;  %v258_v34 = vmul.f32 %v2617_v12, %v2617_v12  ;;  %v259_v26 = vmul.f32 %v2620_v48, %v2620_v48 }
  0x30   :  { %v260_v40 = vmul.f32 %v2623_v24, %v2623_v24  ;;  %v285_v47 = vsel %vm5396_vm0, %v253_v25, 0.0  ;;  %v286_v7 = vsel %vm5396_vm0, %v254_v3, 0.0  ;;  %v2656_v35 = vsub.f32 %v2407_v16, %v209_v55 }
  0x31   :  { %v2659_v8 = vsub.f32 %v2412_v17, %v209_v55  ;;  %v2662_v36 = vsub.f32 %v2419_v21, %v210_v61  ;;  %v2665_v59 = vsub.f32 %v2424_v22, %v210_v61  ;;  %v2668_v53 = vsub.f32 %v2435_v27, %v211_v18  ;;  %v5450_v55 = vld [vmem:[#allocation5_spill] sm:$0xff]  ;;  %v5452_v61 = vld [vmem:[#allocation6_spill] sm:$0xff] }
  0x32   :  { %v2671_v19 = vsub.f32 %v2440_v28, %v211_v18  ;;  %v2674_v32 = vsub.f32 %v2445_v29, %v212_v23  ;;  %v287_v16 = vadd.f32 %v286_v7, %v285_v47  ;;  %v2677_v39 = vsub.f32 %v2450_v30, %v212_v23  ;;  %v5446_v30 = vld [vmem:[#allocation3_spill] sm:$0xff] }
  0x33   :  { %v2680_v17 = vsub.f32 %v2455_v31, %v213_v4  ;;  %v294_v21 = vsel %vm5396_vm0, %v255_v13, 0.0  ;;  %v295_v22 = vsel %vm5396_vm0, %v256_v58, 0.0  ;;  %v303_v27 = vsel %vm5396_vm0, %v257_v33, 0.0  ;;  %v5454_v23 = vld [vmem:[#allocation7_spill] sm:$0xff] }
  0x34   :  { %v304_v60 = vsel %vm5396_vm0, %v258_v34, 0.0  ;;  %v312_v28 = vsel %vm5396_vm0, %v259_v26, 0.0  ;;  %v313_v29 = vsel %vm5396_vm0, %v260_v40, 0.0  ;;  %v2689_v9 = vsub.f32 %v5444_v0, %v213_v4  ;;  %v5462_v0 = vld [vmem:[#allocation11_spill] sm:$0xff] }
  0x35   :  { %v2692_v41 = vsub.f32 %v5446_v30, %v214_v5  ;;  %v261_v31 = vmul.f32 %v2656_v35, %v2656_v35  ;;  %v262_v51 = vmul.f32 %v2659_v8, %v2659_v8  ;;  %v263_v45 = vmul.f32 %v2662_v36, %v2662_v36 }
  0x36   :  { %5445 = vst [vmem:[#allocation2_spill] sm:$0xff] %v2689_v9  ;;  %v264_v46 = vmul.f32 %v2665_v59, %v2665_v59  ;;  %v288_v14 = vrot.slane %v287_v16, 4  ;;  %v296_v37 = vadd.f32 %v295_v22, %v294_v21  ;;  %v265_v62 = vmul.f32 %v2668_v53, %v2668_v53  ;;  %v5456_v21 = vld [vmem:[#allocation8_spill] sm:$0xff] }
  0x37   :  { %5447 = vst [vmem:[#allocation3_spill] sm:$0xff] %v2692_v41  ;;  %v266_v52 = vmul.f32 %v2671_v19, %v2671_v19  ;;  %v305_v63 = vadd.f32 %v304_v60, %v303_v27  ;;  %v314_v10 = vadd.f32 %v313_v29, %v312_v28  ;;  %v2707_v56 = vsub.f32 %v5448_v42, %v214_v5  ;;  %v5458_v27 = vld [vmem:[#allocation9_spill] sm:$0xff]  ;;  %v5460_v28 = vld [vmem:[#allocation10_spill] sm:$0xff] }
  0x38   :  { %v2710_v54 = vsub.f32 %v5450_v55, %v215_v44  ;;  %v2713_v18 = vsub.f32 %v5452_v61, %v215_v44  ;;  %v2716_v25 = vsub.f32 %v5454_v23, %v216_v6  ;;  %v267_v3 = vmul.f32 %v2674_v32, %v2674_v32  ;;  %v5466_v23 = vld [vmem:[#allocation13_spill] sm:$0xff] }
  0x39   :  { %5449 = vst [vmem:[#allocation4_spill] sm:$0xff] %v2707_v56  ;;  %v268_v4 = vmul.f32 %v2677_v39, %v2677_v39  ;;  %v321_v13 = vsel %vm5396_vm0, %v261_v31, 0.0  ;;  %v322_v5 = vsel %vm5396_vm0, %v262_v51, 0.0  ;;  %v289_v58 = vadd.f32 %v288_v14, %v287_v16  ;;  %v5464_v31 = vld [vmem:[#allocation12_spill] sm:$0xff] }
  0x3a   :  { %5451 = vst [vmem:[#allocation5_spill] sm:$0xff] %v2710_v54  ;;  %v297_v33 = vrot.slane %v296_v37, 4  ;;  %v330_v34 = vsel %vm5396_vm0, %v263_v45, 0.0  ;;  %v331_v44 = vsel %vm5396_vm0, %v264_v46, 0.0  ;;  %v306_v26 = vrot.slane %v305_v63, 4 }
  0x3b   :  { %5453 = vst [vmem:[#allocation6_spill] sm:$0xff] %v2713_v18  ;;  %v315_v40 = vrot.slane %v314_v10, 4  ;;  %v339_v47 = vsel %vm5396_vm0, %v265_v62, 0.0  ;;  %v340_v7 = vsel %vm5396_vm0, %v266_v52, 0.0  ;;  %v2729_v22 = vsub.f32 %v5456_v21, %v216_v6 }
  0x3c   :  { %5455 = vst [vmem:[#allocation7_spill] sm:$0xff] %v2716_v25  ;;  %v2732_v60 = vsub.f32 %v5458_v27, %v217_v11  ;;  %v2735_v29 = vsub.f32 %v5460_v28, %v217_v11  ;;  %v323_v16 = vadd.f32 %v322_v5, %v321_v13  ;;  %v2738_v30 = vsub.f32 %v5462_v0, %v218_v43  ;;  %v5468_v13 = vld [vmem:[#allocation14_spill] sm:$0xff] }
  0x3d   :  { %5457 = vst [vmem:[#allocation8_spill] sm:$0xff] %v2729_v22  ;;  %v2741_v51 = vsub.f32 %v5464_v31, %v218_v43  ;;  %v269_v45 = vmul.f32 %v2680_v17, %v2680_v17  ;;  %v332_v46 = vadd.f32 %v331_v44, %v330_v34  ;;  %v270_v6 = vmul.f32 %v2689_v9, %v2689_v9  ;;  %v5470_v34 = vld [vmem:[#allocation15_spill] sm:$0xff] }
  0x3e   :  { %5459 = vst [vmem:[#allocation9_spill] sm:$0xff] %v2732_v60  ;;  %v290_v14 = vrot.slane %v289_v58, 2  ;;  %v298_v62 = vadd.f32 %v297_v33, %v296_v37  ;;  %v341_v52 = vadd.f32 %v340_v7, %v339_v47  ;;  %v307_v42 = vadd.f32 %v306_v26, %v305_v63  ;;  %v5472_v63 = vld [vmem:[#allocation16_spill] sm:$0xff] }
  0x3f   :  { %5461 = vst [vmem:[#allocation10_spill] sm:$0xff] %v2735_v29  ;;  %v316_v11 = vadd.f32 %v315_v40, %v314_v10  ;;  %v348_v55 = vsel %vm5396_vm0, %v267_v3, 0.0  ;;  %v349_v61 = vsel %vm5396_vm0, %v268_v4, 0.0  ;;  %v2751_v43 = vsub.f32 %v5466_v23, %v2636_v15 }
  0x40   :  { %5463 = vst [vmem:[#allocation11_spill] sm:$0xff] %v2738_v30  ;;  %v2755_v5 = vsub.f32 %v5468_v13, %v2636_v15  ;;  %v2759_v44 = vsub.f32 %v5470_v34, %v2639_v38  ;;  %v324_v37 = vrot.slane %v323_v16, 4  ;;  %v2763_v10 = vsub.f32 %v5472_v63, %v2639_v38 }
  0x41   :  { %5465 = vst [vmem:[#allocation12_spill] sm:$0xff] %v2741_v51  ;;  %v271_v3 = vmul.f32 %v2692_v41, %v2692_v41  ;;  %v272_v4 = vmul.f32 %v2707_v56, %v2707_v56  ;;  %v333_v33 = vrot.slane %v332_v46, 4  ;;  %v342_v26 = vrot.slane %v341_v52, 4 }
  0x42   :  { %5467 = vst [vmem:[#allocation13_spill] sm:$0xff] %v2751_v43  ;;  %v350_v40 = vadd.f32 %v349_v61, %v348_v55  ;;  %v357_v15 = vsel %vm5396_vm0, %v269_v45, 0.0  ;;  %v358_v47 = vsel %vm5396_vm0, %v270_v6, 0.0  ;;  %v291_v7 = vadd.f32 %v290_v14, %v289_v58 }
  0x43   :  { %5469 = vst [vmem:[#allocation14_spill] sm:$0xff] %v2755_v5  ;;  %v299_v21 = vrot.slane %v298_v62, 2  ;;  %v308_v27 = vrot.slane %v307_v42, 2  ;;  %v317_v28 = vrot.slane %v316_v11, 2  ;;  %v273_v38 = vmul.f32 %v2710_v54, %v2710_v54 }
  0x44   :  { %5471 = vst [vmem:[#allocation15_spill] sm:$0xff] %v2759_v44  ;;  %v274_v0 = vmul.f32 %v2713_v18, %v2713_v18  ;;  %v275_v31 = vmul.f32 %v2716_v25, %v2716_v25  ;;  %v325_v23 = vadd.f32 %v324_v37, %v323_v16  ;;  %v276_v55 = vmul.f32 %v2729_v22, %v2729_v22 }
  0x45   :  { %5473 = vst [vmem:[#allocation16_spill] sm:$0xff] %v2763_v10  ;;  %v277_v45 = vmul.f32 %v2732_v60, %v2732_v60  ;;  %v334_v58 = vadd.f32 %v333_v33, %v332_v46  ;;  %v359_v6 = vadd.f32 %v358_v47, %v357_v15  ;;  %v278_v14 = vmul.f32 %v2735_v29, %v2735_v29 }
  0x46   :  { %v279_v61 = vmul.f32 %v2738_v30, %v2738_v30  ;;  %v343_v13 = vadd.f32 %v342_v26, %v341_v52  ;;  %v351_v34 = vrot.slane %v350_v40, 4  ;;  %v292_v63 = vrot.slane %v291_v7, 1 }
  0x47   :  { %v300_v18 = vadd.f32 %v299_v21, %v298_v62  ;;  %v309_v25 = vadd.f32 %v308_v27, %v307_v42  ;;  %v318_v16 = vadd.f32 %v317_v28, %v316_v11  ;;  %v280_v37 = vmul.f32 %v2741_v51, %v2741_v51 }
  0x48   :  { %v281_v60 = vmul.f32 %v2751_v43, %v2751_v43  ;;  %v282_v46 = vmul.f32 %v2755_v5, %v2755_v5  ;;  %v326_v33 = vrot.slane %v325_v23, 2  ;;  %v335_v15 = vrot.slane %v334_v58, 2 }
  0x49   :  { %v360_v47 = vrot.slane %v359_v6, 4  ;;  %v366_v30 = vsel %vm5396_vm0, %v271_v3, 0.0  ;;  %v367_v52 = vsel %vm5396_vm0, %v272_v4, 0.0  ;;  %v283_v62 = vmul.f32 %v2759_v44, %v2759_v44 }
  0x4a   :  { %v284_v42 = vmul.f32 %v2763_v10, %v2763_v10  ;;  %v344_v11 = vrot.slane %v343_v13, 2  ;;  %v352_v26 = vadd.f32 %v351_v34, %v350_v40  ;;  %v293_v21 = vadd.f32 %v292_v63, %v291_v7 }
  0x4b   :  { %v301_v27 = vrot.slane %v300_v18, 1  ;;  %v310_v28 = vrot.slane %v309_v25, 1  ;;  %v319_v43 = vrot.slane %v318_v16, 1  ;;  %v327_v5 = vadd.f32 %v326_v33, %v325_v23 }
  0x4c   :  { %v368_v51 = vadd.f32 %v367_v52, %v366_v30  ;;  %v375_v29 = vsel %vm5396_vm0, %v273_v38, 0.0  ;;  %v376_v3 = vsel %vm5396_vm0, %v274_v0, 0.0  ;;  %v336_v22 = vadd.f32 %v335_v15, %v334_v58 }
  0x4d   :  { %v361_v4 = vadd.f32 %v360_v47, %v359_v6  ;;  %v384_v54 = vsel %vm5396_vm0, %v275_v31, 0.0  ;;  %v385_v44 = vsel %vm5396_vm0, %v276_v55, 0.0  ;;  %v345_v56 = vadd.f32 %v344_v11, %v343_v13 }
  0x4e   :  { %v353_v10 = vrot.slane %v352_v26, 2  ;;  %v393_v40 = vsel %vm5396_vm0, %v277_v45, 0.0  ;;  %v394_v7 = vsel %vm5396_vm0, %v278_v14, 0.0  ;;  %v302_v34 = vadd.f32 %v301_v27, %v300_v18 }
  0x4f   :  { %v377_v63 = vadd.f32 %v376_v3, %v375_v29  ;;  %v402_v30 = vsel %vm5396_vm0, %v279_v61, 0.0  ;;  %v403_v38 = vsel %vm5396_vm0, %v280_v37, 0.0  ;;  %v369_v23 = vrot.slane %v368_v51, 4 }
  0x50   :  { %v386_v0 = vadd.f32 %v385_v44, %v384_v54  ;;  %v411_v58 = vsel %vm5396_vm0, %v281_v60, 0.0  ;;  %v412_v31 = vsel %vm5396_vm0, %v282_v46, 0.0  ;;  %v311_v6 = vadd.f32 %v310_v28, %v309_v25 }
  0x51   :  { %v328_v55 = vrot.slane %v327_v5, 1  ;;  %v362_v13 = vrot.slane %v361_v4, 2  ;;  %v395_v33 = vadd.f32 %v394_v7, %v393_v40  ;;  %v337_v15 = vrot.slane %v336_v22, 1 }
  0x52   :  { %v346_v45 = vrot.slane %v345_v56, 1  ;;  %v354_v47 = vadd.f32 %v353_v10, %v352_v26  ;;  %v404_v14 = vadd.f32 %v403_v38, %v402_v30  ;;  %v378_v18 = vrot.slane %v377_v63, 4 }
  0x53   :  { %v413_v29 = vadd.f32 %v412_v31, %v411_v58  ;;  %v420_v61 = vsel %vm5396_vm0, %v283_v62, 0.0  ;;  %v421_v37 = vsel %vm5396_vm0, %v284_v42, 0.0  ;;  %v320_v52 = vadd.f32 %v319_v43, %v318_v16 }
  0x54   :  { %v370_v54 = vadd.f32 %v369_v23, %v368_v51  ;;  %v387_v44 = vrot.slane %v386_v0, 4  ;;  %v429_v60 = vmul.f32 %v293_v21, %v2591_v20  ;;  %v329_v46 = vadd.f32 %v328_v55, %v327_v5 }
  0x55   :  { %v363_v25 = vadd.f32 %v362_v13, %v361_v4  ;;  %v396_v11 = vrot.slane %v395_v33, 4  ;;  %v430_v27 = vmul.f32 %v302_v34, %v2591_v20  ;;  %v338_v28 = vadd.f32 %v337_v15, %v336_v22 }
  0x56   :  { %v355_v3 = vrot.slane %v354_v47, 1  ;;  %v405_v10 = vrot.slane %v404_v14, 4  ;;  %v422_v26 = vadd.f32 %v421_v37, %v420_v61  ;;  %v347_v40 = vadd.f32 %v346_v45, %v345_v56 }
  0x57   :  { %v379_v7 = vadd.f32 %v378_v18, %v377_v63  ;;  %v414_v30 = vrot.slane %v413_v29, 4  ;;  %v431_v62 = vmul.f32 %v311_v6, %v2591_v20  ;;  %v371_v42 = vrot.slane %v370_v54, 2 }
  0x58   :  { %v388_v43 = vadd.f32 %v387_v44, %v386_v0  ;;  %v432_v51 = vmul.f32 %v320_v52, %v2591_v20  ;;  %v2813_v16 = vadd.f32 1e-06, %v429_v60  ;;  %v364_v5 = vrot.slane %v363_v25, 1 }
  0x59   :  { %v397_v21 = vadd.f32 %v396_v11, %v395_v33  ;;  %v433_v4 = vmul.f32 %v329_v46, %v2591_v20  ;;  %v2816_v34 = vadd.f32 1e-06, %v430_v27  ;;  %v356_v22 = vadd.f32 %v355_v3, %v354_v47 }
  0x5a   :  { %v406_v38 = vadd.f32 %v405_v10, %v404_v14  ;;  %v423_v23 = vrot.slane %v422_v26, 4  ;;  %v434_v56 = vmul.f32 %v338_v28, %v2591_v20  ;;  %v380_v63 = vrot.slane %v379_v7, 2 }
  0x5b   :  { %v415_v58 = vadd.f32 %v414_v30, %v413_v29  ;;  %v435_v31 = vmul.f32 %v347_v40, %v2591_v20  ;;  %v2820_v0 = vadd.f32 1e-06, %v431_v62  ;;  %v372_v6 = vadd.f32 %v371_v42, %v370_v54 }
  0x5c   :  { %v389_v55 = vrot.slane %v388_v43, 2  ;;  %v2822_v13 = vadd.f32 1e-06, %v432_v51  ;;  %2262 = vrsqrt.f32 %v2813_v16  ;;  %v365_v33 = vadd.f32 %v364_v5, %v363_v25 }
  0x5d   :  { %v398_v15 = vrot.slane %v397_v21, 2  ;;  %v2825_v45 = vadd.f32 1e-06, %v433_v4  ;;  %2264 = vrsqrt.f32 %v2816_v34  ;;  %v407_v47 = vrot.slane %v406_v38, 2 }
  0x5e   :  { %v424_v14 = vadd.f32 %v423_v23, %v422_v26  ;;  %v2828_v18 = vadd.f32 1e-06, %v434_v56  ;;  %v381_v29 = vadd.f32 %v380_v63, %v379_v7  ;;  %v416_v61 = vrot.slane %v415_v58, 2 }
  0x5f   :  { %v2830_v37 = vadd.f32 1e-06, %v435_v31  ;;  %2266 = vrsqrt.f32 %v2820_v0  ;;  %v390_v52 = vadd.f32 %v389_v55, %v388_v43  ;;  %v436_v54 = vmul.f32 %v356_v22, %v2591_v20 }
  0x60   :  { %2268 = vrsqrt.f32 %v2822_v13  ;;  %v373_v44 = vrot.slane %v372_v6, 1  ;;  %v399_v60 = vadd.f32 %v398_v15, %v397_v21  ;;  %v437_v46 = vmul.f32 %v365_v33, %v2591_v20 }
  0x61   :  { %2270 = vrsqrt.f32 %v2825_v45  ;;  %v408_v11 = vadd.f32 %v407_v47, %v406_v38  ;;  %v425_v27 = vrot.slane %v424_v14, 2  ;;  %v382_v3 = vrot.slane %v381_v29, 1 }
  0x62   :  { %v2837_v25 = vpop.eup %2262  ;;  %2272 = vrsqrt.f32 %v2828_v18  ;;  %v417_v10 = vadd.f32 %v416_v61, %v415_v58  ;;  %v391_v26 = vrot.slane %v390_v52, 1  ;;  %v2843_v40 = vadd.f32 1e-06, %v436_v54 }
  0x63   :  { %v2840_v28 = vpop.eup %2264  ;;  %2274 = vrsqrt.f32 %v2830_v37  ;;  %v374_v30 = vadd.f32 %v373_v44, %v372_v6  ;;  %v400_v62 = vrot.slane %v399_v60, 1  ;;  %v2847_v42 = vadd.f32 1e-06, %v437_v46 }
  0x64   :  { %v462_v43 = vmul.f32 %v2837_v25, %v2813_v16  ;;  %v409_v5 = vrot.slane %v408_v11, 1  ;;  %v426_v21 = vadd.f32 %v425_v27, %v424_v14  ;;  %v474_v4 = vmul.f32 %v2840_v28, %v2816_v34 }
  0x65   :  { %v2845_v7 = vpop.eup %2266  ;;  %v383_v38 = vadd.f32 %v382_v3, %v381_v29  ;;  %v418_v23 = vrot.slane %v417_v10, 1  ;;  %v392_v63 = vadd.f32 %v391_v26, %v390_v52  ;;  %2276 = vrsqrt.f32 %v2843_v40 }
  0x66   :  { %v2851_v51 = vpop.eup %2268  ;;  %v401_v31 = vadd.f32 %v400_v62, %v399_v60  ;;  %v438_v6 = vmul.f32 %v374_v30, %v2591_v20  ;;  %v463_v55 = vmul.f32 %v2837_v25, %v462_v43  ;;  %2278 = vrsqrt.f32 %v2847_v42 }
  0x67   :  { %v2855_v22 = vpop.eup %2270  ;;  %v410_v33 = vadd.f32 %v409_v5, %v408_v11  ;;  %v427_v15 = vrot.slane %v426_v21, 1  ;;  %v475_v47 = vmul.f32 %v2840_v28, %v474_v4  ;;  %v419_v14 = vadd.f32 %v418_v23, %v417_v10 }
  0x68   :  { %v2857_v56 = vpop.eup %2272  ;;  %v439_v29 = vmul.f32 %v383_v38, %v2591_v20  ;;  %v486_v61 = vmul.f32 %v2845_v7, %v2820_v0  ;;  %v498_v52 = vmul.f32 %v2851_v51, %v2822_v13  ;;  %v440_v54 = vmul.f32 %v392_v63, %v2591_v20 }
  0x69   :  { %v2860_v58 = vpop.eup %2274  ;;  %v510_v44 = vmul.f32 %v2855_v22, %v2825_v45  ;;  %v522_v60 = vmul.f32 %v2857_v56, %v2828_v18  ;;  %v441_v11 = vmul.f32 %v401_v31, %v2591_v20  ;;  %v2879_v27 = vadd.f32 1e-06, %v438_v6 }
  0x6a   :  { %v534_v46 = vmul.f32 %v2860_v58, %v2830_v37  ;;  %v464_v3 = vmul.f32 0.5, %v463_v55  ;;  %v428_v26 = vadd.f32 %v427_v15, %v426_v21  ;;  %v442_v30 = vmul.f32 %v410_v33, %v2591_v20 }
  0x6b   :  { %v2881_v10 = vpop.eup %2276  ;;  %v476_v62 = vmul.f32 0.5, %v475_v47  ;;  %v443_v5 = vmul.f32 %v419_v14, %v2591_v20  ;;  %v2887_v4 = vadd.f32 1e-06, %v439_v29  ;;  %v487_v38 = vmul.f32 %v2845_v7, %v486_v61 }
  0x6c   :  { %v2884_v43 = vpop.eup %2278  ;;  %v499_v23 = vmul.f32 %v2851_v51, %v498_v52  ;;  %v2891_v63 = vadd.f32 1e-06, %v440_v54  ;;  %v511_v31 = vmul.f32 %v2855_v22, %v510_v44  ;;  %v523_v6 = vmul.f32 %v2857_v56, %v522_v60 }
  0x6d   :  { %v535_v21 = vmul.f32 %v2860_v58, %v534_v46  ;;  %v2896_v55 = vadd.f32 1e-06, %v441_v11  ;;  %v465_v33 = vsub.f32 1.5, %v464_v3  ;;  %v546_v15 = vmul.f32 %v2881_v10, %v2843_v40 }
  0x6e   :  { %2280 = vrsqrt.f32 %v2879_v27  ;;  %v444_v47 = vmul.f32 %v428_v26, %v2591_v20  ;;  %v2902_v14 = vadd.f32 1e-06, %v442_v30  ;;  %v477_v29 = vsub.f32 1.5, %v476_v62 }
  0x6f   :  { %v558_v61 = vmul.f32 %v2884_v43, %v2847_v42  ;;  %v2906_v52 = vadd.f32 1e-06, %v443_v5  ;;  %vm468_vm3 = vcmp.eq.f32.partialorder %v2813_v16, inf  ;;  %v488_v54 = vmul.f32 0.5, %v487_v38 }
  0x70   :  { %v500_v44 = vmul.f32 0.5, %v499_v23  ;;  %v471_v60 = vand.u32 2147483648, %v2813_v16  ;;  %v512_v46 = vmul.f32 0.5, %v511_v31  ;;  %v524_v11 = vmul.f32 0.5, %v523_v6 }
  0x71   :  { %v536_v3 = vmul.f32 0.5, %v535_v21  ;;  %v466_v41 = vmul.f32 %v2837_v25, %v465_v33  ;;  %vm480_vm4 = vcmp.eq.f32.partialorder %v2816_v34, inf  ;;  %v483_v20 = vand.u32 2147483648, %v2816_v34 }
  0x72   :  { %v547_v26 = vmul.f32 %v2881_v10, %v546_v15  ;;  %v2914_v30 = vadd.f32 1e-06, %v444_v47  ;;  %vm470_vm5 = vcmp.eq.f32.partialorder %v2813_v16, 0.0  ;;  %v478_v62 = vmul.f32 %v2840_v28, %v477_v29 }
  0x73   :  { %v559_v5 = vmul.f32 %v2884_v43, %v558_v61  ;;  %2282 = vrsqrt.f32 %v2887_v4  ;;  %vm482_vm6 = vcmp.eq.f32.partialorder %v2816_v34, 0.0  ;;  %v489_v25 = vsub.f32 1.5, %v488_v54 }
  0x74   :  { %v2920_v38 = vpop.eup %2280  ;;  %v495_v23 = vand.u32 2147483648, %v2820_v0  ;;  %v501_v31 = vsub.f32 1.5, %v500_v44  ;;  %vm492_vm7 = vcmp.eq.f32.partialorder %v2820_v0, inf  ;;  %vm504_vm8 = vcmp.eq.f32.partialorder %v2822_v13, inf }
  0x75   :  { %v513_v21 = vsub.f32 1.5, %v512_v46  ;;  %v525_v33 = vsub.f32 1.5, %v524_v11  ;;  %v537_v15 = vsub.f32 1.5, %v536_v3  ;;  %v467_v47 = vmul.f32 %v466_v41, %v2813_v16 }
  0x76   :  { %vm516_vm9 = vcmp.eq.f32.partialorder %v2825_v45, inf  ;;  %vm528_vm10 = vcmp.eq.f32.partialorder %v2828_v18, inf  ;;  %v548_v61 = vmul.f32 0.5, %v547_v26  ;;  %2284 = vrsqrt.f32 %v2891_v63 }
  0x77   :  { %v479_v54 = vmul.f32 %v478_v62, %v2816_v34  ;;  %vm540_vm11 = vcmp.eq.f32.partialorder %v2830_v37, inf  ;;  %v560_v44 = vmul.f32 0.5, %v559_v5  ;;  %v570_v46 = vmul.f32 %v2920_v38, %v2879_v27 }
  0x78   :  { %v490_v11 = vmul.f32 %v2845_v7, %v489_v25  ;;  %v502_v41 = vmul.f32 %v2851_v51, %v501_v31  ;;  %2286 = vrsqrt.f32 %v2896_v55  ;;  %vm494_vm12 = vcmp.eq.f32.partialorder %v2820_v0, 0.0 }
  0x79   :  { %v2941_v29 = vpop.eup %2282  ;;  %vm506_vm13 = vcmp.eq.f32.partialorder %v2822_v13, 0.0  ;;  %v514_v26 = vmul.f32 %v2855_v22, %v513_v21  ;;  %v526_v62 = vmul.f32 %v2857_v56, %v525_v33  ;;  %v538_v5 = vmul.f32 %v2860_v58, %v537_v15 }
  0x7a   :  { %2288 = vrsqrt.f32 %v2902_v14  ;;  %v469_v7 = vsel %vm468_vm3, %v2813_v16, %v467_v47  ;;  %vm518_vm14 = vcmp.eq.f32.partialorder %v2825_v45, 0.0  ;;  %v549_v51 = vsub.f32 1.5, %v548_v61 }
  0x7b   :  { %v582_v31 = vmul.f32 %v2941_v29, %v2887_v4  ;;  %v481_v22 = vsel %vm480_vm4, %v2816_v34, %v479_v54  ;;  %vm530_vm15 = vcmp.eq.f32.partialorder %v2828_v18, 0.0  ;;  %vm542_vm1 = vcmp.eq.f32.partialorder %v2830_v37, 0.0 }
  0x7c   :  { %v561_v56 = vsub.f32 1.5, %v560_v44  ;;  %v571_v58 = vmul.f32 %v2920_v38, %v570_v46  ;;  %2290 = vrsqrt.f32 %v2906_v52  ;;  %v2963_v21 = vpop.eup %2284  ;;  %v491_v33 = vmul.f32 %v490_v11, %v2820_v0 }
  0x7d   :  { %v503_v15 = vmul.f32 %v502_v41, %v2822_v13  ;;  %vm552_vm2 = vcmp.eq.f32.partialorder %v2843_v40, inf  ;;  %v583_v47 = vmul.f32 %v2941_v29, %v582_v31  ;;  %2292 = vrsqrt.f32 %v2914_v30 }
  0x7e   :  { %v515_v61 = vmul.f32 %v514_v26, %v2825_v45  ;;  %v527_v54 = vmul.f32 %v526_v62, %v2828_v18  ;;  %v539_v44 = vmul.f32 %v538_v5, %v2830_v37  ;;  %v594_v46 = vmul.f32 %v2963_v21, %v2891_v63  ;;  %v2975_v25 = vpop.eup %2286 }
  0x7f   :  { %v472_v11 = vsel %vm470_vm5, %v471_v60, %v469_v7  ;;  %v550_v41 = vmul.f32 %v2881_v10, %v549_v51  ;;  %vm564_vm3 = vcmp.eq.f32.partialorder %v2847_v42, inf  ;;  %v567_v26 = vand.u32 2147483648, %v2847_v42 }
  0x80   :  { %v2984_v31 = vpop.eup %2288  ;;  %v484_v62 = vsel %vm482_vm6, %v483_v20, %v481_v22  ;;  %vm554_vm4 = vcmp.eq.f32.partialorder %v2843_v40, 0.0  ;;  %v562_v5 = vmul.f32 %v2884_v43, %v561_v56  ;;  %v572_v3 = vmul.f32 0.5, %v571_v58 }
  0x81   :  { %v606_v16 = vmul.f32 %v2975_v25, %v2896_v55  ;;  %v493_v10 = vsel %vm492_vm7, %v2820_v0, %v491_v33  ;;  %v505_v60 = vsel %vm504_vm8, %v2822_v13, %v503_v15  ;;  %vm566_vm5 = vcmp.eq.f32.partialorder %v2847_v42, 0.0 }
  0x82   :  { %v584_v34 = vmul.f32 0.5, %v583_v47  ;;  %v618_v20 = vmul.f32 %v2984_v31, %v2902_v14  ;;  %v3003_v7 = vpop.eup %2290  ;;  %v517_v43 = vsel %vm516_vm9, %v2825_v45, %v515_v61  ;;  %v529_v51 = vsel %vm528_vm10, %v2828_v18, %v527_v54 }
  0x83   :  { %v541_v22 = vsel %vm540_vm11, %v2830_v37, %v539_v44  ;;  %v595_v56 = vmul.f32 %v2963_v21, %v594_v46  ;;  %v3015_v58 = vpop.eup %2292  ;;  %v551_v33 = vmul.f32 %v550_v41, %v2843_v40  ;;  %v607_v15 = vmul.f32 %v2975_v25, %v606_v16 }
  0x84   :  { %v619_v47 = vmul.f32 %v2984_v31, %v618_v20  ;;  %v630_v61 = vmul.f32 %v3003_v7, %v2906_v52  ;;  %v563_v28 = vmul.f32 %v562_v5, %v2847_v42  ;;  %v573_v54 = vsub.f32 1.5, %v572_v3 }
  0x85   :  { %v642_v6 = vmul.f32 %v3015_v58, %v2914_v30  ;;  %v3025_v44 = vadd.f32 1e-06, %v472_v11  ;;  %v496_v46 = vsel %vm494_vm12, %v495_v23, %v493_v10  ;;  %v5474_v41 = vand.u32 2147483648, %v2822_v13 }
  0x86   :  { %vm576_vm6 = vcmp.eq.f32.partialorder %v2879_v27, inf  ;;  %v585_v20 = vsub.f32 1.5, %v584_v34  ;;  %v631_v3 = vmul.f32 %v3003_v7, %v630_v61  ;;  %v5475_v5 = vand.u32 2147483648, %v2825_v45 }
  0x87   :  { %v508_v16 = vsel %vm506_vm13, %v5474_v41, %v505_v60  ;;  %v579_v9 = vand.u32 2147483648, %v2879_v27  ;;  %v596_v0 = vmul.f32 0.5, %v595_v56  ;;  %v643_v23 = vmul.f32 %v3015_v58, %v642_v6 }
  0x88   :  { %v3041_v11 = vsel %vm518_vm14, %v5475_v5, %v517_v43  ;;  %v5476_v10 = vand.u32 2147483648, %v2828_v18  ;;  %v5477_v60 = vand.u32 2147483648, %v2830_v37  ;;  %v608_v61 = vmul.f32 0.5, %v607_v15 }
  0x89   :  { %v620_v41 = vmul.f32 0.5, %v619_v47  ;;  %v553_v45 = vsel %vm552_vm2, %v2843_v40, %v551_v33  ;;  %v565_v6 = vsel %vm564_vm3, %v2847_v42, %v563_v28  ;;  %v574_v43 = vmul.f32 %v2920_v38, %v573_v54 }
  0x8a   :  { %v532_v13 = vsel %vm530_vm15, %v5476_v10, %v529_v51  ;;  %v544_v34 = vsel %vm542_vm1, %v5477_v60, %v541_v22  ;;  %vm578_vm7 = vcmp.eq.f32.partialorder %v2879_v27, 0.0  ;;  %2294 = vrcp.f32 %v3025_v44 }
  0x8b   :  { %v586_v18 = vmul.f32 %v2941_v29, %v585_v20  ;;  %v632_v37 = vmul.f32 0.5, %v631_v3  ;;  %v644_v51 = vmul.f32 0.5, %v643_v23  ;;  %v3063_v22 = vadd.f32 1e-06, %v484_v62 }
  0x8c   :  { %vm588_vm8 = vcmp.eq.f32.partialorder %v2887_v4, inf  ;;  %vm590_vm9 = vcmp.eq.f32.partialorder %v2887_v4, 0.0  ;;  %v591_v56 = vand.u32 2147483648, %v2887_v4  ;;  %v597_v33 = vsub.f32 1.5, %v596_v0 }
  0x8d   :  { %v5478_v28 = vand.u32 2147483648, %v2843_v40  ;;  %vm600_vm10 = vcmp.eq.f32.partialorder %v2891_v63, inf  ;;  %v609_v15 = vsub.f32 1.5, %v608_v61  ;;  %v621_v29 = vsub.f32 1.5, %v620_v41 }
  0x8e   :  { %v568_v62 = vsel %vm566_vm5, %v567_v26, %v565_v6  ;;  %v575_v47 = vmul.f32 %v574_v43, %v2879_v27  ;;  %v603_v54 = vand.u32 2147483648, %v2891_v63  ;;  %vm612_vm11 = vcmp.eq.f32.partialorder %v2896_v55, inf }
  0x8f   :  { %v556_v38 = vsel %vm554_vm4, %v5478_v28, %v553_v45  ;;  %v587_v20 = vmul.f32 %v586_v18, %v2887_v4  ;;  %v633_v3 = vsub.f32 1.5, %v632_v37  ;;  %v645_v5 = vsub.f32 1.5, %v644_v51 }
  0x90   :  { %2296 = vrcp.f32 %v3063_v22  ;;  %v3080_v40 = vpop.eup %2294  ;;  %v598_v0 = vmul.f32 %v2963_v21, %v597_v33  ;;  %vm602_vm12 = vcmp.eq.f32.partialorder %v2891_v63, 0.0  ;;  %v615_v42 = vand.u32 2147483648, %v2896_v55 }
  0x91   :  { %vm624_vm13 = vcmp.eq.f32.partialorder %v2902_v14, inf  ;;  %v3086_v26 = vadd.f32 1e-06, %v496_v46  ;;  %v610_v23 = vmul.f32 %v2975_v25, %v609_v15  ;;  %vm614_vm14 = vcmp.eq.f32.partialorder %v2896_v55, 0.0 }
  0x92   :  { %v622_v10 = vmul.f32 %v2984_v31, %v621_v29  ;;  %vm626_vm15 = vcmp.eq.f32.partialorder %v2902_v14, 0.0  ;;  %v627_v60 = vand.u32 2147483648, %v2902_v14  ;;  %v577_v21 = vsel %vm576_vm6, %v2879_v27, %v575_v47 }
  0x93   :  { %vm636_vm1 = vcmp.eq.f32.partialorder %v2906_v52, inf  ;;  %v639_v61 = vand.u32 2147483648, %v2906_v52  ;;  %v3098_v46 = vadd.f32 1e-06, %v508_v16  ;;  %v589_v25 = vsel %vm588_vm8, %v2887_v4, %v587_v20 }
  0x94   :  { %v634_v31 = vmul.f32 %v3003_v7, %v633_v3  ;;  %vm638_vm2 = vcmp.eq.f32.partialorder %v2906_v52, 0.0  ;;  %v646_v41 = vmul.f32 %v3015_v58, %v645_v5  ;;  %v670_v45 = vmul.f32 %v3080_v40, %v3025_v44 }
  0x95   :  { %v599_v6 = vmul.f32 %v598_v0, %v2891_v63  ;;  %vm648_vm3 = vcmp.eq.f32.partialorder %v2914_v30, inf  ;;  %vm650_vm4 = vcmp.eq.f32.partialorder %v2914_v30, 0.0  ;;  %2298 = vrcp.f32 %v3086_v26 }
  0x96   :  { %v3112_v16 = vpop.eup %2296  ;;  %v580_v7 = vsel %vm578_vm7, %v579_v9, %v577_v21  ;;  %v611_v43 = vmul.f32 %v610_v23, %v2896_v55  ;;  %v623_v58 = vmul.f32 %v622_v10, %v2902_v14  ;;  %v651_v18 = vand.u32 2147483648, %v2914_v30 }
  0x97   :  { %v592_v37 = vsel %vm590_vm9, %v591_v56, %v589_v25  ;;  %v3122_v51 = vadd.f32 1e-06, %v3041_v11  ;;  %v3124_v33 = vadd.f32 1e-06, %v532_v13  ;;  %v3126_v28 = vadd.f32 1e-06, %v544_v34 }
  0x98   :  { %v635_v15 = vmul.f32 %v634_v31, %v2906_v52  ;;  %v647_v9 = vmul.f32 %v646_v41, %v2914_v30  ;;  %v671_v27 = vsub.f32 1.0, %v670_v45  ;;  %2300 = vrcp.f32 %v3098_v46 }
  0x99   :  { %v601_v29 = vsel %vm600_vm10, %v2891_v63, %v599_v6  ;;  %v3134_v4 = vadd.f32 1e-06, %v556_v38  ;;  %v3136_v56 = vadd.f32 1e-06, %v568_v62  ;;  %v685_v11 = vmul.f32 %v3112_v16, %v3063_v22 }
  0x9a   :  { %v613_v13 = vsel %vm612_vm11, %v2896_v55, %v611_v43  ;;  %v625_v34 = vsel %vm624_vm13, %v2902_v14, %v623_v58  ;;  %v3146_v47 = vadd.f32 1e-06, %v580_v7  ;;  %v678_v20 = vand.u32 2147483647, %v3025_v44 }
  0x9b   :  { %v3149_v3 = vpop.eup %2298  ;;  %v3151_v38 = vadd.f32 1e-06, %v592_v37  ;;  %vm674_vm5 = vweird.f32 %v3025_v44  ;;  %v680_v62 = vand.u32 2147483648, %v3025_v44  ;;  %2302 = vrcp.f32 %v3122_v51 }
  0x9c   :  { %v604_v5 = vsel %vm602_vm12, %v603_v54, %v601_v29  ;;  %v637_v0 = vsel %vm636_vm1, %v2906_v52, %v635_v15  ;;  %v649_v23 = vsel %vm648_vm3, %v2914_v30, %v647_v9  ;;  %v672_v10 = vmul.f32 %v3080_v40, %v671_v27 }
  0x9d   :  { %v616_v21 = vsel %vm614_vm14, %v615_v42, %v613_v13  ;;  %v628_v25 = vsel %vm626_vm15, %v627_v60, %v625_v34  ;;  %v686_v31 = vsub.f32 1.0, %v685_v11  ;;  %2304 = vrcp.f32 %v3124_v33 }
  0x9e   :  { %v3170_v63 = vpop.eup %2300  ;;  %vm675_vm6 = vweird.f32 %v3080_v40  ;;  %vm3173_vm7 = vcmp.eq.f32.partialorder %v678_v20, 8.507059e+37  ;;  %v700_v41 = vmul.f32 %v3149_v3, %v3086_v26  ;;  %2306 = vrcp.f32 %v3126_v28 }
  0x9f   :  { %v640_v55 = vsel %vm638_vm2, %v639_v61, %v637_v0  ;;  %v652_v14 = vsel %vm650_vm4, %v651_v18, %v649_v23  ;;  %v693_v42 = vand.u32 2147483647, %v3063_v22  ;;  %v695_v60 = vand.u32 2147483648, %v3063_v22  ;;  %vm3197_vm8 = vmor %vm674_vm5, %vm675_vm6 }
  0xa0   :  { %v3186_v45 = vadd.f32 1e-06, %v604_v5  ;;  %v3188_v6 = vadd.f32 1e-06, %v616_v21  ;;  %v3190_v7 = vadd.f32 1e-06, %v628_v25  ;;  %v673_v43 = vadd.f32 %v3080_v40, %v672_v10 }
  0xa1   :  { %v3193_v58 = vpop.eup %2302  ;;  %v681_v30 = vor.u32 1.1754944e-38, %v680_v62  ;;  %v687_v61 = vmul.f32 %v3112_v16, %v686_v31  ;;  %vm689_vm9 = vweird.f32 %v3063_v22  ;;  %v715_v18 = vmul.f32 %v3170_v63, %v3098_v46 }
  0xa2   :  { %v3205_v37 = vadd.f32 1e-06, %v640_v55  ;;  %v3207_v15 = vadd.f32 1e-06, %v652_v14  ;;  %v701_v9 = vsub.f32 1.0, %v700_v41  ;;  %2308 = vrcp.f32 %v3134_v4 }
  0xa3   :  { %v3210_v44 = vpop.eup %2304  ;;  %vm690_vm10 = vweird.f32 %v3112_v16  ;;  %vm3213_vm11 = vcmp.eq.f32.partialorder %v693_v42, 8.507059e+37  ;;  %v696_v29 = vor.u32 1.1754944e-38, %v695_v60  ;;  %v708_v11 = vand.u32 2147483647, %v3086_v26 }
  0xa4   :  { %v3218_v13 = vpop.eup %2306  ;;  %v677_v34 = vsel %vm3197_vm8, %v3080_v40, %v673_v43  ;;  %vm704_vm12 = vweird.f32 %v3086_v26  ;;  %v710_v20 = vand.u32 2147483648, %v3086_v26  ;;  %v730_v62 = vmul.f32 %v3193_v58, %v3122_v51  ;;  %vm3232_vm13 = vmor %vm689_vm9, %vm690_vm10 }
  0xa5   :  { %v688_v5 = vadd.f32 %v3112_v16, %v687_v61  ;;  %v716_v0 = vsub.f32 1.0, %v715_v18  ;;  %v723_v23 = vand.u32 2147483647, %v3098_v46  ;;  %v725_v10 = vand.u32 2147483648, %v3098_v46 }
  0xa6   :  { %v702_v40 = vmul.f32 %v3149_v3, %v701_v9  ;;  %v740_v25 = vand.u32 2147483648, %v3122_v51  ;;  %v745_v31 = vmul.f32 %v3210_v44, %v3124_v33  ;;  %2310 = vrcp.f32 %v3136_v56 }
  0xa7   :  { %v3243_v41 = vsel %vm3173_vm7, %v681_v30, %v677_v34  ;;  %vm3245_vm14 = vcmp.eq.f32.partialorder %v708_v11, 8.507059e+37  ;;  %vm719_vm15 = vweird.f32 %v3098_v46  ;;  %v760_v22 = vmul.f32 %v3218_v13, %v3126_v28 }
  0xa8   :  { %v3252_v14 = vpop.eup %2308  ;;  %vm705_vm1 = vweird.f32 %v3149_v3  ;;  %v711_v42 = vor.u32 1.1754944e-38, %v710_v20  ;;  %v731_v60 = vsub.f32 1.0, %v730_v62  ;;  %vm734_vm2 = vweird.f32 %v3122_v51 }
  0xa9   :  { %v692_v54 = vsel %vm3232_vm13, %v3112_v16, %v688_v5  ;;  %v717_v43 = vmul.f32 %v3170_v63, %v716_v0  ;;  %vm3260_vm3 = vcmp.eq.f32.partialorder %v723_v23, 8.507059e+37  ;;  %v726_v30 = vor.u32 1.1754944e-38, %v725_v10  ;;  %vm3271_vm5 = vmor %vm704_vm12, %vm705_vm1 }
  0xaa   :  { %v738_v61 = vand.u32 2147483647, %v3122_v51  ;;  %v703_v18 = vadd.f32 %v3149_v3, %v702_v40  ;;  %v3266_v9 = vor.u32 1.1754944e-38, %v740_v25  ;;  %v746_v11 = vsub.f32 1.0, %v745_v31 }
  0xab   :  { %vm749_vm4 = vweird.f32 %v3124_v33  ;;  %vm720_vm6 = vweird.f32 %v3170_v63  ;;  %v753_v34 = vand.u32 2147483647, %v3124_v33  ;;  %v761_v20 = vsub.f32 1.0, %v760_v22 }
  0xac   :  { %v775_v62 = vmul.f32 %v3252_v14, %v3134_v4  ;;  %v3279_v5 = vpop.eup %2310  ;;  %v3283_v0 = vsel %vm3213_vm11, %v696_v29, %v692_v54  ;;  %v732_v26 = vmul.f32 %v3193_v58, %v731_v60  ;;  %v755_v23 = vand.u32 2147483648, %v3124_v33  ;;  %vm3303_vm9 = vmor %vm719_vm15, %vm720_vm6 }
  0xad   :  { %2312 = vrcp.f32 %v3146_v47  ;;  %v718_v10 = vadd.f32 %v3170_v63, %v717_v43  ;;  %vm735_vm7 = vweird.f32 %v3193_v58  ;;  %vm3290_vm8 = vcmp.eq.f32.partialorder %v738_v61, 8.507059e+37 }
  0xae   :  { %v768_v40 = vand.u32 2147483647, %v3126_v28  ;;  %2314 = vrcp.f32 %v3151_v38  ;;  %v707_v27 = vsel %vm3271_vm5, %v3149_v3, %v703_v18  ;;  %v747_v25 = vmul.f32 %v3210_v44, %v746_v11  ;;  %vm3328_vm13 = vmor %vm734_vm2, %vm735_vm7 }
  0xaf   :  { %v770_v31 = vand.u32 2147483648, %v3126_v28  ;;  %v783_v22 = vand.u32 2147483647, %v3134_v4  ;;  %vm3310_vm10 = vcmp.eq.f32.partialorder %v753_v34, 8.507059e+37  ;;  %v762_v3 = vmul.f32 %v3218_v13, %v761_v20 }
  0xb0   :  { %v776_v54 = vsub.f32 1.0, %v775_v62  ;;  %v790_v46 = vmul.f32 %v3279_v5, %v3136_v56  ;;  %2316 = vrcp.f32 %v3186_v45  ;;  %v733_v43 = vadd.f32 %v3193_v58, %v732_v26 }
  0xb1   :  { %vm750_vm11 = vweird.f32 %v3210_v44  ;;  %v756_v61 = vor.u32 1.1754944e-38, %v755_v23  ;;  %vm764_vm12 = vweird.f32 %v3126_v28  ;;  %v722_v18 = vsel %vm3303_vm9, %v3170_v63, %v718_v10 }
  0xb2   :  { %vm765_vm15 = vweird.f32 %v3218_v13  ;;  %vm3333_vm1 = vcmp.eq.f32.partialorder %v768_v40, 8.507059e+37  ;;  %vm779_vm5 = vweird.f32 %v3134_v4  ;;  %v3342_v63 = vsel %vm3245_vm14, %v711_v42, %v707_v27  ;;  %vm3350_vm2 = vmor %vm749_vm4, %vm750_vm11 }
  0xb3   :  { %v3338_v34 = vpop.eup %2312  ;;  %v748_v51 = vadd.f32 %v3210_v44, %v747_v25  ;;  %v771_v20 = vor.u32 1.1754944e-38, %v770_v31  ;;  %v785_v62 = vand.u32 2147483648, %v3134_v4  ;;  %v763_v10 = vadd.f32 %v3218_v13, %v762_v3  ;;  %vm3372_vm4 = vmor %vm764_vm12, %vm765_vm15 }
  0xb4   :  { %v3346_v26 = vpop.eup %2314  ;;  %v777_v40 = vmul.f32 %v3252_v14, %v776_v54  ;;  %vm3356_vm6 = vcmp.eq.f32.partialorder %v783_v22, 8.507059e+37  ;;  %v791_v42 = vsub.f32 1.0, %v790_v46  ;;  %vm794_vm14 = vweird.f32 %v3136_v56 }
  0xb5   :  { %v3363_v27 = vsel %vm3260_vm3, %v726_v30, %v722_v18  ;;  %v737_v33 = vsel %vm3328_vm13, %v3193_v58, %v733_v43  ;;  %v798_v25 = vand.u32 2147483647, %v3136_v56  ;;  %2318 = vrcp.f32 %v3188_v6 }
  0xb6   :  { %v3378_v31 = vpop.eup %2316  ;;  %vm780_vm3 = vweird.f32 %v3252_v14  ;;  %v800_v52 = vand.u32 2147483648, %v3136_v56  ;;  %v805_v58 = vmul.f32 %v3338_v34, %v3146_v47  ;;  %2320 = vrcp.f32 %v3190_v7 }
  0xb7   :  { %v752_v28 = vsel %vm3350_vm2, %v3210_v44, %v748_v51  ;;  %v786_v30 = vor.u32 1.1754944e-38, %v785_v62  ;;  %v815_v22 = vand.u32 2147483648, %v3146_v47  ;;  %v820_v3 = vmul.f32 %v3346_v26, %v3151_v38  ;;  %vm3405_vm7 = vmor %vm779_vm5, %vm780_vm3 }
  0xb8   :  { %v767_v54 = vsel %vm3372_vm4, %v3218_v13, %v763_v10  ;;  %v778_v46 = vadd.f32 %v3252_v14, %v777_v40  ;;  %v792_v43 = vmul.f32 %v3279_v5, %v791_v42  ;;  %v835_v18 = vmul.f32 %v3378_v31, %v3186_v45 }
  0xb9   :  { %v3401_v44 = vsel %vm3290_vm8, %v3266_v9, %v737_v33  ;;  %vm3409_vm9 = vcmp.eq.f32.partialorder %v798_v25, 8.507059e+37  ;;  %vm809_vm11 = vweird.f32 %v3146_v47  ;;  %2322 = vrcp.f32 %v3205_v37 }
  0xba   :  { %vm795_vm12 = vweird.f32 %v3279_v5  ;;  %v801_v51 = vor.u32 1.1754944e-38, %v800_v52  ;;  %v806_v21 = vsub.f32 1.0, %v805_v58  ;;  %v813_v9 = vand.u32 2147483647, %v3146_v47 }
  0xbb   :  { %v3417_v62 = vpop.eup %2318  ;;  %v3421_v4 = vsel %vm3310_vm10, %v756_v61, %v752_v28  ;;  %v3425_v23 = vsel %vm3333_vm1, %v771_v20, %v767_v54  ;;  %v3427_v10 = vor.u32 1.1754944e-38, %v815_v22  ;;  %v821_v40 = vsub.f32 1.0, %v820_v3  ;;  %vm3438_vm8 = vmor %vm794_vm14, %vm795_vm12 }
  0xbc   :  { %v3429_v42 = vpop.eup %2320  ;;  %v782_v33 = vsel %vm3405_vm7, %v3252_v14, %v778_v46  ;;  %v793_v29 = vadd.f32 %v3279_v5, %v792_v43  ;;  %v828_v25 = vand.u32 2147483647, %v3151_v38  ;;  %v836_v60 = vsub.f32 1.0, %v835_v18 }
  0xbd   :  { %vm824_vm10 = vweird.f32 %v3151_v38  ;;  %v830_v16 = vand.u32 2147483648, %v3151_v38  ;;  %v850_v20 = vmul.f32 %v3417_v62, %v3188_v6  ;;  %v865_v14 = vmul.f32 %v3429_v42, %v3190_v7  ;;  %v5568_v38 = vld [vmem:[#allocation6_spill] sm:$0xff] }
  0xbe   :  { %v807_v52 = vmul.f32 %v3338_v34, %v806_v21  ;;  %vm3449_vm13 = vcmp.eq.f32.partialorder %v813_v9, 8.507059e+37  ;;  %vm839_vm15 = vweird.f32 %v3186_v45  ;;  %v843_v56 = vand.u32 2147483647, %v3186_v45 }
  0xbf   :  { %2324 = vrcp.f32 %v3207_v15  ;;  %v3456_v28 = vpop.eup %2322  ;;  %v3460_v22 = vsel %vm3356_vm6, %v786_v30, %v782_v33  ;;  %vm810_vm1 = vweird.f32 %v3338_v34  ;;  %v822_v3 = vmul.f32 %v3346_v26, %v821_v40 }
  0xc0   :  { %v845_v54 = vand.u32 2147483648, %v3186_v45  ;;  %v797_v46 = vsel %vm3438_vm8, %v3279_v5, %v793_v29  ;;  %vm3468_vm5 = vcmp.eq.f32.partialorder %v828_v25, 8.507059e+37  ;;  %v837_v18 = vmul.f32 %v3378_v31, %v836_v60  ;;  %vm3492_vm4 = vmor %vm809_vm11, %vm810_vm1 }
  0xc1   :  { %v860_v55 = vand.u32 2147483648, %v3188_v6  ;;  %v880_v30 = vmul.f32 %v3456_v28, %v3205_v37  ;;  %vm825_vm2 = vweird.f32 %v3346_v26  ;;  %v851_v11 = vsub.f32 1.0, %v850_v20 }
  0xc2   :  { %v858_v21 = vand.u32 2147483647, %v3188_v6  ;;  %v866_v9 = vsub.f32 1.0, %v865_v14  ;;  %v808_v40 = vadd.f32 %v3338_v34, %v807_v52  ;;  %v831_v5 = vor.u32 1.1754944e-38, %v830_v16  ;;  %vm3502_vm7 = vmor %vm824_vm10, %vm825_vm2 }
  0xc3   :  { %vm840_vm6 = vweird.f32 %v3378_v31  ;;  %vm3480_vm14 = vcmp.eq.f32.partialorder %v843_v56, 8.507059e+37  ;;  %v3486_v29 = vsel %vm3409_vm9, %v801_v51, %v797_v46  ;;  %v823_v60 = vadd.f32 %v3346_v26, %v822_v3 }
  0xc4   :  { %v846_v61 = vor.u32 1.1754944e-38, %v845_v54  ;;  %vm854_vm3 = vweird.f32 %v3188_v6  ;;  %v838_v51 = vadd.f32 %v3378_v31, %v837_v18  ;;  %v861_v47 = vor.u32 1.1754944e-38, %v860_v55  ;;  %vm3510_vm11 = vmor %vm839_vm15, %vm840_vm6 }
  0xc5   :  { %v3498_v16 = vpop.eup %2324  ;;  %vm869_vm9 = vweird.f32 %v3190_v7  ;;  %v881_v20 = vsub.f32 1.0, %v880_v30  ;;  %v852_v52 = vmul.f32 %v3417_v62, %v851_v11  ;;  %vm3515_vm12 = vcmp.eq.f32.partialorder %v858_v21, 8.507059e+37 }
  0xc6   :  { %v867_v56 = vmul.f32 %v3429_v42, %v866_v9  ;;  %v873_v3 = vand.u32 2147483647, %v3190_v7  ;;  %v895_v54 = vmul.f32 %v3498_v16, %v3207_v15  ;;  %v812_v45 = vsel %vm3492_vm4, %v3338_v34, %v808_v40 }
  0xc7   :  { %vm855_vm8 = vweird.f32 %v3417_v62  ;;  %v875_v46 = vand.u32 2147483648, %v3190_v7  ;;  %vm884_vm10 = vweird.f32 %v3205_v37  ;;  %v827_v18 = vsel %vm3502_vm7, %v3346_v26, %v823_v60  ;;  %v5586_v7 = vld [vmem:[#allocation15_spill] sm:$0xff] }
  0xc8   :  { %vm870_vm15 = vweird.f32 %v3429_v42  ;;  %v888_v55 = vand.u32 2147483647, %v3205_v37  ;;  %v896_v30 = vsub.f32 1.0, %v895_v54  ;;  %v842_v11 = vsel %vm3510_vm11, %v3378_v31, %v838_v51  ;;  %vm3546_vm1 = vmor %vm854_vm3, %vm855_vm8  ;;  %v2259_v54 = vld [vmem:[%s5254_s1] ss:$0 sm:$0xff] }
  0xc9   :  { %v882_v34 = vmul.f32 %v3456_v28, %v881_v20  ;;  %v890_v21 = vand.u32 2147483648, %v3205_v37  ;;  %v903_v9 = vand.u32 2147483647, %v3207_v15  ;;  %v817_v40 = vsel %vm3449_vm13, %v3427_v10, %v812_v45  ;;  %vm3554_vm2 = vmor %vm869_vm9, %vm870_vm15  ;;  %v5582_v10 = vld [vmem:[#allocation13_spill] sm:$0xff] }
  0xca   :  { %v853_v26 = vadd.f32 %v3417_v62, %v852_v52  ;;  %v868_v31 = vadd.f32 %v3429_v42, %v867_v56  ;;  %v905_v60 = vand.u32 2147483648, %v3207_v15  ;;  %vm3558_vm6 = vcmp.eq.f32.partialorder %v873_v3, 8.507059e+37 }
  0xcb   :  { %v876_v58 = vor.u32 1.1754944e-38, %v875_v46  ;;  %vm885_vm13 = vweird.f32 %v3456_v28  ;;  %v897_v6 = vmul.f32 %v3498_v16, %v896_v30  ;;  %v832_v51 = vsel %vm3468_vm5, %v831_v5, %v827_v18 }
  0xcc   :  { %v847_v20 = vsel %vm3480_vm14, %v846_v61, %v842_v11  ;;  %vm3568_vm4 = vcmp.eq.f32.partialorder %v888_v55, 8.507059e+37  ;;  %vm899_vm3 = vweird.f32 %v3207_v15  ;;  %v883_v14 = vadd.f32 %v3456_v28, %v882_v34  ;;  %vm3587_vm5 = vmor %vm884_vm10, %vm885_vm13  ;;  %v5570_v55 = vld [vmem:[#allocation7_spill] sm:$0xff]  ;;  %v5574_v34 = vld [vmem:[#allocation9_spill] sm:$0xff] }
  0xcd   :  { %v891_v52 = vor.u32 1.1754944e-38, %v890_v21  ;;  %vm900_vm7 = vweird.f32 %v3498_v16  ;;  %vm3575_vm9 = vcmp.eq.f32.partialorder %v903_v9, 8.507059e+37  ;;  %v857_v43 = vsel %vm3546_vm1, %v3417_v62, %v853_v26  ;;  %v5576_v9 = vld [vmem:[#allocation10_spill] sm:$0xff]  ;;  %v5578_v26 = vld [vmem:[#allocation11_spill] sm:$0xff] }
  0xce   :  { %v872_v5 = vsel %vm3554_vm2, %v3429_v42, %v868_v31  ;;  %v906_v33 = vor.u32 1.1754944e-38, %v905_v60  ;;  %v3593_v61 = vmul.f32 %v3243_v41, %v2598_v50  ;;  %v898_v3 = vadd.f32 %v3498_v16, %v897_v6  ;;  %vm3604_vm14 = vmor %vm899_vm3, %vm900_vm7  ;;  %v5580_v60 = vld [vmem:[#allocation12_spill] sm:$0xff]  ;;  %v5584_v6 = vld [vmem:[#allocation14_spill] sm:$0xff] }
  0xcf   :  { %v3598_v62 = vmul.f32 %v3243_v41, %v2601_v57  ;;  %v3602_v42 = vmul.f32 %v3283_v0, %v2608_v49  ;;  %v974_v37 = vlaneseq  ;;  %v3610_v45 = vmul.f32 %v3283_v0, %v2611_v1 }
  0xd0   :  { %5541 = vst [vmem:[#allocation17_spill] sm:$0xff] %v3593_v61  ;;  %v3614_v50 = vmul.f32 %v3342_v63, %v2614_v2  ;;  %v3618_v57 = vmul.f32 %v3342_v63, %v2617_v12  ;;  %v3622_v49 = vmul.f32 %v3363_v27, %v2620_v48  ;;  %v862_v41 = vsel %vm3515_vm12, %v861_v47, %v857_v43 }
  0xd1   :  { %5542 = vst [vmem:[#allocation18_spill] sm:$0xff] %v3598_v62  ;;  %v877_v46 = vsel %vm3558_vm6, %v876_v58, %v872_v5  ;;  %v887_v1 = vsel %vm3587_vm5, %v3456_v28, %v883_v14  ;;  %v3633_v2 = vmul.f32 %v3363_v27, %v2623_v24  ;;  %v3637_v12 = vmul.f32 %v3401_v44, %v2656_v35  ;;  %v5562_v28 = vld [vmem:[#allocation3_spill] sm:$0xff] }
  0xd2   :  { %5543 = vst [vmem:[#allocation19_spill] sm:$0xff] %v3602_v42  ;;  %v3641_v48 = vmul.f32 %v3401_v44, %v2659_v8  ;;  %v3645_v0 = vmul.f32 %v3421_v4, %v2662_v36  ;;  %v3649_v63 = vmul.f32 %v3421_v4, %v2665_v59  ;;  %v902_v24 = vsel %vm3604_vm14, %v3498_v16, %v898_v3  ;;  %v5560_v4 = vld [vmem:[#allocation2_spill] sm:$0xff] }
  0xd3   :  { %5546 = vst [vmem:[#allocation20_spill] sm:$0xff] %v3610_v45  ;;  %v3656_v35 = vmul.f32 %v3425_v23, %v2668_v53  ;;  %v3660_v8 = vmul.f32 %v3425_v23, %v2671_v19  ;;  %v975_v27 = vshrl.u32 %v974_v37, 7  ;;  %v892_v36 = vsel %vm3568_vm4, %v891_v52, %v887_v1  ;;  %v52_v19 = vld [vmem:[%s5254_s1 + $0x1] sm:$0x1]  ;;  %v5588_v52 = vld [vmem:[#allocation16_spill] sm:$0xff] }
  0xd4   :  { %5547 = vst [vmem:[#allocation21_spill] sm:$0xff] %v3614_v50  ;;  %v3666_v59 = vmul.f32 %v3460_v22, %v2674_v32  ;;  %v3670_v44 = vmul.f32 %v3460_v22, %v2677_v39  ;;  %v3674_v53 = vmul.f32 %v3486_v29, %v2680_v17  ;;  %v3681_v23 = vmul.f32 %v3486_v29, %v5560_v4  ;;  %v5564_v32 = vld [vmem:[#allocation4_spill] sm:$0xff]  ;;  %v5566_v39 = vld [vmem:[#allocation5_spill] sm:$0xff] }
  0xd5   :  { %5548 = vst [vmem:[#allocation22_spill] sm:$0xff] %v3618_v57  ;;  %v3684_v16 = vmul.f32 %v817_v40, %v5562_v28  ;;  %v3687_v47 = vmul.f32 %v817_v40, %v5564_v32  ;;  %v3690_v22 = vmul.f32 %v832_v51, %v5566_v39  ;;  %v907_v17 = vsel %vm3575_vm9, %v906_v33, %v902_v24  ;;  %v5572_v29 = vld [vmem:[#allocation8_spill] sm:$0xff] }
  0xd6   :  { %5549 = vst [vmem:[#allocation23_spill] sm:$0xff] %v3622_v49  ;;  %v3695_v18 = vmul.f32 %v832_v51, %v5568_v38  ;;  %v3698_v30 = vmul.f32 %v847_v20, %v5570_v55  ;;  %v3701_v11 = vmul.f32 %v847_v20, %v5572_v29  ;;  %v3704_v21 = vmul.f32 %v862_v41, %v5574_v34 }
  0xd7   :  { %5550 = vst [vmem:[#allocation24_spill] sm:$0xff] %v3633_v2  ;;  %v3707_v40 = vmul.f32 %v862_v41, %v5576_v9  ;;  %v3710_v25 = vmul.f32 %v877_v46, %v5578_v26  ;;  %v976_v31 = vadd.s32 8, %v975_v27  ;;  %v3713_v13 = vmul.f32 %v877_v46, %v5580_v60 }
  0xd8   :  { %5551 = vst [vmem:[#allocation25_spill] sm:$0xff] %v3637_v12  ;;  %v3716_v58 = vmul.f32 %v892_v36, %v5582_v10  ;;  %v3719_v51 = vmul.f32 %v892_v36, %v5584_v6  ;;  %v979_v20 = vsub.f32 0.0, %v52_v19  ;;  %v3722_v14 = vmul.f32 %v907_v17, %v5586_v7 }
  0xd9   :  { %5552 = vst [vmem:[#allocation26_spill] sm:$0xff] %v3641_v48  ;;  %v3725_v56 = vmul.f32 %v907_v17, %v5588_v52  ;;  %v980_v43 = vsub.f32 1.0, %v52_v19  ;;  %v981_v5 = vsub.f32 2.0, %v52_v19  ;;  %v977_v15 = vcvt.s32.f32 %v975_v27 }
  0xda   :  { %5553 = vst [vmem:[#allocation27_spill] sm:$0xff] %v3645_v0  ;;  %v982_v33 = vsub.f32 3.0, %v52_v19  ;;  %v983_v3 = vsub.f32 4.0, %v52_v19  ;;  %v984_v37 = vsub.f32 5.0, %v52_v19  ;;  %v978_v41 = vcvt.s32.f32 %v976_v31 }
  0xdb   :  { %5554 = vst [vmem:[#allocation28_spill] sm:$0xff] %v3649_v63  ;;  %v985_v46 = vsub.f32 6.0, %v52_v19  ;;  %v986_v1 = vsub.f32 7.0, %v52_v19  ;;  %v987_v24 = vsub.f32 8.0, %v52_v19  ;;  %v988_v36 = vsub.f32 9.0, %v52_v19 }
  0xdc   :  { %5555 = vst [vmem:[#allocation29_spill] sm:$0xff] %v3656_v35  ;;  %v989_v4 = vsub.f32 10.0, %v52_v19  ;;  %v990_v28 = vsub.f32 11.0, %v52_v19  ;;  %v991_v32 = vsub.f32 12.0, %v52_v19  ;;  %v992_v39 = vsub.f32 13.0, %v52_v19 }
  0xdd   :  { %5556 = vst [vmem:[#allocation30_spill] sm:$0xff] %v3660_v8  ;;  %v993_v17 = vsub.f32 14.0, %v52_v19  ;;  %v994_v38 = vsub.f32 15.0, %v52_v19  ;;  %v995_v55 = vmul.f32 %v979_v20, %v979_v20  ;;  %v996_v27 = vmul.f32 %v980_v43, %v980_v43 }
  0xde   :  { %5557 = vst [vmem:[#allocation31_spill] sm:$0xff] %v3666_v59  ;;  %v997_v29 = vmul.f32 %v981_v5, %v981_v5  ;;  %v998_v34 = vmul.f32 %v982_v33, %v982_v33  ;;  %v1012_v9 = vsub.f32 %v977_v15, %v2259_v54  ;;  %v999_v26 = vmul.f32 %v983_v3, %v983_v3 }
  0xdf   :  { %5558 = vst [vmem:[#allocation32_spill] sm:$0xff] %v3670_v44  ;;  %v1000_v60 = vmul.f32 %v984_v37, %v984_v37  ;;  %v1001_v10 = vmul.f32 %v985_v46, %v985_v46  ;;  %v1013_v6 = vsub.f32 %v978_v41, %v2259_v54  ;;  %v1002_v31 = vmul.f32 %v986_v1, %v986_v1 }
  0xe0   :  { %5559 = vst [vmem:[#allocation33_spill] sm:$0xff] %v3674_v53  ;;  %v1003_v7 = vmul.f32 %v987_v24, %v987_v24  ;;  %v1004_v52 = vmul.f32 %v988_v36, %v988_v36  ;;  %v1016_v19 = vperm.slane %v995_v55, 0  ;;  %v1017_v20 = vperm.slane %v996_v27, 0 }
  0xe1   :  { %5561 = vst [vmem:[#allocation2_spill] sm:$0xff] %v3681_v23  ;;  %v1015_v43 = vmul.f32 %v1013_v6, %v1013_v6  ;;  %v1018_v5 = vperm.slane %v997_v29, 0  ;;  %v1019_v33 = vperm.slane %v998_v34, 0  ;;  %v1020_v15 = vperm.slane %v999_v26, 0 }
  0xe2   :  { %5563 = vst [vmem:[#allocation3_spill] sm:$0xff] %v3684_v16  ;;  %v1021_v3 = vperm.slane %v1000_v60, 0  ;;  %v1022_v37 = vperm.slane %v1001_v10, 0  ;;  %v1023_v46 = vperm.slane %v1002_v31, 0  ;;  %v1024_v54 = vperm.slane %v1003_v7, 0 }
  0xe3   :  { %5565 = vst [vmem:[#allocation4_spill] sm:$0xff] %v3687_v47  ;;  %v1025_v41 = vperm.slane %v1004_v52, 0  ;;  %v3736_v55 = vadd.f32 %v1017_v20, %v1015_v43  ;;  %v3740_v29 = vadd.f32 %v1018_v5, %v1015_v43 }
  0xe4   :  { %5567 = vst [vmem:[#allocation5_spill] sm:$0xff] %v3690_v22  ;;  %v3760_v60 = vadd.f32 %v1023_v46, %v1015_v43  ;;  %v3764_v6 = vadd.f32 %v1024_v54, %v1015_v43 }
  0xe5   :  { %5569 = vst [vmem:[#allocation6_spill] sm:$0xff] %v3695_v18  ;;  %v3768_v7 = vadd.f32 %v1025_v41, %v1015_v43  ;;  %vm5307_vm10 = vcmp.lt.f32.partialorder %v3736_v55, 64.0 }
  0xe6   :  { %5571 = vst [vmem:[#allocation7_spill] sm:$0xff] %v3698_v30 }
  0xe7   :  { %5573 = vst [vmem:[#allocation8_spill] sm:$0xff] %v3701_v11  ;;  %vm1083_vm1 = vcmp.lt.f32.partialorder %v3768_v7, 64.0 }
  0xe8   :  { %5575 = vst [vmem:[#allocation9_spill] sm:$0xff] %v3704_v21 }
  0xe9   :  { %5577 = vst [vmem:[#allocation10_spill] sm:$0xff] %v3707_v40  ;;  %v1014_v40 = vmul.f32 %v1012_v9, %v1012_v9  ;;  %v3756_v9 = vadd.f32 %v1022_v37, %v1015_v43 }
  0xea   :  { %5579 = vst [vmem:[#allocation11_spill] sm:$0xff] %v3710_v25  ;;  %v1010_v25 = vmul.f32 %v994_v38, %v994_v38 }
  0xeb   :  { %5581 = vst [vmem:[#allocation12_spill] sm:$0xff] %v3713_v13  ;;  %v1009_v13 = vmul.f32 %v993_v17, %v993_v17  ;;  %v3732_v17 = vadd.f32 %v1016_v19, %v1015_v43  ;;  %v3734_v38 = vadd.f32 %v1017_v20, %v1014_v40  ;;  %v3738_v27 = vadd.f32 %v1018_v5, %v1014_v40 }
  0xec   :  { %5583 = vst [vmem:[#allocation13_spill] sm:$0xff] %v3716_v58  ;;  %v1008_v58 = vmul.f32 %v992_v39, %v992_v39  ;;  %v3730_v39 = vadd.f32 %v1016_v19, %v1014_v40  ;;  %v3742_v34 = vadd.f32 %v1019_v33, %v1014_v40  ;;  %v3758_v26 = vadd.f32 %v1023_v46, %v1014_v40 }
  0xed   :  { %5585 = vst [vmem:[#allocation14_spill] sm:$0xff] %v3719_v51  ;;  %v1007_v51 = vmul.f32 %v991_v32, %v991_v32  ;;  %v1031_v32 = vperm.slane %v1010_v25, 0  ;;  %v3750_v25 = vadd.f32 %v1021_v3, %v1014_v40  ;;  %v3762_v10 = vadd.f32 %v1024_v54, %v1014_v40 }
  0xee   :  { %5587 = vst [vmem:[#allocation15_spill] sm:$0xff] %v3722_v14  ;;  %v1006_v14 = vmul.f32 %v990_v28, %v990_v28  ;;  %v1030_v28 = vperm.slane %v1009_v13, 0  ;;  %v3748_v13 = vadd.f32 %v1020_v15, %v1015_v43  ;;  %v3766_v31 = vadd.f32 %v1025_v41, %v1014_v40 }
  0xef   :  { %5589 = vst [vmem:[#allocation16_spill] sm:$0xff] %v3725_v56  ;;  %v1005_v56 = vmul.f32 %v989_v4, %v989_v4  ;;  %v1028_v36 = vperm.slane %v1007_v51, 0  ;;  %v1029_v4 = vperm.slane %v1008_v58, 0  ;;  %v3746_v51 = vadd.f32 %v1020_v15, %v1014_v40 }
  0xf0   :  { %v1027_v24 = vperm.slane %v1006_v14, 0  ;;  %5590 = vst [vmem:[#allocation34_spill] sm:$0xff] %v3748_v13  ;;  %v3752_v58 = vadd.f32 %v1021_v3, %v1015_v43  ;;  %v3754_v14 = vadd.f32 %v1022_v37, %v1014_v40  ;;  %v3786_v46 = vadd.f32 %v1030_v28, %v1014_v40 }
  0xf1   :  { %v1026_v1 = vperm.slane %v1005_v56, 0  ;;  %v3744_v56 = vadd.f32 %v1019_v33, %v1015_v43  ;;  %5592 = vst [vmem:[#allocation36_spill] sm:$0xff] %v3762_v10  ;;  %v3778_v33 = vadd.f32 %v1028_v36, %v1014_v40  ;;  %v3780_v15 = vadd.f32 %v1028_v36, %v1015_v43 }
  0xf2   :  { %5591 = vst [vmem:[#allocation35_spill] sm:$0xff] %v3752_v58  ;;  %v3774_v20 = vadd.f32 %v1027_v24, %v1014_v40  ;;  %v3776_v5 = vadd.f32 %v1027_v24, %v1015_v43  ;;  %v3782_v3 = vadd.f32 %v1029_v4, %v1014_v40  ;;  %v3784_v37 = vadd.f32 %v1029_v4, %v1015_v43 }
  0xf3   :  { %5593 = vst [vmem:[#allocation37_spill] sm:$0xff] %v3764_v6  ;;  %v3770_v52 = vadd.f32 %v1026_v1, %v1014_v40  ;;  %v3772_v19 = vadd.f32 %v1026_v1, %v1015_v43  ;;  %v3788_v54 = vadd.f32 %v1030_v28, %v1015_v43  ;;  %v3790_v41 = vadd.f32 %v1031_v32, %v1014_v40 }
  0xf4   :  { %5594 = vst [vmem:[#allocation38_spill] sm:$0xff] %v3766_v31  ;;  %v3792_v1 = vadd.f32 %v1031_v32, %v1015_v43  ;;  %vm5294_vm11 = vcmp.lt.f32.partialorder %v3730_v39, 64.0  ;;  %vm5306_vm12 = vcmp.lt.f32.partialorder %v3732_v17, 64.0  ;;  %vm5296_vm8 = vcmp.lt.f32.partialorder %v3734_v38, 64.0 }
  0xf5   :  { %5595 = vst [vmem:[#allocation39_spill] sm:$0xff] %v3768_v7  ;;  %vm5295_vm15 = vcmp.lt.f32.partialorder %v3738_v27, 64.0  ;;  %vm5299_vm2 = vcmp.lt.f32.partialorder %v3742_v34, 64.0  ;;  %vm1072_vm13 = vcmp.lt.f32.partialorder %v3746_v51, 64.0  ;;  %vm1074_vm3 = vcmp.lt.f32.partialorder %v3750_v25, 64.0 }
  0xf6   :  { %5596 = vst [vmem:[#allocation40_spill] sm:$0xff] %v3770_v52  ;;  %vm5326_vm7 = vcmp.lt.f32.partialorder %v3752_v58, 64.0  ;;  %vm5327_vm9 = vcmp.lt.f32.partialorder %v3754_v14, 64.0  ;;  %v1097_v40 = vsel %vm5294_vm11, %v3593_v61, 0.0  ;;  %v1099_v43 = vsel %vm5296_vm8, %v3602_v42, 0.0 }
  0xf7   :  { %5597 = vst [vmem:[#allocation41_spill] sm:$0xff] %v3772_v19  ;;  %v1101_v24 = vsel %vm5295_vm15, %v3614_v50, 0.0  ;;  %vm1082_vm14 = vcmp.lt.f32.partialorder %v3766_v31, 64.0  ;;  %vm1084_vm5 = vcmp.lt.f32.partialorder %v3770_v52, 64.0  ;;  %vm1085_vm11 = vcmp.lt.f32.partialorder %v3772_v19, 64.0 }
  0xf8   :  { %5598 = vst [vmem:[#allocation42_spill] sm:$0xff] %v3774_v20  ;;  %v1103_v36 = vsel %vm5299_vm2, %v3622_v49, 0.0  ;;  %v1129_v4 = vsel %vm5396_vm0, %v1097_v40, 0.0  ;;  %vm1088_vm15 = vcmp.lt.f32.partialorder %v3778_v33, 64.0  ;;  %v1098_v28 = vsel %vm5306_vm12, %v3598_v62, 0.0 }
  0xf9   :  { %5599 = vst [vmem:[#allocation43_spill] sm:$0xff] %v3776_v5  ;;  %v1130_v32 = vsel %vm5396_vm0, %v1099_v43, 0.0  ;;  %v1132_v50 = vsel %vm5396_vm0, %v1101_v24, 0.0  ;;  %v1100_v40 = vsel %vm5307_vm10, %v3610_v45, 0.0  ;;  %vm5608_vm2 = vcmp.lt.f32.partialorder %v3740_v29, 64.0 }
  0xfa   :  { %5600 = vst [vmem:[#allocation44_spill] sm:$0xff] %v3778_v33  ;;  %v1102_v49 = vsel %vm5608_vm2, %v3618_v57, 0.0  ;;  %v1105_v62 = vsel %vm1072_vm13, %v3637_v12, 0.0  ;;  %v1131_v42 = vadd.f32 %v1130_v32, %v1129_v4  ;;  %vm1092_vm12 = vcmp.lt.f32.partialorder %v3786_v46, 64.0 }
  0xfb   :  { %5601 = vst [vmem:[#allocation45_spill] sm:$0xff] %v3780_v15  ;;  %vm1093_vm8 = vcmp.lt.f32.partialorder %v3788_v54, 64.0  ;;  %vm5609_vm6 = vcmp.lt.f32.partialorder %v3744_v56, 64.0  ;;  %v1134_v24 = vsel %vm5396_vm0, %v1103_v36, 0.0  ;;  %vm1094_vm10 = vcmp.lt.f32.partialorder %v3790_v41, 64.0 }
  0xfc   :  { %5602 = vst [vmem:[#allocation46_spill] sm:$0xff] %v3782_v3  ;;  %v1104_v43 = vsel %vm5609_vm6, %v3633_v2, 0.0  ;;  %vm1095_vm4 = vcmp.lt.f32.partialorder %v3792_v1, 64.0  ;;  %vm5610_vm2 = vcmp.lt.f32.partialorder %v3748_v13, 64.0  ;;  %v1107_v4 = vsel %vm1074_vm3, %v3645_v0, 0.0 }
  0xfd   :  { %5603 = vst [vmem:[#allocation47_spill] sm:$0xff] %v3784_v37  ;;  %v1106_v57 = vsel %vm5610_vm2, %v3641_v48, 0.0  ;;  %v1108_v32 = vsel %vm5326_vm7, %v3649_v63, 0.0  ;;  %v1133_v45 = vadd.f32 %v1132_v50, %v1131_v42  ;;  %v1136_v2 = vsel %vm5396_vm0, %v1105_v62, 0.0 }
  0xfe   :  { %5604 = vst [vmem:[#allocation48_spill] sm:$0xff] %v3786_v46  ;;  %v1160_v36 = vsel %vm5396_vm0, %v1098_v28, 0.0  ;;  %v1161_v12 = vsel %vm5396_vm0, %v1100_v40, 0.0  ;;  %v1163_v61 = vsel %vm5396_vm0, %v1102_v49, 0.0  ;;  %v1109_v48 = vsel %vm5327_vm9, %v3656_v35, 0.0 }
  0xff   :  { %5605 = vst [vmem:[#allocation49_spill] sm:$0xff] %v3788_v54  ;;  %vm5611_vm6 = vcmp.lt.f32.partialorder %v3756_v9, 64.0  ;;  %v1135_v13 = vadd.f32 %v1134_v24, %v1133_v45  ;;  %v1162_v58 = vadd.f32 %v1161_v12, %v1160_v36  ;;  %vm5612_vm2 = vcmp.lt.f32.partialorder %v3758_v26, 64.0 }
 0x100   :  { %5606 = vst [vmem:[#allocation50_spill] sm:$0xff] %v3790_v41  ;;  %v1110_v0 = vsel %vm5611_vm6, %v3660_v8, 0.0  ;;  %v1111_v62 = vsel %vm5612_vm2, %v3666_v59, 0.0  ;;  %vm5613_vm7 = vcmp.lt.f32.partialorder %v3760_v60, 64.0  ;;  %v1138_v50 = vsel %vm5396_vm0, %v1107_v4, 0.0 }
 0x101   :  { %5607 = vst [vmem:[#allocation51_spill] sm:$0xff] %v3792_v1  ;;  %v1112_v42 = vsel %vm5613_vm7, %v3670_v44, 0.0  ;;  %v1165_v49 = vsel %vm5396_vm0, %v1104_v43, 0.0  ;;  %vm5614_vm9 = vcmp.lt.f32.partialorder %v3762_v10, 64.0  ;;  %vm5615_vm6 = vcmp.lt.f32.partialorder %v3764_v6, 64.0  ;;  %v5625_v44 = vld [vmem:[#allocation14_spill] sm:$0xff] }
 0x102   :  { %v1113_v28 = vsel %vm5614_vm9, %v3674_v53, 0.0  ;;  %v1114_v45 = vsel %vm5615_vm6, %v3681_v23, 0.0  ;;  %v1137_v12 = vadd.f32 %v1136_v2, %v1135_v13  ;;  %v1164_v40 = vadd.f32 %v1163_v61, %v1162_v58  ;;  %v5624_v23 = vld [vmem:[#allocation13_spill] sm:$0xff] }
 0x103   :  { %v1115_v24 = vsel %vm1082_vm14, %v3684_v16, 0.0  ;;  %v1116_v4 = vsel %vm1083_vm1, %v3687_v47, 0.0  ;;  %v1140_v43 = vsel %vm5396_vm0, %v1109_v48, 0.0  ;;  %v1167_v36 = vsel %vm5396_vm0, %v1106_v57, 0.0  ;;  %v5618_v16 = vld [vmem:[#allocation10_spill] sm:$0xff] }
 0x104   :  { %v1117_v53 = vsel %vm1084_vm5, %v3690_v22, 0.0  ;;  %v1118_v61 = vsel %vm1085_vm11, %v3695_v18, 0.0  ;;  %v1139_v2 = vadd.f32 %v1138_v50, %v1137_v12  ;;  %v1166_v13 = vadd.f32 %v1165_v49, %v1164_v40  ;;  %v5620_v40 = vld [vmem:[#allocation11_spill] sm:$0xff]  ;;  %v5622_v18 = vld [vmem:[#allocation12_spill] sm:$0xff] }
 0x105   :  { %vm5616_vm7 = vcmp.lt.f32.partialorder %v3774_v20, 64.0  ;;  %vm5617_vm9 = vcmp.lt.f32.partialorder %v3776_v5, 64.0  ;;  %v1142_v57 = vsel %vm5396_vm0, %v1111_v62, 0.0  ;;  %v1169_v47 = vsel %vm5396_vm0, %v1108_v32, 0.0 }
 0x106   :  { %v1119_v58 = vsel %vm5616_vm7, %v3698_v30, 0.0  ;;  %v1120_v48 = vsel %vm5617_vm9, %v3701_v11, 0.0  ;;  %v1121_v22 = vsel %vm1088_vm15, %v3704_v21, 0.0  ;;  %vm5619_vm2 = vcmp.lt.f32.partialorder %v3780_v15, 64.0 }
 0x107   :  { %v1122_v50 = vsel %vm5619_vm2, %v5618_v16, 0.0  ;;  %v1141_v49 = vadd.f32 %v1140_v43, %v1139_v2  ;;  %v1168_v12 = vadd.f32 %v1167_v36, %v1166_v13  ;;  %vm5621_vm6 = vcmp.lt.f32.partialorder %v3782_v3, 64.0  ;;  %v5626_v13 = vld [vmem:[#allocation15_spill] sm:$0xff]  ;;  %v5627_v16 = vld [vmem:[#allocation16_spill] sm:$0xff] }
 0x108   :  { %v1123_v30 = vsel %vm5621_vm6, %v5620_v40, 0.0  ;;  %vm5623_vm7 = vcmp.lt.f32.partialorder %v3784_v37, 64.0  ;;  %v1144_v32 = vsel %vm5396_vm0, %v1113_v28, 0.0  ;;  %v1171_v11 = vsel %vm5396_vm0, %v1110_v0, 0.0 }
 0x109   :  { %v1124_v62 = vsel %vm5623_vm7, %v5622_v18, 0.0  ;;  %v1125_v21 = vsel %vm1092_vm12, %v5624_v23, 0.0  ;;  %v1126_v43 = vsel %vm1093_vm8, %v5625_v44, 0.0  ;;  %v1143_v36 = vadd.f32 %v1142_v57, %v1141_v49 }
 0x10a   :  { %v1170_v2 = vadd.f32 %v1169_v47, %v1168_v12  ;;  %v1127_v40 = vsel %vm1094_vm10, %v5626_v13, 0.0  ;;  %v3938_v28 = vsel %vm1095_vm4, %v5627_v16, 0.0  ;;  %v1146_v0 = vsel %vm5396_vm0, %v1115_v24, 0.0 }
 0x10b   :  { %v1173_v18 = vsel %vm5396_vm0, %v1112_v42, 0.0  ;;  %v1145_v23 = vadd.f32 %v1144_v32, %v1143_v36  ;;  %v1148_v59 = vsel %vm5396_vm0, %v1117_v53, 0.0  ;;  %v1150_v44 = vsel %vm5396_vm0, %v1119_v58, 0.0 }
 0x10c   :  { %v1172_v57 = vadd.f32 %v1171_v11, %v1170_v2  ;;  %v1152_v47 = vsel %vm5396_vm0, %v1121_v22, 0.0  ;;  %v1154_v49 = vsel %vm5396_vm0, %v1123_v30, 0.0  ;;  %v1156_v12 = vsel %vm5396_vm0, %v1125_v21, 0.0 }
 0x10d   :  { %v1175_v13 = vsel %vm5396_vm0, %v1114_v45, 0.0  ;;  %v1147_v16 = vadd.f32 %v1146_v0, %v1145_v23  ;;  %v5628_v35 = vmov 0.0   ;;  %vm5629_vm9 = vcmp.lt.f32.partialorder %v3730_v39, 64.0 }
 0x10e   :  { %v1174_v8 = vadd.f32 %v1173_v18, %v1172_v57  ;;  %v1204_v42 = vsel %vm5629_vm9, 1.0, %v5628_v35  ;;  %vm5630_vm2 = vcmp.lt.f32.partialorder %v3734_v38, 64.0  ;;  %v1158_v11 = vsel %vm5396_vm0, %v1127_v40, 0.0 }
 0x10f   :  { %v1206_v53 = vsel %vm5630_vm2, 1.0, %v5628_v35  ;;  %v1177_v22 = vsel %vm5396_vm0, %v1116_v4, 0.0  ;;  %v1179_v30 = vsel %vm5396_vm0, %v1118_v61, 0.0  ;;  %vm5631_vm6 = vcmp.lt.f32.partialorder %v3738_v27, 64.0 }
 0x110   :  { %v1208_v21 = vsel %vm5631_vm6, 1.0, %v5628_v35  ;;  %v1149_v23 = vadd.f32 %v1148_v59, %v1147_v16  ;;  %v1176_v18 = vadd.f32 %v1175_v13, %v1174_v8  ;;  %v1181_v45 = vsel %vm5396_vm0, %v1120_v48, 0.0 }
 0x111   :  { %vm5632_vm7 = vcmp.lt.f32.partialorder %v3742_v34, 64.0  ;;  %v1183_v58 = vsel %vm5396_vm0, %v1122_v50, 0.0  ;;  %v1212_v4 = vsel %vm1072_vm13, 1.0, %v5628_v35  ;;  %v1236_v61 = vsel %vm5396_vm0, %v1204_v42, 0.0 }
 0x112   :  { %v1210_v24 = vsel %vm5632_vm7, 1.0, %v5628_v35  ;;  %v1237_v40 = vsel %vm5396_vm0, %v1206_v53, 0.0  ;;  %v1151_v32 = vadd.f32 %v1150_v44, %v1149_v23  ;;  %v1178_v36 = vadd.f32 %v1177_v22, %v1176_v18  ;;  %v5638_v23 = vld [vmem:[#allocation34_spill] sm:$0xff] }
 0x113   :  { %v1238_v59 = vadd.f32 %v1237_v40, %v1236_v61  ;;  %v1239_v8 = vsel %vm5396_vm0, %v1208_v21, 0.0  ;;  %v1185_v16 = vsel %vm5396_vm0, %v1124_v62, 0.0  ;;  %v1187_v48 = vsel %vm5396_vm0, %v1126_v43, 0.0 }
 0x114   :  { %vm5633_vm9 = vcmp.lt.f32.partialorder %v3732_v17, 64.0  ;;  %v1241_v2 = vsel %vm5396_vm0, %v1210_v24, 0.0  ;;  %v1153_v13 = vadd.f32 %v1152_v47, %v1151_v32  ;;  %v1180_v0 = vadd.f32 %v1179_v30, %v1178_v36 }
 0x115   :  { %v1205_v50 = vsel %vm5633_vm9, 1.0, %v5628_v35  ;;  %v1214_v44 = vsel %vm1074_vm3, 1.0, %v5628_v35  ;;  %v1240_v57 = vadd.f32 %v1239_v8, %v1238_v59  ;;  %vm5634_vm13 = vcmp.lt.f32.partialorder %v3736_v55, 64.0 }
 0x116   :  { %v1207_v42 = vsel %vm5634_vm13, 1.0, %v5628_v35  ;;  %vm5635_vm2 = vcmp.lt.f32.partialorder %v3740_v29, 64.0  ;;  %vm5636_vm6 = vcmp.lt.f32.partialorder %v3744_v56, 64.0  ;;  %v1243_v47 = vsel %vm5396_vm0, %v1212_v4, 0.0 }
 0x117   :  { %v1209_v62 = vsel %vm5635_vm2, 1.0, %v5628_v35  ;;  %v1211_v43 = vsel %vm5636_vm6, 1.0, %v5628_v35  ;;  %v1155_v53 = vadd.f32 %v1154_v49, %v1153_v13  ;;  %v1182_v22 = vadd.f32 %v1181_v45, %v1180_v0 }
 0x118   :  { %vm5637_vm3 = vcmp.lt.f32.partialorder %v3754_v14, 64.0  ;;  %v1242_v21 = vadd.f32 %v1241_v2, %v1240_v57  ;;  %vm5639_vm7 = vcmp.lt.f32.partialorder %v5638_v23, 64.0  ;;  %vm5640_vm9 = vcmp.lt.f32.partialorder %v3758_v26, 64.0 }
 0x119   :  { %v1216_v30 = vsel %vm5637_vm3, 1.0, %v5628_v35  ;;  %v1213_v18 = vsel %vm5639_vm7, 1.0, %v5628_v35  ;;  %v1218_v24 = vsel %vm5640_vm9, 1.0, %v5628_v35  ;;  %v1245_v61 = vsel %vm5396_vm0, %v1214_v44, 0.0 }
 0x11a   :  { %v1267_v40 = vsel %vm5396_vm0, %v1205_v50, 0.0  ;;  %v1157_v4 = vadd.f32 %v1156_v12, %v1155_v53  ;;  %v1184_v49 = vadd.f32 %v1183_v58, %v1182_v22  ;;  %v1244_v45 = vadd.f32 %v1243_v47, %v1242_v21  ;;  %v5642_v58 = vld [vmem:[#allocation35_spill] sm:$0xff] }
 0x11b   :  { %v1268_v32 = vsel %vm5396_vm0, %v1207_v42, 0.0  ;;  %vm5641_vm13 = vcmp.lt.f32.partialorder %v3762_v10, 64.0  ;;  %v1247_v59 = vsel %vm5396_vm0, %v1216_v30, 0.0  ;;  %v1270_v2 = vsel %vm5396_vm0, %v1209_v62, 0.0 }
 0x11c   :  { %v1220_v36 = vsel %vm5641_vm13, 1.0, %v5628_v35  ;;  %v1269_v8 = vadd.f32 %v1268_v32, %v1267_v40  ;;  %v1159_v13 = vadd.f32 %v1158_v11, %v1157_v4  ;;  %v1186_v0 = vadd.f32 %v1185_v16, %v1184_v49 }
 0x11d   :  { %v1246_v57 = vadd.f32 %v1245_v61, %v1244_v45  ;;  %v1272_v44 = vsel %vm5396_vm0, %v1211_v43, 0.0  ;;  %v1189_v12 = vsel %vm5396_vm0, %v3938_v28, 0.0  ;;  %vm5643_vm2 = vcmp.lt.f32.partialorder %v5642_v58, 64.0 }
 0x11e   :  { %v1215_v50 = vsel %vm5643_vm2, 1.0, %v5628_v35  ;;  %v1249_v42 = vsel %vm5396_vm0, %v1218_v24, 0.0  ;;  %v1271_v47 = vadd.f32 %v1270_v2, %v1269_v8  ;;  %v1188_v53 = vadd.f32 %v1187_v48, %v1186_v0 }
 0x11f   :  { %v1222_v62 = vsel %vm1082_vm14, 1.0, %v5628_v35  ;;  %v1248_v11 = vadd.f32 %v1247_v59, %v1246_v57  ;;  %v1274_v16 = vsel %vm5396_vm0, %v1213_v18, 0.0  ;;  %vm5644_vm6 = vcmp.lt.f32.partialorder %v3756_v9, 64.0 }
 0x120   :  { %v1217_v43 = vsel %vm5644_vm6, 1.0, %v5628_v35  ;;  %v1224_v28 = vsel %vm1084_vm5, 1.0, %v5628_v35  ;;  %v1251_v22 = vsel %vm5396_vm0, %v1220_v36, 0.0  ;;  %v1273_v30 = vadd.f32 %v1272_v44, %v1271_v47 }
 0x121   :  { %v1190_v21 = vadd.f32 %v1189_v12, %v1188_v53  ;;  %v1191_v48 = vsel %vm5396_vm0, %v1159_v13, 0.0  ;;  %v1250_v24 = vadd.f32 %v1249_v42, %v1248_v11  ;;  %v1276_v61 = vsel %vm5396_vm0, %v1215_v50, 0.0 }
 0x122   :  { %vm5645_vm14 = vcmp.lt.f32.partialorder %v3760_v60, 64.0  ;;  %v1253_v40 = vsel %vm5396_vm0, %v1222_v62, 0.0  ;;  %v1275_v4 = vadd.f32 %v1274_v16, %v1273_v30  ;;  %vm5646_vm5 = vcmp.lt.f32.partialorder %v3774_v20, 64.0 }
 0x123   :  { %v1219_v18 = vsel %vm5645_vm14, 1.0, %v5628_v35  ;;  %v1192_v49 = vsel %vm5396_vm0, %v1190_v21, 0.0  ;;  %v1226_v45 = vsel %vm5646_vm5, 1.0, %v5628_v35  ;;  %v1252_v32 = vadd.f32 %v1251_v22, %v1250_v24 }
 0x124   :  { %v1278_v36 = vsel %vm5396_vm0, %v1217_v43, 0.0  ;;  %v1193_v59 = vadd.f32 %v1192_v49, %v1191_v48  ;;  %vm5647_vm3 = vcmp.lt.f32.partialorder %v3764_v6, 64.0  ;;  %v1255_v2 = vsel %vm5396_vm0, %v1224_v28, 0.0 }
 0x125   :  { %v1221_v8 = vsel %vm5647_vm3, 1.0, %v5628_v35  ;;  %v1277_v13 = vadd.f32 %v1276_v61, %v1275_v4  ;;  %v1228_v0 = vsel %vm1088_vm15, 1.0, %v5628_v35  ;;  %v1254_v57 = vadd.f32 %v1253_v40, %v1252_v32 }
 0x126   :  { %v1280_v44 = vsel %vm5396_vm0, %v1219_v18, 0.0  ;;  %v1194_v12 = vrot.slane %v1193_v59, 4  ;;  %v1223_v50 = vsel %vm1083_vm1, 1.0, %v5628_v35  ;;  %v1257_v42 = vsel %vm5396_vm0, %v1226_v45, 0.0 }
 0x127   :  { %v1279_v47 = vadd.f32 %v1278_v36, %v1277_v13  ;;  %vm5648_vm7 = vcmp.lt.f32.partialorder %v3782_v3, 64.0  ;;  %v1256_v62 = vadd.f32 %v1255_v2, %v1254_v57  ;;  %v1282_v11 = vsel %vm5396_vm0, %v1221_v8, 0.0 }
 0x128   :  { %v1230_v53 = vsel %vm5648_vm7, 1.0, %v5628_v35  ;;  %v1195_v16 = vadd.f32 %v1194_v12, %v1193_v59  ;;  %v1225_v43 = vsel %vm1085_vm11, 1.0, %v5628_v35  ;;  %v1259_v28 = vsel %vm5396_vm0, %v1228_v0, 0.0 }
 0x129   :  { %v1281_v22 = vadd.f32 %v1280_v44, %v1279_v47  ;;  %vm5649_vm15 = vcmp.lt.f32.partialorder %v3776_v5, 64.0  ;;  %v1258_v21 = vadd.f32 %v1257_v42, %v1256_v62  ;;  %v1284_v48 = vsel %vm5396_vm0, %v1223_v50, 0.0  ;;  %v1096_v42 = vld [vmem:[%s5252_s2] sm:$0x1] }
 0x12a   :  { %v1227_v30 = vsel %vm5649_vm15, 1.0, %v5628_v35  ;;  %v1196_v24 = vrot.slane %v1195_v16, 2  ;;  %v1232_v61 = vsel %vm1092_vm12, 1.0, %v5628_v35  ;;  %v1261_v18 = vsel %vm5396_vm0, %v1230_v53, 0.0 }
 0x12b   :  { %v1283_v40 = vadd.f32 %v1282_v11, %v1281_v22  ;;  %v1260_v4 = vadd.f32 %v1259_v28, %v1258_v21  ;;  %v1286_v49 = vsel %vm5396_vm0, %v1225_v43, 0.0  ;;  %vm5650_vm11 = vcmp.lt.f32.partialorder %v3780_v15, 64.0 }
 0x12c   :  { %v1197_v45 = vadd.f32 %v1196_v24, %v1195_v16  ;;  %v1229_v32 = vsel %vm5650_vm11, 1.0, %v5628_v35  ;;  %vm5651_vm1 = vcmp.lt.f32.partialorder %v3784_v37, 64.0  ;;  %v1234_v8 = vsel %vm1094_vm10, 1.0, %v5628_v35 }
 0x12d   :  { %v1231_v36 = vsel %vm5651_vm1, 1.0, %v5628_v35  ;;  %v1285_v59 = vadd.f32 %v1284_v48, %v1283_v40  ;;  %v1262_v2 = vadd.f32 %v1261_v18, %v1260_v4  ;;  %v1263_v13 = vsel %vm5396_vm0, %v1232_v61, 0.0  ;;  %v5652_v18 = vld [vmem:[#allocation17_spill] sm:$0xff]  ;;  %v5653_v4 = vld [vmem:[#allocation19_spill] sm:$0xff] }
 0x12e   :  { %v1288_v0 = vsel %vm5396_vm0, %v1227_v30, 0.0  ;;  %v1198_v57 = vrot.slane %v1197_v45, 1  ;;  %v1233_v44 = vsel %vm1093_vm8, 1.0, %v5628_v35  ;;  %v1235_v12 = vsel %vm1095_vm4, 1.0, %v5628_v35 }
 0x12f   :  { %v1287_v50 = vadd.f32 %v1286_v49, %v1285_v59  ;;  %vm5354_vm12 = vcmask 57344   ;;  %v1290_v47 = vsel %vm5396_vm0, %v1229_v32, 0.0  ;;  %v1264_v62 = vadd.f32 %v1263_v13, %v1262_v2 }
 0x130   :  { %v1199_v53 = vadd.f32 %v1198_v57, %v1197_v45  ;;  %v1265_v11 = vsel %vm5396_vm0, %v1234_v8, 0.0  ;;  %v1292_v43 = vsel %vm5396_vm0, %v1231_v36, 0.0  ;;  %v1294_v28 = vsel %vm5396_vm0, %v1233_v44, 0.0  ;;  %v5654_v45 = vld [vmem:[#allocation21_spill] sm:$0xff]  ;;  %v5655_v8 = vld [vmem:[#allocation23_spill] sm:$0xff] }
 0x131   :  { %v1289_v16 = vadd.f32 %v1288_v0, %v1287_v50  ;;  %v1296_v22 = vsel %vm5396_vm0, %v1235_v12, 0.0  ;;  %vm5355_vm8 = vcmp.lt.f32.partialorder %v3730_v39, 16.0  ;;  %vm5359_vm10 = vcmp.lt.f32.partialorder %v3732_v17, 16.0  ;;  %v5656_v50 = vld [vmem:[#allocation18_spill] sm:$0xff] }
 0x132   :  { %v1200_v30 = vadd.f32 %v1199_v53, %v1096_v42  ;;  %vm5357_vm4 = vcmp.lt.f32.partialorder %v3734_v38, 16.0  ;;  %vm5367_vm9 = vcmp.lt.f32.partialorder %v3736_v55, 16.0  ;;  %vm5356_vm13 = vcmp.lt.f32.partialorder %v3738_v27, 16.0 }
 0x133   :  { %v1291_v21 = vadd.f32 %v1290_v47, %v1289_v16  ;;  %vm5358_vm6 = vcmp.lt.f32.partialorder %v3742_v34, 16.0  ;;  %v1266_v48 = vadd.f32 %v1265_v11, %v1264_v62  ;;  %vm5360_vm5 = vcmp.lt.f32.partialorder %v3746_v51, 16.0  ;;  %v5657_v47 = vld [vmem:[#allocation25_spill] sm:$0xff]  ;;  %v5658_v11 = vld [vmem:[#allocation20_spill] sm:$0xff] }
 0x134   :  { %1202 = vst.msk [vmem:[%s5252_s2] sm:$0x1] %vm5354_vm12, %v1200_v30  ;;  %vm5361_vm3 = vcmp.lt.f32.partialorder %v5638_v23, 16.0  ;;  %vm5362_vm7 = vcmp.lt.f32.partialorder %v3750_v25, 16.0  ;;  %vm5365_vm15 = vcmp.lt.f32.partialorder %v5642_v58, 16.0  ;;  %vm5366_vm11 = vcmp.lt.f32.partialorder %v3754_v14, 16.0 }
 0x135   :  { %v1293_v24 = vadd.f32 %v1292_v43, %v1291_v21  ;;  %v1342_v40 = vsel %vm5355_vm8, %v5652_v18, 0.0  ;;  %vm1325_vm14 = vcmp.lt.f32.partialorder %v3762_v10, 16.0  ;;  %v1344_v49 = vsel %vm5357_vm4, %v5653_v4, 0.0  ;;  %v5659_v43 = vld [vmem:[#allocation22_spill] sm:$0xff] }
 0x136   :  { %v1346_v32 = vsel %vm5356_vm13, %v5654_v45, 0.0  ;;  %v1298_v59 = vsel %vm5396_vm0, %v1266_v48, 0.0  ;;  %vm1326_vm2 = vcmp.lt.f32.partialorder %v3764_v6, 16.0  ;;  %vm1327_vm1 = vcmp.lt.f32.partialorder %v3766_v31, 16.0 }
 0x137   :  { %v1295_v61 = vadd.f32 %v1294_v28, %v1293_v24  ;;  %vm1329_vm12 = vcmp.lt.f32.partialorder %v3770_v52, 16.0  ;;  %v1348_v2 = vsel %vm5358_vm6, %v5655_v8, 0.0  ;;  %v1374_v13 = vsel %vm5396_vm0, %v1342_v40, 0.0  ;;  %v5663_v24 = vld [vmem:[#allocation26_spill] sm:$0xff]  ;;  %v5664_v40 = vld [vmem:[#allocation27_spill] sm:$0xff] }
 0x138   :  { %vm1330_vm13 = vcmp.lt.f32.partialorder %v3772_v19, 16.0  ;;  %v1375_v57 = vsel %vm5396_vm0, %v1344_v49, 0.0  ;;  %v1377_v44 = vsel %vm5396_vm0, %v1346_v32, 0.0  ;;  %v1343_v42 = vsel %vm5359_vm10, %v5656_v50, 0.0  ;;  %v5673_v8 = vld [vmem:[#allocation2_spill] sm:$0xff] }
 0x139   :  { %v1297_v36 = vadd.f32 %v1296_v22, %v1295_v61  ;;  %v1350_v53 = vsel %vm5360_vm5, %v5657_v47, 0.0  ;;  %v1376_v62 = vadd.f32 %v1375_v57, %v1374_v13  ;;  %vm1333_vm6 = vcmp.lt.f32.partialorder %v3778_v33, 16.0  ;;  %v5661_v22 = vld [vmem:[#allocation24_spill] sm:$0xff]  ;;  %v5666_v13 = vld [vmem:[#allocation30_spill] sm:$0xff] }
 0x13a   :  { %v1345_v16 = vsel %vm5367_vm9, %v5658_v11, 0.0  ;;  %vm5660_vm4 = vcmp.lt.f32.partialorder %v3740_v29, 16.0  ;;  %vm5662_vm8 = vcmp.lt.f32.partialorder %v3744_v56, 16.0  ;;  %v1379_v21 = vsel %vm5396_vm0, %v1348_v2, 0.0  ;;  %v5670_v47 = vld [vmem:[#allocation32_spill] sm:$0xff]  ;;  %v5684_v11 = vld [vmem:[#allocation10_spill] sm:$0xff] }
 0x13b   :  { %v1299_v0 = vsel %vm5396_vm0, %v1297_v36, 0.0  ;;  %v1347_v28 = vsel %vm5660_vm4, %v5659_v43, 0.0  ;;  %v1349_v30 = vsel %vm5662_vm8, %v5661_v22, 0.0  ;;  %vm1334_vm10 = vcmp.lt.f32.partialorder %v3780_v15, 16.0 }
 0x13c   :  { %v1300_v12 = vadd.f32 %v1299_v0, %v1298_v59  ;;  %vm1335_vm5 = vcmp.lt.f32.partialorder %v3782_v3, 16.0  ;;  %v1351_v61 = vsel %vm5361_vm3, %v5663_v24, 0.0  ;;  %v1352_v49 = vsel %vm5362_vm7, %v5664_v40, 0.0  ;;  %v5665_v59 = vld [vmem:[#allocation29_spill] sm:$0xff] }
 0x13d   :  { %v1378_v32 = vadd.f32 %v1377_v44, %v1376_v62  ;;  %vm1336_vm4 = vcmp.lt.f32.partialorder %v3784_v37, 16.0  ;;  %v1353_v36 = vsel %vm5365_vm15, %v3649_v63, 0.0  ;;  %v1354_v2 = vsel %vm5366_vm11, %v5665_v59, 0.0  ;;  %v5668_v59 = vld [vmem:[#allocation31_spill] sm:$0xff] }
 0x13e   :  { %v1301_v48 = vrot.slane %v1300_v12, 4  ;;  %vm5667_vm8 = vcmp.lt.f32.partialorder %v3756_v9, 16.0  ;;  %v1381_v57 = vsel %vm5396_vm0, %v1350_v53, 0.0  ;;  %vm1337_vm3 = vcmp.lt.f32.partialorder %v3786_v46, 16.0 }
 0x13f   :  { %v1355_v0 = vsel %vm5667_vm8, %v5666_v13, 0.0  ;;  %vm1339_vm7 = vcmp.lt.f32.partialorder %v3790_v41, 16.0  ;;  %v1380_v44 = vadd.f32 %v1379_v21, %v1378_v32  ;;  %v1405_v62 = vsel %vm5396_vm0, %v1343_v42, 0.0  ;;  %v5672_v32 = vld [vmem:[#allocation33_spill] sm:$0xff] }
 0x140   :  { %v1302_v24 = vadd.f32 %v1301_v48, %v1300_v12  ;;  %v1406_v63 = vsel %vm5396_vm0, %v1345_v16, 0.0  ;;  %vm5369_vm15 = vcmp.lt.f32.partialorder %v3788_v54, 16.0  ;;  %vm5368_vm11 = vcmp.lt.f32.partialorder %v3792_v1, 16.0 }
 0x141   :  { %vm5669_vm9 = vcmp.lt.f32.partialorder %v3758_v26, 16.0  ;;  %v1383_v53 = vsel %vm5396_vm0, %v1352_v49, 0.0  ;;  %v1407_v12 = vadd.f32 %v1406_v63, %v1405_v62  ;;  %v1408_v48 = vsel %vm5396_vm0, %v1347_v28, 0.0  ;;  %v5674_v62 = vld [vmem:[#allocation3_spill] sm:$0xff] }
 0x142   :  { %v1356_v13 = vsel %vm5669_vm9, %v5668_v59, 0.0  ;;  %v1303_v40 = vrot.slane %v1302_v24, 2  ;;  %vm5671_vm8 = vcmp.lt.f32.partialorder %v3760_v60, 16.0  ;;  %v1382_v21 = vadd.f32 %v1381_v57, %v1380_v44 }
 0x143   :  { %v1357_v42 = vsel %vm5671_vm8, %v5670_v47, 0.0  ;;  %v1410_v16 = vsel %vm5396_vm0, %v1349_v30, 0.0  ;;  %v1358_v22 = vsel %vm1325_vm14, %v5672_v32, 0.0  ;;  %v1359_v59 = vsel %vm1326_vm2, %v5673_v8, 0.0  ;;  %v5675_v30 = vld [vmem:[#allocation4_spill] sm:$0xff]  ;;  %v5677_v32 = vld [vmem:[#allocation5_spill] sm:$0xff] }
 0x144   :  { %v1385_v63 = vsel %vm5396_vm0, %v1354_v2, 0.0  ;;  %v1409_v49 = vadd.f32 %v1408_v48, %v1407_v12  ;;  %v1304_v28 = vadd.f32 %v1303_v40, %v1302_v24  ;;  %v1360_v43 = vsel %vm1327_vm1, %v5674_v62, 0.0  ;;  %v5678_v24 = vld [vmem:[#allocation6_spill] sm:$0xff] }
 0x145   :  { %v1384_v47 = vadd.f32 %v1383_v53, %v1382_v21  ;;  %v1412_v57 = vsel %vm5396_vm0, %v1351_v61, 0.0  ;;  %vm5676_vm9 = vcmp.lt.f32.partialorder %v3768_v7, 16.0  ;;  %v1362_v45 = vsel %vm1329_vm12, %v5677_v32, 0.0  ;;  %v1203_v61 = vld [vmem:[%s5252_s2 + $0x4] sm:$0x1]  ;;  %v5679_v21 = vld [vmem:[#allocation7_spill] sm:$0xff] }
 0x146   :  { %v1361_v44 = vsel %vm5676_vm9, %v5675_v30, 0.0  ;;  %v1387_v8 = vsel %vm5396_vm0, %v1356_v13, 0.0  ;;  %v1411_v2 = vadd.f32 %v1410_v16, %v1409_v49  ;;  %v1305_v12 = vrot.slane %v1304_v28, 1  ;;  %v5681_v32 = vld [vmem:[#allocation8_spill] sm:$0xff] }
 0x147   :  { %v1363_v40 = vsel %vm1330_vm13, %v5678_v24, 0.0  ;;  %v1386_v48 = vadd.f32 %v1385_v63, %v1384_v47  ;;  %v1414_v53 = vsel %vm5396_vm0, %v1353_v36, 0.0  ;;  %vm5680_vm8 = vcmp.lt.f32.partialorder %v3774_v20, 16.0  ;;  %v5683_v24 = vld [vmem:[#allocation9_spill] sm:$0xff] }
 0x148   :  { %v1364_v30 = vsel %vm5680_vm8, %v5679_v21, 0.0  ;;  %vm5682_vm9 = vcmp.lt.f32.partialorder %v3776_v5, 16.0  ;;  %v1389_v16 = vsel %vm5396_vm0, %v1358_v22, 0.0  ;;  %v1413_v49 = vadd.f32 %v1412_v57, %v1411_v2  ;;  %v5685_v21 = vld [vmem:[#allocation11_spill] sm:$0xff] }
 0x149   :  { %v1365_v13 = vsel %vm5682_vm9, %v5681_v32, 0.0  ;;  %v1306_v62 = vadd.f32 %v1305_v12, %v1304_v28  ;;  %v1366_v47 = vsel %vm1333_vm6, %v5683_v24, 0.0  ;;  %v1388_v36 = vadd.f32 %v1387_v8, %v1386_v48  ;;  %v5686_v28 = vld [vmem:[#allocation12_spill] sm:$0xff] }
 0x14a   :  { %v1416_v63 = vsel %vm5396_vm0, %v1355_v0, 0.0  ;;  %v1367_v4 = vsel %vm1334_vm10, %v5684_v11, 0.0  ;;  %v1368_v50 = vsel %vm1335_vm5, %v5685_v21, 0.0  ;;  %v1391_v32 = vsel %vm5396_vm0, %v1360_v43, 0.0  ;;  %v5687_v0 = vld [vmem:[#allocation13_spill] sm:$0xff]  ;;  %v5688_v11 = vld [vmem:[#allocation15_spill] sm:$0xff] }
 0x14b   :  { %v1415_v22 = vadd.f32 %v1414_v53, %v1413_v49  ;;  %v1307_v57 = vadd.f32 %v1306_v62, %v1203_v61  ;;  %v1369_v2 = vsel %vm1336_vm4, %v5686_v28, 0.0  ;;  %v1390_v12 = vadd.f32 %v1389_v16, %v1388_v36  ;;  %v5690_v62 = vld [vmem:[#allocation14_spill] sm:$0xff]  ;;  %v5691_v53 = vld [vmem:[#allocation16_spill] sm:$0xff] }
 0x14c   :  { %v1418_v8 = vsel %vm5396_vm0, %v1357_v42, 0.0  ;;  %v1370_v48 = vsel %vm1337_vm3, %v5687_v0, 0.0  ;;  %v1372_v24 = vsel %vm1339_vm7, %v5688_v11, 0.0  ;;  %v1393_v21 = vsel %vm5396_vm0, %v1362_v45, 0.0 }
 0x14d   :  { %v1417_v43 = vadd.f32 %v1416_v63, %v1415_v22  ;;  %vm5689_vm8 = vcmask 57344   ;;  %v1371_v42 = vsel %vm5369_vm15, %v5690_v62, 0.0  ;;  %v1373_v61 = vsel %vm5368_vm11, %v5691_v53, 0.0 }
 0x14e   :  { %1308 = vst.msk [vmem:[%s5252_s2 + $0x4] sm:$0x1] %vm5689_vm8, %v1307_v57  ;;  %v1392_v16 = vadd.f32 %v1391_v32, %v1390_v12  ;;  %v1420_v49 = vsel %vm5396_vm0, %v1359_v59, 0.0  ;;  %v1395_v36 = vsel %vm5396_vm0, %v1364_v30, 0.0  ;;  %v1397_v45 = vsel %vm5396_vm0, %v1366_v47, 0.0 }
 0x14f   :  { %v1399_v63 = vsel %vm5396_vm0, %v1368_v50, 0.0  ;;  %v1419_v22 = vadd.f32 %v1418_v8, %v1417_v43  ;;  %v1401_v57 = vsel %vm5396_vm0, %v1370_v48, 0.0  ;;  %v1403_v0 = vsel %vm5396_vm0, %v1372_v24, 0.0 }
 0x150   :  { %v1394_v11 = vadd.f32 %v1393_v21, %v1392_v16  ;;  %v1422_v62 = vsel %vm5396_vm0, %v1361_v44, 0.0  ;;  %vm5692_vm9 = vcmp.lt.f32.partialorder %v3730_v39, 16.0  ;;  %vm5693_vm8 = vcmp.lt.f32.partialorder %v3734_v38, 16.0 }
 0x151   :  { %v1421_v28 = vadd.f32 %v1420_v49, %v1419_v22  ;;  %v1448_v32 = vsel %vm5692_vm9, 1.0, %v5628_v35  ;;  %v1450_v59 = vsel %vm5693_vm8, 1.0, %v5628_v35  ;;  %vm5694_vm11 = vcmp.lt.f32.partialorder %v3738_v27, 16.0 }
 0x152   :  { %v1452_v50 = vsel %vm5694_vm11, 1.0, %v5628_v35  ;;  %v1396_v30 = vadd.f32 %v1395_v36, %v1394_v11  ;;  %v1424_v21 = vsel %vm5396_vm0, %v1363_v40, 0.0  ;;  %v1426_v24 = vsel %vm5396_vm0, %v1365_v13, 0.0 }
 0x153   :  { %v1428_v44 = vsel %vm5396_vm0, %v1367_v4, 0.0  ;;  %v1423_v47 = vadd.f32 %v1422_v62, %v1421_v28  ;;  %v1430_v12 = vsel %vm5396_vm0, %v1369_v2, 0.0  ;;  %v1432_v8 = vsel %vm5396_vm0, %v1371_v42, 0.0 }
 0x154   :  { %vm5695_vm9 = vcmp.lt.f32.partialorder %v3742_v34, 16.0  ;;  %v1398_v43 = vadd.f32 %v1397_v45, %v1396_v30  ;;  %v1480_v16 = vsel %vm5396_vm0, %v1448_v32, 0.0  ;;  %v1481_v11 = vsel %vm5396_vm0, %v1450_v59, 0.0 }
 0x155   :  { %v1454_v48 = vsel %vm5695_vm9, 1.0, %v5628_v35  ;;  %v1483_v40 = vsel %vm5396_vm0, %v1452_v50, 0.0  ;;  %v1425_v49 = vadd.f32 %v1424_v21, %v1423_v47  ;;  %v1434_v13 = vsel %vm5396_vm0, %v1373_v61, 0.0 }
 0x156   :  { %vm5696_vm11 = vcmp.lt.f32.partialorder %v3746_v51, 16.0  ;;  %v1482_v28 = vadd.f32 %v1481_v11, %v1480_v16  ;;  %v1400_v2 = vadd.f32 %v1399_v63, %v1398_v43  ;;  %vm5697_vm8 = vcmp.lt.f32.partialorder %v3732_v17, 16.0 }
 0x157   :  { %v1456_v4 = vsel %vm5696_vm11, 1.0, %v5628_v35  ;;  %v1449_v62 = vsel %vm5697_vm8, 1.0, %v5628_v35  ;;  %vm5698_vm9 = vcmp.lt.f32.partialorder %v3736_v55, 16.0  ;;  %v1485_v36 = vsel %vm5396_vm0, %v1454_v48, 0.0 }
 0x158   :  { %v1451_v42 = vsel %vm5698_vm9, 1.0, %v5628_v35  ;;  %v1427_v45 = vadd.f32 %v1426_v24, %v1425_v49  ;;  %vm5699_vm15 = vcmp.lt.f32.partialorder %v3740_v29, 16.0  ;;  %vm5700_vm11 = vcmp.lt.f32.partialorder %v3750_v25, 16.0 }
 0x159   :  { %v1453_v61 = vsel %vm5699_vm15, 1.0, %v5628_v35  ;;  %v1458_v22 = vsel %vm5700_vm11, 1.0, %v5628_v35  ;;  %v1484_v63 = vadd.f32 %v1483_v40, %v1482_v28  ;;  %v1402_v32 = vadd.f32 %v1401_v57, %v1400_v2 }
 0x15a   :  { %vm5701_vm8 = vcmp.lt.f32.partialorder %v3744_v56, 16.0  ;;  %vm5702_vm9 = vcmp.lt.f32.partialorder %v5638_v23, 16.0  ;;  %v1487_v30 = vsel %vm5396_vm0, %v1456_v4, 0.0  ;;  %v1429_v21 = vadd.f32 %v1428_v44, %v1427_v45 }
 0x15b   :  { %v1455_v59 = vsel %vm5701_vm8, 1.0, %v5628_v35  ;;  %v1457_v50 = vsel %vm5702_vm9, 1.0, %v5628_v35  ;;  %vm5703_vm15 = vcmp.lt.f32.partialorder %v3754_v14, 16.0  ;;  %vm5704_vm11 = vcmp.lt.f32.partialorder %v3758_v26, 16.0 }
 0x15c   :  { %v1460_v24 = vsel %vm5703_vm15, 1.0, %v5628_v35  ;;  %v1462_v47 = vsel %vm5704_vm11, 1.0, %v5628_v35  ;;  %v1486_v57 = vadd.f32 %v1485_v36, %v1484_v63  ;;  %v1404_v48 = vadd.f32 %v1403_v0, %v1402_v32 }
 0x15d   :  { %v1489_v43 = vsel %vm5396_vm0, %v1458_v22, 0.0  ;;  %v1511_v16 = vsel %vm5396_vm0, %v1449_v62, 0.0  ;;  %v1512_v11 = vsel %vm5396_vm0, %v1451_v42, 0.0  ;;  %v1431_v40 = vadd.f32 %v1430_v12, %v1429_v21 }
 0x15e   :  { %v1488_v49 = vadd.f32 %v1487_v30, %v1486_v57  ;;  %v1513_v4 = vadd.f32 %v1512_v11, %v1511_v16  ;;  %v1514_v44 = vsel %vm5396_vm0, %v1453_v61, 0.0  ;;  %vm5705_vm8 = vcmp.lt.f32.partialorder %v5642_v58, 16.0 }
 0x15f   :  { %v1459_v28 = vsel %vm5705_vm8, 1.0, %v5628_v35  ;;  %vm5706_vm9 = vcmp.lt.f32.partialorder %v3756_v9, 16.0  ;;  %v1491_v0 = vsel %vm5396_vm0, %v1460_v24, 0.0  ;;  %v1516_v36 = vsel %vm5396_vm0, %v1455_v59, 0.0 }
 0x160   :  { %v1461_v2 = vsel %vm5706_vm9, 1.0, %v5628_v35  ;;  %v1433_v62 = vadd.f32 %v1432_v8, %v1431_v40  ;;  %v1464_v12 = vsel %vm1325_vm14, 1.0, %v5628_v35  ;;  %v1490_v42 = vadd.f32 %v1489_v43, %v1488_v49 }
 0x161   :  { %v1515_v45 = vadd.f32 %v1514_v44, %v1513_v4  ;;  %vm5707_vm15 = vcmp.lt.f32.partialorder %v3760_v60, 16.0  ;;  %v1466_v22 = vsel %vm1327_vm1, 1.0, %v5628_v35  ;;  %v1493_v63 = vsel %vm5396_vm0, %v1462_v47, 0.0 }
 0x162   :  { %v1463_v61 = vsel %vm5707_vm15, 1.0, %v5628_v35  ;;  %v1518_v32 = vsel %vm5396_vm0, %v1457_v50, 0.0  ;;  %v1435_v59 = vadd.f32 %v1434_v13, %v1433_v62  ;;  %v1436_v8 = vsel %vm5396_vm0, %v1404_v48, 0.0 }
 0x163   :  { %v1492_v30 = vadd.f32 %v1491_v0, %v1490_v42  ;;  %v1517_v21 = vadd.f32 %v1516_v36, %v1515_v45  ;;  %v1465_v24 = vsel %vm1326_vm2, 1.0, %v5628_v35  ;;  %vm5708_vm14 = vcmp.lt.f32.partialorder %v3768_v7, 16.0 }
 0x164   :  { %v1467_v57 = vsel %vm5708_vm14, 1.0, %v5628_v35  ;;  %v1495_v43 = vsel %vm5396_vm0, %v1464_v12, 0.0  ;;  %v1520_v16 = vsel %vm5396_vm0, %v1459_v28, 0.0  ;;  %v1437_v47 = vsel %vm5396_vm0, %v1435_v59, 0.0 }
 0x165   :  { %v1468_v13 = vsel %vm1329_vm12, 1.0, %v5628_v35  ;;  %v1494_v50 = vadd.f32 %v1493_v63, %v1492_v30  ;;  %v1519_v48 = vadd.f32 %v1518_v32, %v1517_v21  ;;  %v1438_v11 = vadd.f32 %v1437_v47, %v1436_v8 }
 0x166   :  { %v1469_v40 = vsel %vm1330_vm13, 1.0, %v5628_v35  ;;  %v1497_v49 = vsel %vm5396_vm0, %v1466_v22, 0.0  ;;  %v1522_v4 = vsel %vm5396_vm0, %v1461_v2, 0.0  ;;  %vm5709_vm2 = vcmp.lt.f32.partialorder %v3774_v20, 16.0 }
 0x167   :  { %v1470_v44 = vsel %vm5709_vm2, 1.0, %v5628_v35  ;;  %vm5710_vm1 = vcmp.lt.f32.partialorder %v3776_v5, 16.0  ;;  %v1496_v0 = vadd.f32 %v1495_v43, %v1494_v50  ;;  %v1521_v36 = vadd.f32 %v1520_v16, %v1519_v48 }
 0x168   :  { %v1471_v28 = vsel %vm5710_vm1, 1.0, %v5628_v35  ;;  %v1439_v62 = vrot.slane %v1438_v11, 4  ;;  %v1472_v12 = vsel %vm1333_vm6, 1.0, %v5628_v35  ;;  %v1499_v42 = vsel %vm5396_vm0, %v1468_v13, 0.0 }
 0x169   :  { %v1524_v45 = vsel %vm5396_vm0, %v1463_v61, 0.0  ;;  %v1473_v2 = vsel %vm1334_vm10, 1.0, %v5628_v35  ;;  %v1474_v22 = vsel %vm1335_vm5, 1.0, %v5628_v35  ;;  %v1498_v63 = vadd.f32 %v1497_v49, %v1496_v0 }
 0x16a   :  { %v1523_v32 = vadd.f32 %v1522_v4, %v1521_v36  ;;  %v1440_v59 = vadd.f32 %v1439_v62, %v1438_v11  ;;  %v1475_v8 = vsel %vm1336_vm4, 1.0, %v5628_v35  ;;  %v1501_v30 = vsel %vm5396_vm0, %v1470_v44, 0.0 }
 0x16b   :  { %v1526_v21 = vsel %vm5396_vm0, %v1465_v24, 0.0  ;;  %v1476_v61 = vsel %vm1337_vm3, 1.0, %v5628_v35  ;;  %v1478_v43 = vsel %vm1339_vm7, 1.0, %v5628_v35  ;;  %v1500_v16 = vadd.f32 %v1499_v42, %v1498_v63 }
 0x16c   :  { %v1525_v47 = vadd.f32 %v1524_v45, %v1523_v32  ;;  %v1441_v13 = vrot.slane %v1440_v59, 2  ;;  %vm5711_vm12 = vcmp.lt.f32.partialorder %v3788_v54, 16.0  ;;  %v1503_v48 = vsel %vm5396_vm0, %v1472_v12, 0.0 }
 0x16d   :  { %v1477_v50 = vsel %vm5711_vm12, 1.0, %v5628_v35  ;;  %v1528_v11 = vsel %vm5396_vm0, %v1467_v57, 0.0  ;;  %vm5712_vm10 = vcmp.lt.f32.partialorder %v3792_v1, 16.0  ;;  %v1502_v49 = vadd.f32 %v1501_v30, %v1500_v16 }
 0x16e   :  { %v1479_v24 = vsel %vm5712_vm10, 1.0, %v5628_v35  ;;  %v1505_v4 = vsel %vm5396_vm0, %v1474_v22, 0.0  ;;  %v1527_v44 = vadd.f32 %v1526_v21, %v1525_v47  ;;  %v1442_v0 = vadd.f32 %v1441_v13, %v1440_v59  ;;  %v1341_v59 = vld [vmem:[%s5252_s2 + $0x1] sm:$0x1] }
 0x16f   :  { %v1507_v36 = vsel %vm5396_vm0, %v1476_v61, 0.0  ;;  %v1509_v62 = vsel %vm5396_vm0, %v1478_v43, 0.0  ;;  %v1530_v42 = vsel %vm5396_vm0, %v1469_v40, 0.0  ;;  %v1504_v45 = vadd.f32 %v1503_v48, %v1502_v49  ;;  %v5716_v49 = vld [vmem:[#allocation20_spill] sm:$0xff] }
 0x170   :  { %v1529_v63 = vadd.f32 %v1528_v11, %v1527_v44  ;;  %v1532_v12 = vsel %vm5396_vm0, %v1471_v28, 0.0  ;;  %v1534_v57 = vsel %vm5396_vm0, %v1473_v2, 0.0  ;;  %v1443_v32 = vrot.slane %v1442_v0, 1  ;;  %v5715_v11 = vld [vmem:[#allocation19_spill] sm:$0xff]  ;;  %v5717_v44 = vld [vmem:[#allocation21_spill] sm:$0xff] }
 0x171   :  { %v1536_v35 = vsel %vm5396_vm0, %v1475_v8, 0.0  ;;  %v1538_v30 = vsel %vm5396_vm0, %v1477_v50, 0.0  ;;  %v1540_v22 = vsel %vm5396_vm0, %v1479_v24, 0.0  ;;  %v1506_v21 = vadd.f32 %v1505_v4, %v1504_v45 }
 0x172   :  { %v1531_v61 = vadd.f32 %v1530_v42, %v1529_v63  ;;  %vm5374_vm13 = vcmp.lt.f32.partialorder %v3730_v39, 4.0  ;;  %vm5371_vm6 = vcmp.lt.f32.partialorder %v3732_v17, 4.0  ;;  %v1444_v40 = vadd.f32 %v1443_v32, %v1442_v0  ;;  %v5719_v63 = vld [vmem:[#allocation23_spill] sm:$0xff] }
 0x173   :  { %vm5372_vm5 = vcmp.lt.f32.partialorder %v3734_v38, 4.0  ;;  %vm5373_vm3 = vcmp.lt.f32.partialorder %v3736_v55, 4.0  ;;  %vm5375_vm7 = vcmp.lt.f32.partialorder %v3738_v27, 4.0  ;;  %v1508_v28 = vadd.f32 %v1507_v36, %v1506_v21  ;;  %v5718_v36 = vld [vmem:[#allocation22_spill] sm:$0xff] }
 0x174   :  { %v1533_v2 = vadd.f32 %v1532_v12, %v1531_v61  ;;  %vm5376_vm4 = vcmp.lt.f32.partialorder %v3740_v29, 4.0  ;;  %v1445_v8 = vadd.f32 %v1444_v40, %v1341_v59  ;;  %vm5713_vm12 = vcmask 57344   ;;  %v5725_v59 = vld [vmem:[#allocation26_spill] sm:$0xff]  ;;  %v5727_v61 = vld [vmem:[#allocation27_spill] sm:$0xff] }
 0x175   :  { %vm1568_vm9 = vcmp.lt.f32.partialorder %v3760_v60, 4.0  ;;  %vm1569_vm15 = vcmp.lt.f32.partialorder %v3762_v10, 4.0  ;;  %v1510_v16 = vadd.f32 %v1509_v62, %v1508_v28  ;;  %vm1570_vm14 = vcmp.lt.f32.partialorder %v3764_v6, 4.0 }
 0x176   :  { %v1535_v43 = vadd.f32 %v1534_v57, %v1533_v2  ;;  %1446 = vst.msk [vmem:[%s5252_s2 + $0x1] sm:$0x1] %vm5713_vm12, %v1445_v8  ;;  %vm1573_vm11 = vcmp.lt.f32.partialorder %v3770_v52, 4.0  ;;  %vm1574_vm12 = vcmp.lt.f32.partialorder %v3772_v19, 4.0  ;;  %vm1575_vm10 = vcmp.lt.f32.partialorder %v3774_v20, 4.0  ;;  %v5721_v57 = vld [vmem:[#allocation24_spill] sm:$0xff] }
 0x177   :  { %vm1576_vm8 = vcmp.lt.f32.partialorder %v3776_v5, 4.0  ;;  %v1586_v50 = vsel %vm5374_vm13, %v5652_v18, 0.0  ;;  %vm1577_vm2 = vcmp.lt.f32.partialorder %v3778_v33, 4.0  ;;  %v1588_v24 = vsel %vm5372_vm5, %v5715_v11, 0.0  ;;  %v5729_v8 = vld [vmem:[#allocation28_spill] sm:$0xff]  ;;  %v5745_v11 = vld [vmem:[#allocation6_spill] sm:$0xff] }
 0x178   :  { %v1537_v47 = vadd.f32 %v1536_v35, %v1535_v43  ;;  %v5714_v35 = vld [vmem:[#allocation18_spill] sm:$0xff]  ;;  %v1589_v4 = vsel %vm5373_vm3, %v5716_v49, 0.0  ;;  %v1590_v0 = vsel %vm5375_vm7, %v5717_v44, 0.0  ;;  %v1591_v62 = vsel %vm5376_vm4, %v5718_v36, 0.0  ;;  %v5742_v44 = vld [vmem:[#allocation4_spill] sm:$0xff]  ;;  %v5744_v49 = vld [vmem:[#allocation5_spill] sm:$0xff] }
 0x179   :  { %v1587_v48 = vsel %vm5371_vm6, %v5714_v35, 0.0  ;;  %v1542_v45 = vsel %vm5396_vm0, %v1510_v16, 0.0  ;;  %vm5720_vm5 = vcmp.lt.f32.partialorder %v3742_v34, 4.0  ;;  %vm5722_vm3 = vcmp.lt.f32.partialorder %v3744_v56, 4.0  ;;  %v5739_v36 = vld [vmem:[#allocation2_spill] sm:$0xff]  ;;  %v5747_v19 = vld [vmem:[#allocation8_spill] sm:$0xff] }
 0x17a   :  { %v1539_v13 = vadd.f32 %v1538_v30, %v1537_v47  ;;  %v1592_v12 = vsel %vm5720_vm5, %v5719_v63, 0.0  ;;  %v1593_v32 = vsel %vm5722_vm3, %v5721_v57, 0.0  ;;  %vm1580_vm13 = vcmp.lt.f32.partialorder %v3784_v37, 4.0  ;;  %v5723_v30 = vld [vmem:[#allocation25_spill] sm:$0xff]  ;;  %v5735_v57 = vld [vmem:[#allocation31_spill] sm:$0xff] }
 0x17b   :  { %vm1581_vm7 = vcmp.lt.f32.partialorder %v3786_v46, 4.0  ;;  %vm5724_vm4 = vcmp.lt.f32.partialorder %v3746_v51, 4.0  ;;  %vm5726_vm1 = vcmp.lt.f32.partialorder %v5638_v23, 4.0  ;;  %vm5728_vm6 = vcmp.lt.f32.partialorder %v3750_v25, 4.0 }
 0x17c   :  { %v1541_v42 = vadd.f32 %v1540_v22, %v1539_v13  ;;  %v1594_v22 = vsel %vm5724_vm4, %v5723_v30, 0.0  ;;  %v1595_v21 = vsel %vm5726_vm1, %v5725_v59, 0.0  ;;  %v1596_v40 = vsel %vm5728_vm6, %v5727_v61, 0.0  ;;  %v5731_v61 = vld [vmem:[#allocation29_spill] sm:$0xff] }
 0x17d   :  { %v1618_v28 = vsel %vm5396_vm0, %v1586_v50, 0.0  ;;  %vm5730_vm3 = vcmp.lt.f32.partialorder %v5642_v58, 4.0  ;;  %v1619_v16 = vsel %vm5396_vm0, %v1588_v24, 0.0  ;;  %v1621_v47 = vsel %vm5396_vm0, %v1590_v0, 0.0 }
 0x17e   :  { %v1543_v2 = vsel %vm5396_vm0, %v1541_v42, 0.0  ;;  %v1597_v43 = vsel %vm5730_vm3, %v5729_v8, 0.0  ;;  %vm5394_vm4 = vcmp.lt.f32.partialorder %v3790_v41, 4.0  ;;  %vm5393_vm1 = vcmp.lt.f32.partialorder %v3792_v1, 4.0  ;;  %v5733_v42 = vld [vmem:[#allocation30_spill] sm:$0xff]  ;;  %v5737_v8 = vld [vmem:[#allocation32_spill] sm:$0xff] }
 0x17f   :  { %v1544_v13 = vadd.f32 %v1543_v2, %v1542_v45  ;;  %vm5732_vm6 = vcmp.lt.f32.partialorder %v3754_v14, 4.0  ;;  %vm5734_vm5 = vcmp.lt.f32.partialorder %v3756_v9, 4.0  ;;  %v1620_v30 = vadd.f32 %v1619_v16, %v1618_v28  ;;  %v5738_v45 = vld [vmem:[#allocation33_spill] sm:$0xff]  ;;  %v5740_v28 = vld [vmem:[#allocation3_spill] sm:$0xff] }
 0x180   :  { %v1598_v50 = vsel %vm5732_vm6, %v5731_v61, 0.0  ;;  %v1599_v59 = vsel %vm5734_vm5, %v5733_v42, 0.0  ;;  %vm5736_vm3 = vcmp.lt.f32.partialorder %v3758_v26, 4.0  ;;  %v1601_v0 = vsel %vm1568_vm9, %v5737_v8, 0.0 }
 0x181   :  { %v1600_v24 = vsel %vm5736_vm3, %v5735_v57, 0.0  ;;  %v1602_v2 = vsel %vm1569_vm15, %v5738_v45, 0.0  ;;  %v1623_v63 = vsel %vm5396_vm0, %v1592_v12, 0.0  ;;  %v1545_v61 = vrot.slane %v1544_v13, 4 }
 0x182   :  { %v1603_v42 = vsel %vm1570_vm14, %v5739_v36, 0.0  ;;  %vm5741_vm5 = vcmp.lt.f32.partialorder %v3766_v31, 4.0  ;;  %v1622_v57 = vadd.f32 %v1621_v47, %v1620_v30  ;;  %vm5743_vm6 = vcmp.lt.f32.partialorder %v3768_v7, 4.0  ;;  %v5746_v47 = vld [vmem:[#allocation7_spill] sm:$0xff] }
 0x183   :  { %v1604_v16 = vsel %vm5741_vm5, %v5740_v28, 0.0  ;;  %v1605_v8 = vsel %vm5743_vm6, %v5742_v44, 0.0  ;;  %v1606_v45 = vsel %vm1573_vm11, %v5744_v49, 0.0  ;;  %v1607_v12 = vsel %vm1574_vm12, %v5745_v11, 0.0 }
 0x184   :  { %v1625_v35 = vsel %vm5396_vm0, %v1594_v22, 0.0  ;;  %v1546_v36 = vadd.f32 %v1545_v61, %v1544_v13  ;;  %v1624_v18 = vadd.f32 %v1623_v63, %v1622_v57  ;;  %v1649_v31 = vsel %vm5396_vm0, %v1587_v48, 0.0  ;;  %v5748_v48 = vld [vmem:[#allocation9_spill] sm:$0xff]  ;;  %v5749_v57 = vld [vmem:[#allocation10_spill] sm:$0xff] }
 0x185   :  { %v1650_v30 = vsel %vm5396_vm0, %v1589_v4, 0.0  ;;  %v1608_v44 = vsel %vm1575_vm10, %v5746_v47, 0.0  ;;  %v1627_v28 = vsel %vm5396_vm0, %v1596_v40, 0.0  ;;  %v1652_v49 = vsel %vm5396_vm0, %v1591_v62, 0.0 }
 0x186   :  { %v1651_v52 = vadd.f32 %v1650_v30, %v1649_v31  ;;  %v1547_v7 = vrot.slane %v1546_v36, 2  ;;  %v1609_v22 = vsel %vm1576_vm8, %v5747_v19, 0.0  ;;  %v1626_v61 = vadd.f32 %v1625_v35, %v1624_v18  ;;  %v5751_v30 = vld [vmem:[#allocation11_spill] sm:$0xff]  ;;  %v5753_v35 = vld [vmem:[#allocation12_spill] sm:$0xff] }
 0x187   :  { %v1654_v63 = vsel %vm5396_vm0, %v1593_v32, 0.0  ;;  %v1610_v4 = vsel %vm1577_vm2, %v5748_v48, 0.0  ;;  %vm5750_vm3 = vcmp.lt.f32.partialorder %v3780_v15, 4.0  ;;  %v1629_v31 = vsel %vm5396_vm0, %v1598_v50, 0.0  ;;  %v5754_v48 = vld [vmem:[#allocation13_spill] sm:$0xff] }
 0x188   :  { %v1611_v13 = vsel %vm5750_vm3, %v5749_v57, 0.0  ;;  %v1653_v40 = vadd.f32 %v1652_v49, %v1651_v52  ;;  %v1548_v62 = vadd.f32 %v1547_v7, %v1546_v36  ;;  %vm5752_vm5 = vcmp.lt.f32.partialorder %v3782_v3, 4.0  ;;  %v5755_v7 = vld [vmem:[#allocation14_spill] sm:$0xff] }
 0x189   :  { %v1612_v47 = vsel %vm5752_vm5, %v5751_v30, 0.0  ;;  %v1628_v19 = vadd.f32 %v1627_v28, %v1626_v61  ;;  %v1656_v18 = vsel %vm5396_vm0, %v1595_v21, 0.0  ;;  %v1613_v32 = vsel %vm1580_vm13, %v5753_v35, 0.0  ;;  %v1447_v21 = vld [vmem:[%s5252_s2 + $0x5] sm:$0x1]  ;;  %v5757_v61 = vld [vmem:[#allocation15_spill] sm:$0xff] }
 0x18a   :  { %v1614_v11 = vsel %vm1581_vm7, %v5754_v48, 0.0  ;;  %v1631_v57 = vsel %vm5396_vm0, %v1600_v24, 0.0  ;;  %v1655_v50 = vadd.f32 %v1654_v63, %v1653_v40  ;;  %v1549_v52 = vrot.slane %v1548_v62, 1 }
 0x18b   :  { %vm5756_vm6 = vcmp.lt.f32.partialorder %v3788_v54, 4.0  ;;  %v1630_v36 = vadd.f32 %v1629_v31, %v1628_v19  ;;  %v1658_v28 = vsel %vm5396_vm0, %v1597_v43, 0.0  ;;  %v1616_v35 = vsel %vm5394_vm4, %v5757_v61, 0.0 }
 0x18c   :  { %v1615_v49 = vsel %vm5756_vm6, %v5755_v7, 0.0  ;;  %v1617_v24 = vsel %vm5393_vm1, %v5691_v53, 0.0  ;;  %v1633_v63 = vsel %vm5396_vm0, %v1602_v2, 0.0  ;;  %v1657_v40 = vadd.f32 %v1656_v18, %v1655_v50 }
 0x18d   :  { %v1550_v48 = vadd.f32 %v1549_v52, %v1548_v62  ;;  %v1632_v7 = vadd.f32 %v1631_v57, %v1630_v36  ;;  %v1635_v19 = vsel %vm5396_vm0, %v1604_v16, 0.0  ;;  %v1660_v43 = vsel %vm5396_vm0, %v1599_v59, 0.0 }
 0x18e   :  { %v1637_v31 = vsel %vm5396_vm0, %v1606_v45, 0.0  ;;  %v1639_v30 = vsel %vm5396_vm0, %v1608_v44, 0.0  ;;  %v1641_v41 = vsel %vm5396_vm0, %v1610_v4, 0.0  ;;  %v1659_v61 = vadd.f32 %v1658_v28, %v1657_v40 }
 0x18f   :  { %v1551_v54 = vadd.f32 %v1550_v48, %v1447_v21  ;;  %v1634_v46 = vadd.f32 %v1633_v63, %v1632_v7  ;;  %v1643_v53 = vsel %vm5396_vm0, %v1612_v47, 0.0  ;;  %v1662_v2 = vsel %vm5396_vm0, %v1601_v0, 0.0 }
 0x190   :  { %v1645_v62 = vsel %vm5396_vm0, %v1614_v11, 0.0  ;;  %v1647_v57 = vsel %vm5396_vm0, %v1616_v35, 0.0  ;;  %v1661_v16 = vadd.f32 %v1660_v43, %v1659_v61  ;;  %v1664_v59 = vsel %vm5396_vm0, %v1603_v42, 0.0 }
 0x191   :  { %vm5758_vm3 = vcmask 57344   ;;  %v1636_v44 = vadd.f32 %v1635_v19, %v1634_v46  ;;  %v1666_v45 = vsel %vm5396_vm0, %v1605_v8, 0.0  ;;  %v1668_v48 = vsel %vm5396_vm0, %v1607_v12, 0.0 }
 0x192   :  { %1552 = vst.msk [vmem:[%s5252_s2 + $0x5] sm:$0x1] %vm5758_vm3, %v1551_v54  ;;  %v1670_v47 = vsel %vm5396_vm0, %v1609_v22, 0.0  ;;  %v1663_v0 = vadd.f32 %v1662_v2, %v1661_v16  ;;  %v1672_v11 = vsel %vm5396_vm0, %v1611_v13, 0.0  ;;  %v1674_v4 = vsel %vm5396_vm0, %v1613_v32, 0.0 }
 0x193   :  { %v1676_v18 = vsel %vm5396_vm0, %v1615_v49, 0.0  ;;  %v1638_v42 = vadd.f32 %v1637_v31, %v1636_v44  ;;  %v1678_v35 = vsel %vm5396_vm0, %v1617_v24, 0.0  ;;  %v5759_v50 = vmov 0.0  }
 0x194   :  { %vm5760_vm5 = vcmp.lt.f32.partialorder %v3730_v39, 4.0  ;;  %vm5761_vm6 = vcmp.lt.f32.partialorder %v3732_v17, 4.0  ;;  %v1665_v8 = vadd.f32 %v1664_v59, %v1663_v0  ;;  %vm5762_vm3 = vcmp.lt.f32.partialorder %v3734_v38, 4.0 }
 0x195   :  { %v1692_v46 = vsel %vm5760_vm5, 1.0, %v5759_v50  ;;  %v1693_v54 = vsel %vm5761_vm6, 1.0, %v5759_v50  ;;  %v1694_v12 = vsel %vm5762_vm3, 1.0, %v5759_v50  ;;  %vm5763_vm1 = vcmp.lt.f32.partialorder %v3736_v55, 4.0 }
 0x196   :  { %v1695_v22 = vsel %vm5763_vm1, 1.0, %v5759_v50  ;;  %vm5764_vm4 = vcmp.lt.f32.partialorder %v3738_v27, 4.0  ;;  %v1640_v32 = vadd.f32 %v1639_v30, %v1638_v42  ;;  %vm5765_vm5 = vcmp.lt.f32.partialorder %v3740_v29, 4.0 }
 0x197   :  { %v1696_v13 = vsel %vm5764_vm4, 1.0, %v5759_v50  ;;  %v1697_v52 = vsel %vm5765_vm5, 1.0, %v5759_v50  ;;  %vm5766_vm6 = vcmp.lt.f32.partialorder %v3742_v34, 4.0  ;;  %vm5767_vm3 = vcmp.lt.f32.partialorder %v3744_v56, 4.0 }
 0x198   :  { %v1698_v7 = vsel %vm5766_vm6, 1.0, %v5759_v50  ;;  %v1699_v49 = vsel %vm5767_vm3, 1.0, %v5759_v50  ;;  %v1667_v36 = vadd.f32 %v1666_v45, %v1665_v8  ;;  %vm5768_vm1 = vcmp.lt.f32.partialorder %v3746_v51, 4.0  ;;  %v5775_v8 = vld [vmem:[#allocation38_spill] sm:$0xff] }
 0x199   :  { %v1700_v28 = vsel %vm5768_vm1, 1.0, %v5759_v50  ;;  %vm5769_vm4 = vcmp.lt.f32.partialorder %v5638_v23, 4.0  ;;  %vm5770_vm5 = vcmp.lt.f32.partialorder %v3750_v25, 4.0  ;;  %v1642_v61 = vadd.f32 %v1641_v41, %v1640_v32  ;;  %v5777_v32 = vld [vmem:[#allocation39_spill] sm:$0xff] }
 0x19a   :  { %v1701_v30 = vsel %vm5769_vm4, 1.0, %v5759_v50  ;;  %v1702_v21 = vsel %vm5770_vm5, 1.0, %v5759_v50  ;;  %v1724_v24 = vsel %vm5396_vm0, %v1692_v46, 0.0  ;;  %v1725_v63 = vsel %vm5396_vm0, %v1694_v12, 0.0 }
 0x19b   :  { %v1727_v40 = vsel %vm5396_vm0, %v1696_v13, 0.0  ;;  %v1669_v19 = vadd.f32 %v1668_v48, %v1667_v36  ;;  %vm5771_vm6 = vcmp.lt.f32.partialorder %v5642_v58, 4.0  ;;  %vm5772_vm3 = vcmp.lt.f32.partialorder %v3754_v14, 4.0  ;;  %v5779_v36 = vld [vmem:[#allocation40_spill] sm:$0xff] }
 0x19c   :  { %v1703_v43 = vsel %vm5771_vm6, 1.0, %v5759_v50  ;;  %v1704_v31 = vsel %vm5772_vm3, 1.0, %v5759_v50  ;;  %v1726_v2 = vadd.f32 %v1725_v63, %v1724_v24  ;;  %v1644_v16 = vadd.f32 %v1643_v53, %v1642_v61 }
 0x19d   :  { %vm5773_vm1 = vcmp.lt.f32.partialorder %v3756_v9, 4.0  ;;  %vm5774_vm4 = vcmp.lt.f32.partialorder %v3758_v26, 4.0  ;;  %v1729_v44 = vsel %vm5396_vm0, %v1698_v7, 0.0  ;;  %v1671_v45 = vadd.f32 %v1670_v47, %v1669_v19 }
 0x19e   :  { %v1705_v41 = vsel %vm5773_vm1, 1.0, %v5759_v50  ;;  %v1706_v59 = vsel %vm5774_vm4, 1.0, %v5759_v50  ;;  %v1707_v48 = vsel %vm1568_vm9, 1.0, %v5759_v50  ;;  %v1708_v0 = vsel %vm1569_vm15, 1.0, %v5759_v50 }
 0x19f   :  { %v1728_v53 = vadd.f32 %v1727_v40, %v1726_v2  ;;  %v1646_v42 = vadd.f32 %v1645_v62, %v1644_v16  ;;  %v1709_v46 = vsel %vm1570_vm14, 1.0, %v5759_v50  ;;  %vm5776_vm5 = vcmp.lt.f32.partialorder %v5775_v8, 4.0 }
 0x1a0   :  { %v1710_v12 = vsel %vm5776_vm5, 1.0, %v5759_v50  ;;  %v1731_v47 = vsel %vm5396_vm0, %v1700_v28, 0.0  ;;  %v1673_v13 = vadd.f32 %v1672_v11, %v1671_v45  ;;  %vm5778_vm9 = vcmp.lt.f32.partialorder %v5777_v32, 4.0  ;;  %v5780_v45 = vld [vmem:[#allocation41_spill] sm:$0xff] }
 0x1a1   :  { %v1711_v7 = vsel %vm5778_vm9, 1.0, %v5759_v50  ;;  %v1712_v61 = vsel %vm1573_vm11, 1.0, %v5759_v50  ;;  %v1730_v62 = vadd.f32 %v1729_v44, %v1728_v53  ;;  %v1648_v24 = vadd.f32 %v1647_v57, %v1646_v42 }
 0x1a2   :  { %v1733_v63 = vsel %vm5396_vm0, %v1702_v21, 0.0  ;;  %v1755_v40 = vsel %vm5396_vm0, %v1693_v54, 0.0  ;;  %v1756_v19 = vsel %vm5396_vm0, %v1695_v22, 0.0  ;;  %v1675_v2 = vadd.f32 %v1674_v4, %v1673_v13 }
 0x1a3   :  { %v1732_v16 = vadd.f32 %v1731_v47, %v1730_v62  ;;  %v1757_v28 = vadd.f32 %v1756_v19, %v1755_v40  ;;  %v1758_v11 = vsel %vm5396_vm0, %v1697_v52, 0.0  ;;  %v1713_v32 = vsel %vm1574_vm12, 1.0, %v5759_v50 }
 0x1a4   :  { %v1714_v44 = vsel %vm1575_vm10, 1.0, %v5759_v50  ;;  %v1735_v57 = vsel %vm5396_vm0, %v1704_v31, 0.0  ;;  %v1760_v21 = vsel %vm5396_vm0, %v1699_v49, 0.0  ;;  %v1677_v54 = vadd.f32 %v1676_v18, %v1675_v2 }
 0x1a5   :  { %v1715_v4 = vsel %vm1576_vm8, 1.0, %v5759_v50  ;;  %v1734_v22 = vadd.f32 %v1733_v63, %v1732_v16  ;;  %v1759_v53 = vadd.f32 %v1758_v11, %v1757_v28  ;;  %v1716_v52 = vsel %vm1577_vm2, 1.0, %v5759_v50  ;;  %v5784_v11 = vld [vmem:[#allocation49_spill] sm:$0xff] }
 0x1a6   :  { %vm5781_vm11 = vcmp.lt.f32.partialorder %v3780_v15, 4.0  ;;  %v1737_v47 = vsel %vm5396_vm0, %v1706_v59, 0.0  ;;  %v1762_v31 = vsel %vm5396_vm0, %v1701_v30, 0.0  ;;  %v1679_v49 = vadd.f32 %v1678_v35, %v1677_v54  ;;  %v5783_v35 = vld [vmem:[#allocation48_spill] sm:$0xff] }
 0x1a7   :  { %v1717_v42 = vsel %vm5781_vm11, 1.0, %v5759_v50  ;;  %v1680_v18 = vsel %vm5396_vm0, %v1648_v24, 0.0  ;;  %v1736_v13 = vadd.f32 %v1735_v57, %v1734_v22  ;;  %v1761_v62 = vadd.f32 %v1760_v21, %v1759_v53 }
 0x1a8   :  { %vm5782_vm8 = vcmp.lt.f32.partialorder %v3782_v3, 4.0  ;;  %v1719_v40 = vsel %vm1580_vm13, 1.0, %v5759_v50  ;;  %v1739_v19 = vsel %vm5396_vm0, %v1708_v0, 0.0  ;;  %v1764_v2 = vsel %vm5396_vm0, %v1703_v43, 0.0  ;;  %v5786_v0 = vld [vmem:[#allocation50_spill] sm:$0xff] }
 0x1a9   :  { %v1718_v63 = vsel %vm5782_vm8, 1.0, %v5759_v50  ;;  %v1681_v59 = vsel %vm5396_vm0, %v1679_v49, 0.0  ;;  %v1720_v30 = vsel %vm1581_vm7, 1.0, %v5759_v50  ;;  %v1738_v24 = vadd.f32 %v1737_v47, %v1736_v13 }
 0x1aa   :  { %v1763_v16 = vadd.f32 %v1762_v31, %v1761_v62  ;;  %v1682_v28 = vadd.f32 %v1681_v59, %v1680_v18  ;;  %vm5785_vm15 = vcmp.lt.f32.partialorder %v5784_v11, 4.0  ;;  %v1741_v21 = vsel %vm5396_vm0, %v1710_v12, 0.0 }
 0x1ab   :  { %v1721_v57 = vsel %vm5785_vm15, 1.0, %v5759_v50  ;;  %v1766_v54 = vsel %vm5396_vm0, %v1705_v41, 0.0  ;;  %vm5787_vm13 = vcmp.lt.f32.partialorder %v5786_v0, 4.0  ;;  %vm5788_vm14 = vcmp.lt.f32.partialorder %v3792_v1, 4.0 }
 0x1ac   :  { %v1722_v43 = vsel %vm5787_vm13, 1.0, %v5759_v50  ;;  %v1723_v22 = vsel %vm5788_vm14, 1.0, %v5759_v50  ;;  %v1740_v53 = vadd.f32 %v1739_v19, %v1738_v24  ;;  %v1765_v47 = vadd.f32 %v1764_v2, %v1763_v16 }
 0x1ad   :  { %v1683_v31 = vrot.slane %v1682_v28, 4  ;;  %v1743_v49 = vsel %vm5396_vm0, %v1712_v61, 0.0  ;;  %v1745_v18 = vsel %vm5396_vm0, %v1714_v44, 0.0  ;;  %v1768_v13 = vsel %vm5396_vm0, %v1707_v48, 0.0 }
 0x1ae   :  { %v1742_v12 = vadd.f32 %v1741_v21, %v1740_v53  ;;  %v1747_v41 = vsel %vm5396_vm0, %v1716_v52, 0.0  ;;  %v1749_v62 = vsel %vm5396_vm0, %v1718_v63, 0.0  ;;  %v1767_v59 = vadd.f32 %v1766_v54, %v1765_v47 }
 0x1af   :  { %v1684_v0 = vadd.f32 %v1683_v31, %v1682_v28  ;;  %v1751_v11 = vsel %vm5396_vm0, %v1720_v30, 0.0  ;;  %v1753_v50 = vsel %vm5396_vm0, %v1722_v43, 0.0  ;;  %v1770_v19 = vsel %vm5396_vm0, %v1709_v46, 0.0  ;;  %v5789_v31 = vld [vmem:[#allocation39_spill] sm:$0xff] }
 0x1b0   :  { %v1744_v2 = vadd.f32 %v1743_v49, %v1742_v12  ;;  %v1769_v24 = vadd.f32 %v1768_v13, %v1767_v59  ;;  %v1772_v61 = vsel %vm5396_vm0, %v1711_v7, 0.0  ;;  %v1774_v44 = vsel %vm5396_vm0, %v1713_v32, 0.0  ;;  %v5792_v12 = vld [vmem:[#allocation18_spill] sm:$0xff] }
 0x1b1   :  { %v1685_v48 = vrot.slane %v1684_v0, 2  ;;  %v1776_v16 = vsel %vm5396_vm0, %v1715_v4, 0.0  ;;  %v1778_v52 = vsel %vm5396_vm0, %v1717_v42, 0.0  ;;  %v1780_v63 = vsel %vm5396_vm0, %v1719_v40, 0.0  ;;  %v1585_v42 = vld [vmem:[%s5252_s2 + $0x2] sm:$0x1] }
 0x1b2   :  { %v1746_v28 = vadd.f32 %v1745_v18, %v1744_v2  ;;  %v1771_v21 = vadd.f32 %v1770_v19, %v1769_v24  ;;  %v1782_v30 = vsel %vm5396_vm0, %v1721_v57, 0.0  ;;  %v1784_v54 = vsel %vm5396_vm0, %v1723_v22, 0.0  ;;  %v5791_v18 = vld [vmem:[#allocation17_spill] sm:$0xff] }
 0x1b3   :  { %v1686_v46 = vadd.f32 %v1685_v48, %v1684_v0  ;;  %vm5400_vm7 = vcmp.lt.f32.partialorder %v3730_v39, 1.0  ;;  %vm5398_vm2 = vcmp.lt.f32.partialorder %v3732_v17, 1.0  ;;  %vm5397_vm10 = vcmp.lt.f32.partialorder %v3734_v38, 1.0  ;;  %v5795_v24 = vld [vmem:[#allocation21_spill] sm:$0xff] }
 0x1b4   :  { %v1748_v32 = vadd.f32 %v1747_v41, %v1746_v28  ;;  %v1773_v7 = vadd.f32 %v1772_v61, %v1771_v21  ;;  %vm5399_vm12 = vcmp.lt.f32.partialorder %v3736_v55, 1.0  ;;  %vm5401_vm6 = vcmp.lt.f32.partialorder %v3738_v27, 1.0  ;;  %v5799_v28 = vld [vmem:[#allocation50_spill] sm:$0xff]  ;;  %v5800_v21 = vld [vmem:[#allocation24_spill] sm:$0xff] }
 0x1b5   :  { %v1687_v4 = vrot.slane %v1686_v46, 1  ;;  %vm5402_vm3 = vcmp.lt.f32.partialorder %v3740_v29, 1.0  ;;  %vm5403_vm1 = vcmp.lt.f32.partialorder %v3742_v34, 1.0  ;;  %vm1810_vm13 = vcmp.lt.f32.partialorder %v3756_v9, 1.0 }
 0x1b6   :  { %v1750_v40 = vadd.f32 %v1749_v62, %v1748_v32  ;;  %v1775_v57 = vadd.f32 %v1774_v44, %v1773_v7  ;;  %vm5790_vm4 = vcmask 57344   ;;  %vm1818_vm14 = vcmp.lt.f32.partialorder %v5780_v45, 1.0  ;;  %v5793_v62 = vld [vmem:[#allocation19_spill] sm:$0xff]  ;;  %v5796_v44 = vld [vmem:[#allocation22_spill] sm:$0xff] }
 0x1b7   :  { %v1688_v0 = vadd.f32 %v1687_v4, %v1686_v46  ;;  %vm1819_vm0 = vcmp.lt.f32.partialorder %v3774_v20, 1.0  ;;  %vm1820_vm5 = vcmp.lt.f32.partialorder %v3776_v5, 1.0  ;;  %vm1821_vm9 = vcmp.lt.f32.partialorder %v3778_v33, 1.0  ;;  %v5802_v46 = vld [vmem:[#allocation25_spill] sm:$0xff]  ;;  %v5804_v7 = vld [vmem:[#allocation26_spill] sm:$0xff]  ;;  %v5837_v45 = vld [vmem:[#allocation11_spill] sm:$0xff] }
 0x1b8   :  { %v1752_v43 = vadd.f32 %v1751_v11, %v1750_v40  ;;  %v1777_v22 = vadd.f32 %v1776_v16, %v1775_v57  ;;  %vm1822_vm11 = vcmp.lt.f32.partialorder %v3780_v15, 1.0  ;;  %vm1823_vm8 = vcmp.lt.f32.partialorder %v3782_v3, 1.0  ;;  %v5797_v16 = vld [vmem:[#allocation23_spill] sm:$0xff]  ;;  %v5843_v3 = vld [vmem:[#allocation13_spill] sm:$0xff] }
 0x1b9   :  { %v1689_v53 = vadd.f32 %v1688_v0, %v1585_v42  ;;  %vm5419_vm15 = vcmp.lt.f32.partialorder %v3784_v37, 1.0  ;;  %v1830_v13 = vsel %vm5400_vm7, %v5791_v18, 0.0  ;;  %v1831_v41 = vsel %vm5398_vm2, %v5792_v12, 0.0  ;;  %v5806_v42 = vld [vmem:[#allocation27_spill] sm:$0xff]  ;;  %v5835_v18 = vld [vmem:[#allocation9_spill] sm:$0xff] }
 0x1ba   :  { %v1779_v47 = vadd.f32 %v1778_v52, %v1777_v22  ;;  %v1754_v11 = vadd.f32 %v1753_v50, %v1752_v43  ;;  %v1832_v59 = vsel %vm5397_vm10, %v5793_v62, 0.0  ;;  %v5794_v50 = vld [vmem:[#allocation20_spill] sm:$0xff]  ;;  %v1834_v61 = vsel %vm5401_vm6, %v5795_v24, 0.0  ;;  %v5829_v62 = vld [vmem:[#allocation5_spill] sm:$0xff] }
 0x1bb   :  { %1690 = vst.msk [vmem:[%s5252_s2 + $0x2] sm:$0x1] %vm5790_vm4, %v1689_v53  ;;  %v1833_v19 = vsel %vm5399_vm12, %v5794_v50, 0.0  ;;  %vm5418_vm4 = vcmp.lt.f32.partialorder %v5783_v35, 1.0  ;;  %v1835_v48 = vsel %vm5402_vm3, %v5796_v44, 0.0  ;;  %v1836_v52 = vsel %vm5403_vm1, %v5797_v16, 0.0 }
 0x1bc   :  { %v1781_v49 = vadd.f32 %v1780_v63, %v1779_v47  ;;  %v5798_v63 = vld [vmem:[#allocation49_spill] sm:$0xff]  ;;  %vm5801_vm12 = vcmp.lt.f32.partialorder %v3744_v56, 1.0  ;;  %vm5803_vm7 = vcmp.lt.f32.partialorder %v3746_v51, 1.0  ;;  %vm5805_vm6 = vcmp.lt.f32.partialorder %v5638_v23, 1.0  ;;  %v5809_v43 = vld [vmem:[#allocation28_spill] sm:$0xff]  ;;  %v5825_v16 = vld [vmem:[#allocation3_spill] sm:$0xff] }
 0x1bd   :  { %v1838_v32 = vsel %vm5803_vm7, %v5802_v46, 0.0  ;;  %v1839_v4 = vsel %vm5805_vm6, %v5804_v7, 0.0  ;;  %vm5807_vm3 = vcmp.lt.f32.partialorder %v3750_v25, 1.0  ;;  %vm5808_vm1 = vcmask 64512   ;;  %v5811_v53 = vld [vmem:[#allocation29_spill] sm:$0xff]  ;;  %v5823_v46 = vld [vmem:[#allocation2_spill] sm:$0xff] }
 0x1be   :  { %v1783_v2 = vadd.f32 %v1782_v30, %v1781_v49  ;;  %v1837_v30 = vsel %vm5801_vm12, %v5800_v21, 0.0  ;;  %v1840_v40 = vsel %vm5807_vm3, %v5806_v42, 0.0  ;;  %v1786_v0 = vsel %vm5808_vm1, %v1754_v11, 0.0  ;;  %v5813_v49 = vld [vmem:[#allocation30_spill] sm:$0xff]  ;;  %v5814_v21 = vld [vmem:[#allocation31_spill] sm:$0xff]  ;;  %vm5818_vm2 = vmmov %vm5808_vm1 }
 0x1bf   :  { %vm5810_vm12 = vcmp.lt.f32.partialorder %v5642_v58, 1.0  ;;  %vm5812_vm7 = vcmp.lt.f32.partialorder %v3754_v14, 1.0  ;;  %v1843_v7 = vsel %vm1810_vm13, %v5813_v49, 0.0  ;;  %vm5815_vm6 = vcmp.lt.f32.partialorder %v3758_v26, 1.0  ;;  %v5819_v50 = vld [vmem:[#allocation33_spill] sm:$0xff]  ;;  %vm5822_vm10 = vmmov %vm5808_vm1  ;;  %v5827_v24 = vld [vmem:[#allocation4_spill] sm:$0xff] }
 0x1c0   :  { %v1785_v57 = vadd.f32 %v1784_v54, %v1783_v2  ;;  %v1841_v22 = vsel %vm5810_vm12, %v5809_v43, 0.0  ;;  %v1842_v47 = vsel %vm5812_vm7, %v5811_v53, 0.0  ;;  %v1844_v54 = vsel %vm5815_vm6, %v5814_v21, 0.0  ;;  %v5816_v2 = vld [vmem:[#allocation32_spill] sm:$0xff]  ;;  %vm5821_vm7 = vmmov %vm5808_vm1 }
 0x1c1   :  { %vm5817_vm3 = vcmp.lt.f32.partialorder %v3760_v60, 1.0  ;;  %v1862_v44 = vsel %vm5808_vm1, %v1830_v13, 0.0  ;;  %vm5820_vm12 = vcmp.lt.f32.partialorder %v3762_v10, 1.0  ;;  %v1863_v12 = vsel %vm5821_vm7, %v1832_v59, 0.0 }
 0x1c2   :  { %v1845_v11 = vsel %vm5817_vm3, %v5816_v2, 0.0  ;;  %v1787_v43 = vsel %vm5818_vm2, %v1785_v57, 0.0  ;;  %v1846_v53 = vsel %vm5820_vm12, %v5819_v50, 0.0  ;;  %v1865_v49 = vsel %vm5822_vm10, %v1834_v61, 0.0  ;;  %v5831_v50 = vld [vmem:[#allocation6_spill] sm:$0xff]  ;;  %vm5832_vm10 = vmmov %vm5821_vm7 }
 0x1c3   :  { %v1788_v42 = vadd.f32 %v1787_v43, %v1786_v0  ;;  %vm5824_vm6 = vcmp.lt.f32.partialorder %v3764_v6, 1.0  ;;  %vm5826_vm3 = vcmp.lt.f32.partialorder %v5775_v8, 1.0  ;;  %v1864_v13 = vadd.f32 %v1863_v12, %v1862_v44  ;;  %v5834_v12 = vld [vmem:[#allocation8_spill] sm:$0xff]  ;;  %vm5838_vm12 = vmmov %vm5821_vm7 }
 0x1c4   :  { %v1847_v21 = vsel %vm5824_vm6, %v5823_v46, 0.0  ;;  %v1848_v2 = vsel %vm5826_vm3, %v5825_v16, 0.0  ;;  %vm5828_vm2 = vcmp.lt.f32.partialorder %v5789_v31, 1.0  ;;  %vm5830_vm1 = vcmp.lt.f32.partialorder %v5779_v36, 1.0  ;;  %v5833_v46 = vld [vmem:[#allocation7_spill] sm:$0xff]  ;;  %v5836_v36 = vld [vmem:[#allocation10_spill] sm:$0xff]  ;;  %vm5839_vm6 = vmmov %vm5821_vm7 }
 0x1c5   :  { %v1849_v57 = vsel %vm5828_vm2, %v5827_v24, 0.0  ;;  %v1850_v59 = vsel %vm5830_vm1, %v5829_v62, 0.0  ;;  %v1851_v61 = vsel %vm1818_vm14, %v5831_v50, 0.0  ;;  %v1867_v0 = vsel %vm5832_vm10, %v1836_v52, 0.0  ;;  %vm5841_vm3 = vmmov %vm5839_vm6 }
 0x1c6   :  { %v1789_v43 = vrot.slane %v1788_v42, 4  ;;  %v1852_v16 = vsel %vm1819_vm0, %v5833_v46, 0.0  ;;  %v1853_v44 = vsel %vm1820_vm5, %v5834_v12, 0.0  ;;  %v1866_v24 = vadd.f32 %v1865_v49, %v1864_v13  ;;  %v5840_v13 = vld [vmem:[#allocation12_spill] sm:$0xff]  ;;  %vm5842_vm2 = vmmov %vm5841_vm3 }
 0x1c7   :  { %v1854_v62 = vsel %vm1821_vm9, %v5835_v18, 0.0  ;;  %v1855_v50 = vsel %vm1822_vm11, %v5836_v36, 0.0  ;;  %v1856_v52 = vsel %vm1823_vm8, %v5837_v45, 0.0  ;;  %v1869_v20 = vsel %vm5838_vm12, %v1838_v32, 0.0  ;;  %vm5844_vm1 = vmmov %vm5842_vm2 }
 0x1c8   :  { %v1790_v46 = vadd.f32 %v1789_v43, %v1788_v42  ;;  %v1868_v31 = vadd.f32 %v1867_v0, %v1866_v24  ;;  %v1893_v5 = vsel %vm5821_vm7, %v1831_v41, 0.0  ;;  %v1894_v49 = vsel %vm5839_vm6, %v1833_v19, 0.0  ;;  %v5845_v41 = vld [vmem:[#allocation14_spill] sm:$0xff]  ;;  %v5847_v0 = vld [vmem:[#allocation15_spill] sm:$0xff]  ;;  %vm5849_vm7 = vmmov %vm5844_vm1 }
 0x1c9   :  { %v1857_v12 = vsel %vm5419_vm15, %v5840_v13, 0.0  ;;  %v1871_v18 = vsel %vm5841_vm3, %v1840_v40, 0.0  ;;  %v1895_v15 = vadd.f32 %v1894_v49, %v1893_v5  ;;  %v1896_v36 = vsel %vm5842_vm2, %v1835_v48, 0.0  ;;  %v5850_v49 = vld [vmem:[#allocation16_spill] sm:$0xff]  ;;  %vm5852_vm3 = vmmov %vm5844_vm1 }
 0x1ca   :  { %v1791_v33 = vrot.slane %v1790_v46, 2  ;;  %v1858_v32 = vsel %vm5418_vm4, %v5843_v3, 0.0  ;;  %v1870_v42 = vadd.f32 %v1869_v20, %v1868_v31  ;;  %v1898_v24 = vsel %vm5844_vm1, %v1837_v30, 0.0  ;;  %vm5853_vm2 = vmmov %vm5844_vm1 }
 0x1cb   :  { %vm5846_vm10 = vcmp.lt.f32.partialorder %v5798_v63, 1.0  ;;  %vm5848_vm12 = vcmp.lt.f32.partialorder %v5799_v28, 1.0  ;;  %v1873_v5 = vsel %vm5849_vm7, %v1842_v47, 0.0  ;;  %v1897_v40 = vadd.f32 %v1896_v36, %v1895_v15  ;;  %vm5856_vm7 = vmmov %vm5844_vm1  ;;  %v1691_v15 = vld [vmem:[%s5252_s2 + $0x6] sm:$0x1] }
 0x1cc   :  { %v1859_v19 = vsel %vm5846_vm10, %v5845_v41, 0.0  ;;  %v1860_v43 = vsel %vm5848_vm12, %v5847_v0, 0.0  ;;  %v1792_v48 = vadd.f32 %v1791_v33, %v1790_v46  ;;  %vm5851_vm6 = vcmp.lt.f32.partialorder %v3792_v1, 1.0  ;;  %vm5854_vm10 = vmmov %vm5844_vm1 }
 0x1cd   :  { %v1861_v13 = vsel %vm5851_vm6, %v5850_v49, 0.0  ;;  %v1872_v3 = vadd.f32 %v1871_v18, %v1870_v42  ;;  %v1900_v20 = vsel %vm5852_vm3, %v1839_v4, 0.0  ;;  %v1875_v31 = vsel %vm5853_vm2, %v1844_v54, 0.0  ;;  %vm5855_vm12 = vmmov %vm5844_vm1 }
 0x1ce   :  { %v1877_v30 = vsel %vm5844_vm1, %v1846_v53, 0.0  ;;  %v1879_v41 = vsel %vm5854_vm10, %v1848_v2, 0.0  ;;  %v1899_v45 = vadd.f32 %v1898_v24, %v1897_v40  ;;  %v1793_v28 = vrot.slane %v1792_v48, 1  ;;  %vm5857_vm6 = vmmov %vm5844_vm1 }
 0x1cf   :  { %v1874_v0 = vadd.f32 %v1873_v5, %v1872_v3  ;;  %v1881_v47 = vsel %vm5855_vm12, %v1850_v59, 0.0  ;;  %v1902_v33 = vsel %vm5856_vm7, %v1841_v22, 0.0  ;;  %v1883_v36 = vsel %vm5857_vm6, %v1852_v16, 0.0  ;;  %vm5858_vm3 = vmmov %vm5844_vm1 }
 0x1d0   :  { %v1885_v18 = vsel %vm5858_vm3, %v1854_v62, 0.0  ;;  %vm5859_vm2 = vmmov %vm5844_vm1  ;;  %v1901_v4 = vadd.f32 %v1900_v20, %v1899_v45  ;;  %v1794_v53 = vadd.f32 %v1793_v28, %v1792_v48  ;;  %v1889_v2 = vsel %vm5844_vm1, %v1858_v32, 0.0 }
 0x1d1   :  { %v1887_v46 = vsel %vm5859_vm2, %v1856_v52, 0.0  ;;  %v1876_v54 = vadd.f32 %v1875_v31, %v1874_v0  ;;  %vm5860_vm10 = vmmov %vm5844_vm1 }
 0x1d2   :  { %v1904_v3 = vsel %vm5860_vm10, %v1843_v7, 0.0  ;;  %vm5861_vm12 = vmmov %vm5844_vm1  ;;  %v1903_v22 = vadd.f32 %v1902_v33, %v1901_v4  ;;  %v1795_v5 = vadd.f32 %v1794_v53, %v1691_v15  ;;  %v1918_v7 = vsel %vm5844_vm1, %v1857_v12, 0.0 }
 0x1d3   :  { %v1891_v59 = vsel %vm5861_vm12, %v1860_v43, 0.0  ;;  %vm5862_vm7 = vmmov %vm5844_vm1  ;;  %v1878_v16 = vadd.f32 %v1877_v30, %v1876_v54  ;;  %vm5868_vm10 = vcmask 57344  }
 0x1d4   :  { %v1906_v42 = vsel %vm5862_vm7, %v1845_v11, 0.0  ;;  %vm5863_vm4 = vmmov %vm5844_vm1  ;;  %v1905_v45 = vadd.f32 %v1904_v3, %v1903_v22  ;;  %1796 = vst.msk [vmem:[%s5252_s2 + $0x6] sm:$0x1] %vm5868_vm10, %v1795_v5  ;;  %vm5872_vm7 = vcmp.lt.f32.partialorder %v3730_v39, 1.0  ;;  %vm5878_vm10 = vcmp.lt.f32.partialorder %v3742_v34, 1.0 }
 0x1d5   :  { %v1908_v24 = vsel %vm5863_vm4, %v1847_v21, 0.0  ;;  %vm5864_vm6 = vmmov %vm5844_vm1  ;;  %v1880_v11 = vadd.f32 %v1879_v41, %v1878_v16 }
 0x1d6   :  { %v1910_v62 = vsel %vm5864_vm6, %v1849_v57, 0.0  ;;  %vm5865_vm3 = vmmov %vm5844_vm1  ;;  %v5871_v57 = vmov 0.0   ;;  %vm5874_vm6 = vcmp.lt.f32.partialorder %v3734_v38, 1.0 }
 0x1d7   :  { %v1912_v52 = vsel %vm5865_vm3, %v1851_v61, 0.0  ;;  %vm5866_vm2 = vmmov %vm5844_vm1  ;;  %v1936_v61 = vsel %vm5872_vm7, 1.0, %v5871_v57  ;;  %v1938_v12 = vsel %vm5874_vm6, 1.0, %v5871_v57  ;;  %vm5875_vm3 = vcmp.lt.f32.partialorder %v3736_v55, 1.0 }
 0x1d8   :  { %v1914_v28 = vsel %vm5866_vm2, %v1853_v44, 0.0  ;;  %vm5867_vm15 = vmmov %vm5844_vm1  ;;  %v1907_v44 = vadd.f32 %v1906_v42, %v1905_v45  ;;  %v1939_v41 = vsel %vm5875_vm3, 1.0, %v5871_v57  ;;  %vm5876_vm2 = vcmp.lt.f32.partialorder %v3738_v27, 1.0 }
 0x1d9   :  { %v1916_v32 = vsel %vm5867_vm15, %v1855_v50, 0.0  ;;  %vm5869_vm4 = vmmov %vm5844_vm1  ;;  %vm5873_vm15 = vcmp.lt.f32.partialorder %v3732_v17, 1.0  ;;  %v1942_v40 = vsel %vm5878_vm10, 1.0, %v5871_v57  ;;  %vm5881_vm7 = vcmp.lt.f32.partialorder %v5638_v23, 1.0 }
 0x1da   :  { %v1920_v21 = vsel %vm5869_vm4, %v1859_v19, 0.0  ;;  %vm5870_vm12 = vmmov %vm5844_vm1  ;;  %v1937_v50 = vsel %vm5873_vm15, 1.0, %v5871_v57  ;;  %v1882_v19 = vadd.f32 %v1881_v47, %v1880_v11  ;;  %vm5877_vm1 = vcmp.lt.f32.partialorder %v3740_v29, 1.0 }
 0x1db   :  { %v4875_v0 = vsel %vm5870_vm12, %v1861_v13, 0.0  ;;  %v1940_v13 = vsel %vm5876_vm2, 1.0, %v5871_v57  ;;  %v1941_v43 = vsel %vm5877_vm1, 1.0, %v5871_v57  ;;  %v1909_v48 = vadd.f32 %v1908_v24, %v1907_v44 }
 0x1dc   :  { %vm5879_vm4 = vcmp.lt.f32.partialorder %v3744_v56, 1.0  ;;  %vm5880_vm12 = vcmp.lt.f32.partialorder %v3746_v51, 1.0  ;;  %v1945_v30 = vsel %vm5881_vm7, 1.0, %v5871_v57  ;;  %v1884_v47 = vadd.f32 %v1883_v36, %v1882_v19 }
 0x1dd   :  { %v1943_v20 = vsel %vm5879_vm4, 1.0, %v5871_v57  ;;  %v1944_v31 = vsel %vm5880_vm12, 1.0, %v5871_v57  ;;  %vm5882_vm15 = vcmp.lt.f32.partialorder %v3750_v25, 1.0  ;;  %vm5883_vm6 = vcmp.lt.f32.partialorder %v5642_v58, 1.0 }
 0x1de   :  { %v1946_v33 = vsel %vm5882_vm15, 1.0, %v5871_v57  ;;  %v1947_v15 = vsel %vm5883_vm6, 1.0, %v5871_v57  ;;  %vm5884_vm3 = vcmp.lt.f32.partialorder %v3754_v14, 1.0  ;;  %v1911_v53 = vadd.f32 %v1910_v62, %v1909_v48 }
 0x1df   :  { %v1948_v4 = vsel %vm5884_vm3, 1.0, %v5871_v57  ;;  %v1949_v54 = vsel %vm1810_vm13, 1.0, %v5871_v57  ;;  %vm5885_vm2 = vcmp.lt.f32.partialorder %v3758_v26, 1.0  ;;  %vm5886_vm1 = vcmp.lt.f32.partialorder %v3760_v60, 1.0 }
 0x1e0   :  { %v1950_v36 = vsel %vm5885_vm2, 1.0, %v5871_v57  ;;  %v4925_v3 = vsel %vm5886_vm1, 1.0, %v5871_v57  ;;  %v1886_v22 = vadd.f32 %v1885_v18, %v1884_v47  ;;  %vm5887_vm10 = vcmask 64512  }
 0x1e1   :  { %v1968_v42 = vsel %vm5887_vm10, %v1936_v61, 0.0  ;;  %vm5888_vm4 = vmmov %vm5887_vm10  ;;  %v1913_v16 = vadd.f32 %v1912_v52, %v1911_v53  ;;  %vm5890_vm13 = vcmp.lt.f32.partialorder %v3762_v10, 1.0  ;;  %vm5891_vm7 = vcmp.lt.f32.partialorder %v3764_v6, 1.0  ;;  %v5893_v61 = vld [vmem:[#allocation39_spill] sm:$0xff] }
 0x1e2   :  { %v1969_v24 = vsel %vm5888_vm4, %v1938_v12, 0.0  ;;  %vm5889_vm12 = vmmov %vm5888_vm4  ;;  %v1952_v62 = vsel %vm5890_vm13, 1.0, %v5871_v57  ;;  %v4936_v45 = vsel %vm5891_vm7, 1.0, %v5871_v57  ;;  %v1888_v44 = vadd.f32 %v1887_v46, %v1886_v22 }
 0x1e3   :  { %v1971_v5 = vsel %vm5889_vm12, %v1940_v13, 0.0  ;;  %v1970_v11 = vadd.f32 %v1969_v24, %v1968_v42  ;;  %vm5892_vm15 = vcmp.lt.f32.partialorder %v5775_v8, 1.0  ;;  %vm5894_vm6 = vcmp.lt.f32.partialorder %v5893_v61, 1.0  ;;  %vm5895_vm3 = vmmov %vm5888_vm4  ;;  %v5896_v13 = vld [vmem:[#allocation40_spill] sm:$0xff] }
 0x1e4   :  { %v1954_v18 = vsel %vm5892_vm15, 1.0, %v5871_v57  ;;  %v4944_v12 = vsel %vm5894_vm6, 1.0, %v5871_v57  ;;  %v1973_v52 = vsel %vm5895_vm3, %v1942_v40, 0.0  ;;  %v1915_v19 = vadd.f32 %v1914_v28, %v1913_v16  ;;  %vm5901_vm1 = vmmov %vm5895_vm3 }
 0x1e5   :  { %vm5897_vm2 = vcmp.lt.f32.partialorder %v5896_v13, 1.0  ;;  %v4953_v46 = vsel %vm1818_vm14, 1.0, %v5871_v57  ;;  %v1972_v53 = vadd.f32 %v1971_v5, %v1970_v11  ;;  %v1890_v22 = vadd.f32 %v1889_v2, %v1888_v44 }
 0x1e6   :  { %v1956_v48 = vsel %vm5897_vm2, 1.0, %v5871_v57  ;;  %v1958_v24 = vsel %vm1819_vm0, 1.0, %v5871_v57  ;;  %v4961_v40 = vsel %vm1820_vm5, 1.0, %v5871_v57  ;;  %v1975_v28 = vsel %vm5901_vm1, %v1944_v31, 0.0  ;;  %vm5904_vm0 = vmmov %vm5901_vm1 }
 0x1e7   :  { %v1917_v16 = vadd.f32 %v1916_v32, %v1915_v19  ;;  %v1960_v47 = vsel %vm1821_vm9, 1.0, %v5871_v57  ;;  %v4970_v2 = vsel %vm1822_vm11, 1.0, %v5871_v57  ;;  %v1974_v5 = vadd.f32 %v1973_v52, %v1972_v53  ;;  %vm5905_vm14 = vmmov %vm5904_vm0  ;;  %v5914_v53 = vld [vmem:[#allocation50_spill] sm:$0xff] }
 0x1e8   :  { %v1892_v11 = vadd.f32 %v1891_v59, %v1890_v22  ;;  %v1977_v44 = vsel %vm5904_vm0, %v1946_v33, 0.0  ;;  %v1999_v61 = vsel %vm5905_vm14, %v1937_v50, 0.0  ;;  %vm5906_vm5 = vmmov %vm5904_vm0  ;;  %v1962_v10 = vsel %vm1823_vm8, 1.0, %v5871_v57 }
 0x1e9   :  { %v2000_v42 = vsel %vm5906_vm5, %v1939_v41, 0.0  ;;  %v1919_v6 = vadd.f32 %v1918_v7, %v1917_v16  ;;  %v1976_v31 = vadd.f32 %v1975_v28, %v1974_v5  ;;  %vm5907_vm10 = vmmov %vm5904_vm0  ;;  %vm5909_vm9 = vcmp.lt.f32.partialorder %v3784_v37, 1.0 }
 0x1ea   :  { %v2001_v32 = vadd.f32 %v2000_v42, %v1999_v61  ;;  %v2002_v19 = vsel %vm5907_vm10, %v1941_v43, 0.0  ;;  %v4982_v52 = vsel %vm5909_vm9, 1.0, %v5871_v57  ;;  %vm5910_vm11 = vmmov %vm5904_vm0  ;;  %vm5912_vm12 = vcmp.lt.f32.partialorder %v5783_v35, 1.0 }
 0x1eb   :  { %v1979_v59 = vsel %vm5910_vm11, %v1948_v4, 0.0  ;;  %vm5911_vm4 = vmmov %vm5904_vm0  ;;  %v1921_v33 = vadd.f32 %v1920_v21, %v1919_v6  ;;  %v1964_v7 = vsel %vm5912_vm12, 1.0, %v5871_v57  ;;  %v1978_v41 = vadd.f32 %v1977_v44, %v1976_v31 }
 0x1ec   :  { %v2004_v50 = vsel %vm5911_vm4, %v1943_v20, 0.0  ;;  %v2003_v43 = vadd.f32 %v2002_v19, %v2001_v32  ;;  %vm5913_vm13 = vcmp.lt.f32.partialorder %v5798_v63, 1.0  ;;  %vm5915_vm8 = vcmp.lt.f32.partialorder %v5914_v53, 1.0  ;;  %vm5916_vm7 = vmmov %vm5904_vm0  ;;  %v5923_v63 = vld [vmem:[#allocation17_spill] sm:$0xff] }
 0x1ed   :  { %v4992_v61 = vsel %vm5913_vm13, 1.0, %v5871_v57  ;;  %v1966_v22 = vsel %vm5915_vm8, 1.0, %v5871_v57  ;;  %v1981_v4 = vsel %vm5916_vm7, %v1950_v36, 0.0  ;;  %vm5917_vm15 = vmmov %vm5904_vm0  ;;  %v1923_v6 = vadd.f32 %v4875_v0, %v1921_v33 }
 0x1ee   :  { %v2006_v20 = vsel %vm5917_vm15, %v1945_v30, 0.0  ;;  %vm5918_vm6 = vmmov %vm5904_vm0  ;;  %v1980_v42 = vadd.f32 %v1979_v59, %v1978_v41  ;;  %v2005_v28 = vadd.f32 %v2004_v50, %v2003_v43  ;;  %v2008_v31 = vsel %vm5904_vm0, %v1947_v15, 0.0  ;;  %v5926_v59 = vld [vmem:[#allocation19_spill] sm:$0xff] }
 0x1ef   :  { %v1924_v21 = vsel %vm5918_vm6, %v1892_v11, 0.0  ;;  %vm5919_vm3 = vmmov %vm5904_vm0 }
 0x1f0   :  { %v1983_v16 = vsel %vm5919_vm3, %v1952_v62, 0.0  ;;  %vm5920_vm2 = vmmov %vm5904_vm0  ;;  %v1982_v19 = vadd.f32 %v1981_v4, %v1980_v42  ;;  %v2007_v36 = vadd.f32 %v2006_v20, %v2005_v28  ;;  %v5928_v62 = vld [vmem:[#allocation21_spill] sm:$0xff] }
 0x1f1   :  { %v1985_v5 = vsel %vm5920_vm2, %v1954_v18, 0.0  ;;  %vm5921_vm1 = vmmov %vm5904_vm0 }
 0x1f2   :  { %v1987_v44 = vsel %vm5921_vm1, %v1956_v48, 0.0  ;;  %vm5922_vm14 = vmmov %vm5904_vm0  ;;  %v1984_v33 = vadd.f32 %v1983_v16, %v1982_v19  ;;  %v2009_v15 = vadd.f32 %v2008_v31, %v2007_v36  ;;  %v5938_v31 = vld [vmem:[#allocation25_spill] sm:$0xff] }
 0x1f3   :  { %v1925_v32 = vsel %vm5922_vm14, %v1923_v6, 0.0  ;;  %vm5924_vm5 = vmmov %vm5904_vm0  ;;  %v5933_v6 = vld [vmem:[#allocation23_spill] sm:$0xff] }
 0x1f4   :  { %v2042_v30 = vsel %vm5924_vm5, %v5923_v63, 0.0  ;;  %v1926_v0 = vadd.f32 %v1925_v32, %v1924_v21  ;;  %vm5925_vm10 = vmmov %vm5904_vm0  ;;  %v1986_v21 = vadd.f32 %v1985_v5, %v1984_v33  ;;  %v2018_v5 = vsel %vm5904_vm0, %v4953_v46, 0.0  ;;  %v5944_v33 = vld [vmem:[#allocation18_spill] sm:$0xff] }
 0x1f5   :  { %v2010_v11 = vsel %vm5925_vm10, %v1949_v54, 0.0  ;;  %vm5927_vm9 = vmmov %vm5904_vm0 }
 0x1f6   :  { %v2043_v50 = vsel %vm5927_vm9, %v5926_v59, 0.0  ;;  %vm5929_vm11 = vmmov %vm5904_vm0  ;;  %v1927_v43 = vrot.slane %v1926_v0, 4  ;;  %v2011_v28 = vadd.f32 %v2010_v11, %v2009_v15  ;;  %v1988_v19 = vadd.f32 %v1987_v44, %v1986_v21 }
 0x1f7   :  { %v2045_v18 = vsel %vm5929_vm11, %v5928_v62, 0.0  ;;  %vm5930_vm4 = vmmov %vm5904_vm0  ;;  %v2044_v41 = vadd.f32 %v2043_v50, %v2042_v30 }
 0x1f8   :  { %v1989_v48 = vsel %vm5930_vm4, %v1958_v24, 0.0  ;;  %vm5931_vm12 = vmmov %vm5904_vm0  ;;  %v1928_v53 = vadd.f32 %v1927_v43, %v1926_v0  ;;  %v5942_v0 = vld [vmem:[#allocation27_spill] sm:$0xff]  ;;  %v5948_v43 = vld [vmem:[#allocation20_spill] sm:$0xff] }
 0x1f9   :  { %v1991_v4 = vsel %vm5931_vm12, %v1960_v47, 0.0  ;;  %vm5932_vm13 = vmmov %vm5904_vm0  ;;  %v2046_v32 = vadd.f32 %v2045_v18, %v2044_v41  ;;  %v1990_v11 = vadd.f32 %v1989_v48, %v1988_v19  ;;  %v5955_v19 = vld [vmem:[#allocation24_spill] sm:$0xff] }
 0x1fa   :  { %v2012_v20 = vsel %vm5932_vm13, %v4925_v3, 0.0  ;;  %vm5934_vm8 = vmmov %vm5904_vm0  ;;  %v1929_v50 = vrot.slane %v1928_v53, 2 }
 0x1fb   :  { %v2047_v54 = vsel %vm5934_vm8, %v5933_v6, 0.0  ;;  %vm5935_vm7 = vmmov %vm5904_vm0  ;;  %v2013_v36 = vadd.f32 %v2012_v20, %v2011_v28  ;;  %v1992_v46 = vadd.f32 %v1991_v4, %v1990_v11 }
 0x1fc   :  { %v1993_v42 = vsel %vm5935_vm7, %v1962_v10, 0.0  ;;  %vm5936_vm15 = vmmov %vm5904_vm0  ;;  %v2048_v30 = vadd.f32 %v2047_v54, %v2046_v32  ;;  %v1930_v15 = vadd.f32 %v1929_v50, %v1928_v53 }
 0x1fd   :  { %v1995_v16 = vsel %vm5936_vm15, %v1964_v7, 0.0  ;;  %vm5937_vm6 = vmmov %vm5904_vm0  ;;  %v1994_v50 = vadd.f32 %v1993_v42, %v1992_v46 }
 0x1fe   :  { %v2014_v24 = vsel %vm5937_vm6, %v4936_v45, 0.0  ;;  %vm5939_vm3 = vmmov %vm5904_vm0  ;;  %v1931_v48 = vrot.slane %v1930_v15, 1 }
 0x1ff   :  { %v2049_v47 = vsel %vm5939_vm3, %v5938_v31, 0.0  ;;  %vm5940_vm2 = vmmov %vm5904_vm0  ;;  %v2015_v45 = vadd.f32 %v2014_v24, %v2013_v36 }
 0x200   :  { %v1997_v3 = vsel %vm5940_vm2, %v1966_v22, 0.0  ;;  %vm5941_vm1 = vmmov %vm5904_vm0  ;;  %v2050_v18 = vadd.f32 %v2049_v47, %v2048_v30  ;;  %v5946_v22 = vld [vmem:[#allocation29_spill] sm:$0xff]  ;;  %v5953_v47 = vld [vmem:[#allocation31_spill] sm:$0xff] }
 0x201   :  { %v2016_v10 = vsel %vm5941_vm1, %v4944_v12, 0.0  ;;  %vm5943_vm14 = vmmov %vm5904_vm0  ;;  %v5950_v12 = vld [vmem:[#allocation22_spill] sm:$0xff]  ;;  %vm5967_vm1 = vcmp.lt.f32.partialorder %v3792_v1, 1.0 }
 0x202   :  { %v2051_v7 = vsel %vm5943_vm14, %v5942_v0, 0.0  ;;  %vm5945_vm5 = vmmov %vm5904_vm0  ;;  %v2017_v21 = vadd.f32 %v2016_v10, %v2015_v45  ;;  %v1829_v30 = vld [vmem:[%s5252_s2 + $0x3] sm:$0x1]  ;;  %v5958_v45 = vld [vmem:[#allocation33_spill] sm:$0xff] }
 0x203   :  { %v2073_v44 = vsel %vm5945_vm5, %v5944_v33, 0.0  ;;  %vm5947_vm10 = vmmov %vm5904_vm0  ;;  %v2052_v28 = vadd.f32 %v2051_v7, %v2050_v18  ;;  %v1932_v7 = vadd.f32 %v1931_v48, %v1930_v15  ;;  %v5960_v18 = vld [vmem:[#allocation26_spill] sm:$0xff] }
 0x204   :  { %v2053_v41 = vsel %vm5947_vm10, %v5946_v22, 0.0  ;;  %vm5949_vm9 = vmmov %vm5904_vm0  ;;  %v2019_v37 = vadd.f32 %v2018_v5, %v2017_v21  ;;  %v5963_v5 = vld [vmem:[#allocation3_spill] sm:$0xff]  ;;  %v5994_v1 = vld [vmem:[#allocation10_spill] sm:$0xff] }
 0x205   :  { %v2074_v20 = vsel %vm5949_vm9, %v5948_v43, 0.0  ;;  %vm5951_vm11 = vmmov %vm5904_vm0  ;;  %v2054_v4 = vadd.f32 %v2053_v41, %v2052_v28  ;;  %v5965_v41 = vld [vmem:[#allocation28_spill] sm:$0xff] }
 0x206   :  { %v2076_v54 = vsel %vm5951_vm11, %v5950_v12, 0.0  ;;  %v2075_v32 = vadd.f32 %v2074_v20, %v2073_v44  ;;  %vm5952_vm4 = vmmov %vm5904_vm0  ;;  %v1996_v20 = vadd.f32 %v1995_v16, %v1994_v50 }
 0x207   :  { %v2020_v24 = vsel %vm5952_vm4, %v4961_v40, 0.0  ;;  %vm5954_vm12 = vmmov %vm5904_vm0 }
 0x208   :  { %v2055_v53 = vsel %vm5954_vm12, %v5953_v47, 0.0  ;;  %vm5956_vm13 = vmmov %vm5904_vm0  ;;  %v2077_v10 = vadd.f32 %v2076_v54, %v2075_v32  ;;  %v2021_v8 = vadd.f32 %v2020_v24, %v2019_v37  ;;  %v1933_v47 = vadd.f32 %v1932_v7, %v1829_v30  ;;  %v5972_v32 = vld [vmem:[#allocation30_spill] sm:$0xff]  ;;  %v5977_v30 = vld [vmem:[#allocation32_spill] sm:$0xff] }
 0x209   :  { %v2078_v36 = vsel %vm5956_vm13, %v5955_v19, 0.0  ;;  %vm5957_vm8 = vmmov %vm5904_vm0  ;;  %v2056_v35 = vadd.f32 %v2055_v53, %v2054_v4  ;;  %v1967_v54 = vsel %vm5967_vm1, 1.0, %v5871_v57  ;;  %v1998_v24 = vadd.f32 %v1997_v3, %v1996_v20 }
 0x20a   :  { %v2022_v11 = vsel %vm5957_vm8, %v4970_v2, 0.0  ;;  %vm5959_vm7 = vmmov %vm5904_vm0  ;;  %v2079_v13 = vadd.f32 %v2078_v36, %v2077_v10  ;;  %v5979_v10 = vld [vmem:[#allocation9_spill] sm:$0xff] }
 0x20b   :  { %v2057_v40 = vsel %vm5959_vm7, %v5958_v45, 0.0  ;;  %vm5961_vm15 = vmmov %vm5904_vm0  ;;  %v2023_v46 = vadd.f32 %v2022_v11, %v2021_v8  ;;  %v5981_v11 = vld [vmem:[#allocation2_spill] sm:$0xff] }
 0x20c   :  { %v2080_v44 = vsel %vm5961_vm15, %v5960_v18, 0.0  ;;  %vm5962_vm6 = vmmov %vm5904_vm0  ;;  %v2058_v21 = vadd.f32 %v2057_v40, %v2056_v35 }
 0x20d   :  { %v2024_v42 = vsel %vm5962_vm6, %v4982_v52, 0.0  ;;  %vm5964_vm3 = vmmov %vm5904_vm0  ;;  %v2081_v16 = vadd.f32 %v2080_v44, %v2079_v13  ;;  %v5970_v52 = vld [vmem:[#allocation5_spill] sm:$0xff]  ;;  %v5975_v13 = vld [vmem:[#allocation7_spill] sm:$0xff] }
 0x20e   :  { %v2059_v15 = vsel %vm5964_vm3, %v5963_v5, 0.0  ;;  %vm5966_vm2 = vmmov %vm5904_vm0  ;;  %vm5968_vm0 = vcmask 57344   ;;  %v2025_v53 = vadd.f32 %v2024_v42, %v2023_v46 }
 0x20f   :  { %v2082_v2 = vsel %vm5966_vm2, %v5965_v41, 0.0  ;;  %1934 = vst.msk [vmem:[%s5252_s2 + $0x3] sm:$0x1] %vm5968_vm0, %v1933_v47  ;;  %vm5969_vm14 = vmmov %vm5966_vm2  ;;  %v2060_v57 = vadd.f32 %v2059_v15, %v2058_v21  ;;  %v5984_v15 = vld [vmem:[#allocation11_spill] sm:$0xff] }
 0x210   :  { %v2026_v37 = vsel %vm5969_vm14, %v4992_v61, 0.0  ;;  %vm5971_vm5 = vmmov %vm5966_vm2  ;;  %v2083_v8 = vadd.f32 %v2082_v2, %v2081_v16 }
 0x211   :  { %v2061_v28 = vsel %vm5971_vm5, %v5970_v52, 0.0  ;;  %vm5973_vm10 = vmmov %vm5966_vm2  ;;  %v2027_v50 = vadd.f32 %v2026_v37, %v2025_v53 }
 0x212   :  { %v2084_v48 = vsel %vm5973_vm10, %v5972_v32, 0.0  ;;  %vm5974_vm9 = vmmov %vm5966_vm2  ;;  %v2062_v61 = vadd.f32 %v2061_v28, %v2060_v57 }
 0x213   :  { %v2028_v35 = vsel %vm5974_vm9, %v1967_v54, 0.0  ;;  %vm5976_vm11 = vmmov %vm5966_vm2  ;;  %v2085_v4 = vadd.f32 %v2084_v48, %v2083_v8  ;;  %v5986_v54 = vld [vmem:[#allocation4_spill] sm:$0xff]  ;;  %v5989_v48 = vld [vmem:[#allocation6_spill] sm:$0xff] }
 0x214   :  { %v2063_v36 = vsel %vm5976_vm11, %v5975_v13, 0.0  ;;  %vm5978_vm4 = vmmov %vm5966_vm2  ;;  %v2029_v40 = vadd.f32 %v2028_v35, %v2027_v50  ;;  %vm2116_vm11 = vcmp.eq.f32.partialorder %v3730_v39, 0.0 }
 0x215   :  { %v2086_v47 = vsel %vm5978_vm4, %v5977_v30, 0.0  ;;  %vm5980_vm12 = vmmov %vm5966_vm2  ;;  %v2064_v20 = vadd.f32 %v2063_v36, %v2062_v61  ;;  %vm2118_vm4 = vcmp.eq.f32.partialorder %v3734_v38, 0.0  ;;  %v2148_v39 = vsel %vm2116_vm11, %v5923_v63, 0.0 }
 0x216   :  { %v2065_v7 = vsel %vm5980_vm12, %v5979_v10, 0.0  ;;  %vm5982_vm13 = vmmov %vm5966_vm2  ;;  %v2087_v42 = vadd.f32 %v2086_v47, %v2085_v4  ;;  %v5992_v47 = vld [vmem:[#allocation8_spill] sm:$0xff]  ;;  %vm2120_vm12 = vcmp.eq.f32.partialorder %v3738_v27, 0.0  ;;  %v2150_v38 = vsel %vm2118_vm4, %v5926_v59, 0.0 }
 0x217   :  { %v2088_v3 = vsel %vm5982_vm13, %v5981_v11, 0.0  ;;  %vm5983_vm8 = vmmov %vm5966_vm2  ;;  %v2066_v16 = vadd.f32 %v2065_v7, %v2064_v20  ;;  %v5996_v20 = vld [vmem:[#allocation15_spill] sm:$0xff]  ;;  %vm2117_vm13 = vcmp.eq.f32.partialorder %v3732_v17, 0.0  ;;  %v2152_v27 = vsel %vm2120_vm12, %v5928_v62, 0.0  ;;  %v6011_v17 = vld [vmem:[#allocation37_spill] sm:$0xff] }
 0x218   :  { %v2030_v44 = vsel %vm5983_vm8, %v1998_v24, 0.0  ;;  %vm5985_vm7 = vmmov %vm5966_vm2  ;;  %v2089_v37 = vadd.f32 %v2088_v3, %v2087_v42  ;;  %v5991_v24 = vld [vmem:[#allocation13_spill] sm:$0xff]  ;;  %vm2119_vm8 = vcmp.eq.f32.partialorder %v3736_v55, 0.0  ;;  %vm2129_vm11 = vcmp.eq.f32.partialorder %v3756_v9, 0.0 }
 0x219   :  { %v2067_v2 = vsel %vm5985_vm7, %v5984_v15, 0.0  ;;  %vm5987_vm15 = vmmov %vm5966_vm2  ;;  %v2069_v36 = vsel %vm5966_vm2, %v5991_v24, 0.0  ;;  %vm2121_vm7 = vcmp.eq.f32.partialorder %v3740_v29, 0.0 }
 0x21a   :  { %v2090_v46 = vsel %vm5987_vm15, %v5986_v54, 0.0  ;;  %vm5988_vm6 = vmmov %vm5966_vm2  ;;  %v2068_v57 = vadd.f32 %v2067_v2, %v2066_v16  ;;  %v5998_v2 = vld [vmem:[#allocation12_spill] sm:$0xff] }
 0x21b   :  { %v2031_v21 = vsel %vm5988_vm6, %v2029_v40, 0.0  ;;  %vm5990_vm3 = vmmov %vm5966_vm2  ;;  %v2091_v8 = vadd.f32 %v2090_v46, %v2089_v37  ;;  %v6000_v37 = vld [vmem:[#allocation14_spill] sm:$0xff]  ;;  %vm2122_vm6 = vcmp.eq.f32.partialorder %v3742_v34, 0.0 }
 0x21c   :  { %v2032_v28 = vadd.f32 %v2031_v21, %v2030_v44  ;;  %v2092_v53 = vsel %vm5990_vm3, %v5989_v48, 0.0  ;;  %vm5993_vm1 = vmmov %vm5966_vm2  ;;  %v2070_v7 = vadd.f32 %v2069_v36, %v2068_v57  ;;  %v1935_v57 = vld [vmem:[%s5252_s2 + $0x7] sm:$0x1]  ;;  %vm2123_vm3 = vcmp.eq.f32.partialorder %v3744_v56, 0.0 }
 0x21d   :  { %v2094_v50 = vsel %vm5993_vm1, %v5992_v47, 0.0  ;;  %v2093_v61 = vadd.f32 %v2092_v53, %v2091_v8  ;;  %vm5995_vm0 = vmmov %vm5993_vm1  ;;  %vm2124_vm1 = vcmp.eq.f32.partialorder %v3746_v51, 0.0  ;;  %v2154_v63 = vsel %vm2122_vm6, %v5933_v6, 0.0 }
 0x21e   :  { %v2033_v35 = vrot.slane %v2032_v28, 4  ;;  %v2096_v40 = vsel %vm5995_vm0, %v5994_v1, 0.0  ;;  %vm5997_vm14 = vmmov %vm5995_vm0  ;;  %v2149_v6 = vsel %vm2117_vm13, %v5944_v33, 0.0  ;;  %vm2133_vm13 = vcmp.eq.f32.partialorder %v6011_v17, 0.0  ;;  %v6034_v17 = vld [vmem:[#allocation43_spill] sm:$0xff] }
 0x21f   :  { %v2095_v3 = vadd.f32 %v2094_v50, %v2093_v61  ;;  %v2071_v42 = vsel %vm5997_vm14, %v5996_v20, 0.0  ;;  %vm5999_vm5 = vmmov %vm5995_vm0  ;;  %vm2126_vm14 = vcmp.eq.f32.partialorder %v3750_v25, 0.0  ;;  %v2155_v55 = vsel %vm2123_vm3, %v5955_v19, 0.0 }
 0x220   :  { %v2034_v4 = vadd.f32 %v2033_v35, %v2032_v28  ;;  %v2098_v46 = vsel %vm5999_vm5, %v5998_v2, 0.0  ;;  %vm6001_vm10 = vmmov %vm5995_vm0  ;;  %v2072_v47 = vadd.f32 %v2071_v42, %v2070_v7  ;;  %vm6005_vm5 = vcmask 57344  }
 0x221   :  { %v2097_v21 = vadd.f32 %v2096_v40, %v2095_v3  ;;  %v2100_v24 = vsel %vm6001_vm10, %v6000_v37, 0.0  ;;  %vm6002_vm9 = vmmov %vm5995_vm0  ;;  %vm2127_vm10 = vcmp.eq.f32.partialorder %v5642_v58, 0.0  ;;  %v2156_v40 = vsel %vm2124_vm1, %v5938_v31, 0.0 }
 0x222   :  { %v2035_v44 = vrot.slane %v2034_v4, 2  ;;  %v2102_v8 = vsel %vm6002_vm9, %v5850_v49, 0.0  ;;  %vm6003_vm15 = vmmov %vm5995_vm0  ;;  %vm2128_vm9 = vcmp.eq.f32.partialorder %v3754_v14, 0.0  ;;  %v2151_v3 = vsel %vm2119_vm8, %v5948_v43, 0.0 }
 0x223   :  { %v2099_v53 = vadd.f32 %v2098_v46, %v2097_v21  ;;  %v2104_v61 = vsel %vm6003_vm15, %v2072_v47, 0.0  ;;  %vm6004_vm2 = vmmov %vm5995_vm0  ;;  %vm2125_vm0 = vcmp.eq.f32.partialorder %v5638_v23, 0.0  ;;  %v2153_v46 = vsel %vm2121_vm7, %v5950_v12, 0.0 }
 0x224   :  { %v2036_v16 = vadd.f32 %v2035_v44, %v2034_v4  ;;  %vm6006_vm4 = vmmov %vm6004_vm2  ;;  %v2158_v31 = vsel %vm2126_vm14, %v5942_v0, 0.0  ;;  %v2160_v29 = vsel %vm2128_vm9, %v5946_v22, 0.0  ;;  %v2157_v0 = vsel %vm2125_vm0, %v5960_v18, 0.0 }
 0x225   :  { %v2101_v35 = vadd.f32 %v2100_v24, %v2099_v53  ;;  %v2180_v51 = vsel %vm6006_vm4, %v2148_v39, 0.0  ;;  %vm6007_vm12 = vmmov %vm6004_vm2  ;;  %v2159_v23 = vsel %vm2127_vm10, %v5965_v41, 0.0  ;;  %v2041_v39 = vld [vmem:[%s5252_s2 + $0x8] sm:$0x1]  ;;  %v2161_v58 = vsel %vm2129_vm11, %v5972_v32, 0.0 }
 0x226   :  { %v2037_v28 = vrot.slane %v2036_v16, 1  ;;  %v2181_v59 = vsel %vm6007_vm12, %v2150_v38, 0.0  ;;  %vm6008_vm15 = vmmov %vm6004_vm2  ;;  %v6020_v38 = vld [vmem:[#allocation40_spill] sm:$0xff] }
 0x227   :  { %v2103_v50 = vadd.f32 %v2102_v8, %v2101_v35  ;;  %v2183_v62 = vsel %vm6008_vm15, %v2152_v27, 0.0  ;;  %v2182_v7 = vadd.f32 %v2181_v59, %v2180_v51  ;;  %vm6009_vm6 = vmmov %vm6006_vm4  ;;  %v6016_v8 = vld [vmem:[#allocation31_spill] sm:$0xff]  ;;  %v6017_v35 = vld [vmem:[#allocation38_spill] sm:$0xff]  ;;  %vm2136_vm15 = vcmp.eq.f32.partialorder %v6020_v38, 0.0 }
 0x228   :  { %v2038_v36 = vadd.f32 %v2037_v28, %v2036_v16  ;;  %v2185_v44 = vsel %vm6009_vm6, %v2154_v63, 0.0  ;;  %v6010_v16 = vld [vmem:[#allocation36_spill] sm:$0xff]  ;;  %vm6012_vm8 = vmmov %vm6006_vm4  ;;  %v2212_v28 = vsel %vm6006_vm4, %v2151_v3, 0.0  ;;  %vm2134_vm3 = vcmp.eq.f32.partialorder %v6017_v35, 0.0  ;;  %v6023_v51 = vld [vmem:[#allocation42_spill] sm:$0xff] }
 0x229   :  { %v2105_v4 = vsel %vm6004_vm2, %v2103_v50, 0.0  ;;  %vm2130_vm2 = vcmp.eq.f32.partialorder %v3758_v26, 0.0  ;;  %v2184_v21 = vadd.f32 %v2183_v62, %v2182_v7  ;;  %vm2132_vm1 = vcmp.eq.f32.partialorder %v6010_v16, 0.0  ;;  %vm6013_vm7 = vmmov %vm6006_vm4 }
 0x22a   :  { %v2039_v24 = vadd.f32 %v2038_v36, %v1935_v57  ;;  %v2106_v34 = vadd.f32 %v2105_v4, %v2104_v61  ;;  %v2187_v33 = vsel %vm6012_vm8, %v2156_v40, 0.0  ;;  %v2211_v25 = vsel %vm6013_vm7, %v2149_v6, 0.0  ;;  %vm6014_vm14 = vmmov %vm6006_vm4  ;;  %v6026_v6 = vld [vmem:[#allocation39_spill] sm:$0xff] }
 0x22b   :  { %v2186_v12 = vadd.f32 %v2185_v44, %v2184_v21  ;;  %v2189_v53 = vsel %vm6014_vm14, %v2158_v31, 0.0  ;;  %vm6015_vm12 = vmmov %vm6006_vm4  ;;  %v2162_v57 = vsel %vm2130_vm2, %v6016_v8, 0.0  ;;  %v2213_v22 = vadd.f32 %v2212_v28, %v2211_v25  ;;  %v6032_v31 = vld [vmem:[#allocation46_spill] sm:$0xff] }
 0x22c   :  { %2040 = vst.msk [vmem:[%s5252_s2 + $0x7] sm:$0x1] %vm6005_vm5, %v2039_v24  ;;  %v2107_v47 = vrot.slane %v2106_v34, 4  ;;  %vm2131_vm5 = vcmp.eq.f32.partialorder %v3760_v60, 0.0  ;;  %v2214_v56 = vsel %vm6015_vm12, %v2153_v46, 0.0  ;;  %vm6018_vm0 = vmmov %vm6006_vm4  ;;  %v2164_v61 = vsel %vm2132_vm1, %v5958_v45, 0.0 }
 0x22d   :  { %v2188_v14 = vadd.f32 %v2187_v33, %v2186_v12  ;;  %v2191_v18 = vsel %vm6018_vm0, %v2160_v29, 0.0  ;;  %vm6019_vm9 = vmmov %vm6018_vm0  ;;  %v2215_v26 = vadd.f32 %v2214_v56, %v2213_v22  ;;  %vm2138_vm6 = vcmp.eq.f32.partialorder %v6023_v51, 0.0  ;;  %v6031_v46 = vld [vmem:[#allocation41_spill] sm:$0xff] }
 0x22e   :  { %v2108_v42 = vadd.f32 %v2107_v47, %v2106_v34  ;;  %v2216_v36 = vsel %vm6019_vm9, %v2155_v55, 0.0  ;;  %vm6021_vm10 = vmmov %vm6018_vm0  ;;  %v2166_v34 = vsel %vm2134_vm3, %v5963_v5, 0.0  ;;  %v2163_v59 = vsel %vm2131_vm5, %v5977_v30, 0.0  ;;  %v6027_v5 = vld [vmem:[#allocation44_spill] sm:$0xff]  ;;  %v6038_v56 = vld [vmem:[#allocation45_spill] sm:$0xff] }
 0x22f   :  { %v2190_v24 = vadd.f32 %v2189_v53, %v2188_v14  ;;  %v2193_v41 = vsel %vm6021_vm10, %v2162_v57, 0.0  ;;  %vm6022_vm2 = vmmov %vm6018_vm0  ;;  %v2217_v63 = vadd.f32 %v2216_v36, %v2215_v26  ;;  %v2168_v47 = vsel %vm2136_vm15, %v5970_v52, 0.0  ;;  %v6042_v57 = vld [vmem:[#allocation13_spill] sm:$0xff] }
 0x230   :  { %v2109_v43 = vrot.slane %v2108_v42, 2  ;;  %v2218_v27 = vsel %vm6022_vm2, %v2157_v0, 0.0  ;;  %vm6024_vm1 = vmmov %vm6018_vm0  ;;  %vm2135_vm11 = vcmp.eq.f32.partialorder %v6026_v6, 0.0  ;;  %vm2140_vm7 = vcmp.eq.f32.partialorder %v6027_v5, 0.0 }
 0x231   :  { %v2192_v45 = vadd.f32 %v2191_v18, %v2190_v24  ;;  %v2195_v62 = vsel %vm6024_vm1, %v2164_v61, 0.0  ;;  %vm6025_vm8 = vmmov %vm6018_vm0  ;;  %v2219_v7 = vadd.f32 %v2218_v27, %v2217_v63  ;;  %vm6030_vm12 = vcmask 57344   ;;  %v6044_v18 = vld [vmem:[#allocation50_spill] sm:$0xff]  ;;  %v6047_v24 = vld [vmem:[#allocation49_spill] sm:$0xff] }
 0x232   :  { %v2110_v19 = vadd.f32 %v2109_v43, %v2108_v42  ;;  %v2220_v9 = vsel %vm6025_vm8, %v2159_v23, 0.0  ;;  %vm6028_vm14 = vmmov %vm6018_vm0  ;;  %v2165_v60 = vsel %vm2133_vm13, %v5981_v11, 0.0  ;;  %v2170_v52 = vsel %vm2138_vm6, %v5975_v13, 0.0  ;;  %v6035_v11 = vld [vmem:[#allocation48_spill] sm:$0xff]  ;;  %v6043_v23 = vld [vmem:[#allocation47_spill] sm:$0xff] }
 0x233   :  { %v2194_v40 = vadd.f32 %v2193_v41, %v2192_v45  ;;  %v2197_v3 = vsel %vm6028_vm14, %v2166_v34, 0.0  ;;  %vm6029_vm4 = vmmov %vm6018_vm0  ;;  %v2221_v42 = vadd.f32 %v2220_v9, %v2219_v7  ;;  %vm2137_vm5 = vcmp.eq.f32.partialorder %v6031_v46, 0.0 }
 0x234   :  { %v2111_v50 = vrot.slane %v2110_v19, 1  ;;  %v2222_v44 = vsel %vm6029_vm4, %v2161_v58, 0.0  ;;  %vm2142_vm3 = vcmp.eq.f32.partialorder %v6032_v31, 0.0  ;;  %v2199_v21 = vsel %vm6018_vm0, %v2168_v47, 0.0  ;;  %vm6033_vm9 = vmmov %vm6018_vm0 }
 0x235   :  { %v2196_v30 = vadd.f32 %v2195_v62, %v2194_v40  ;;  %v2224_v16 = vsel %vm6033_vm9, %v2163_v59, 0.0  ;;  %v2167_v55 = vsel %vm2135_vm11, %v5986_v54, 0.0  ;;  %v2172_v33 = vsel %vm2140_vm7, %v5979_v10, 0.0  ;;  %vm6036_vm10 = vmmov %vm6018_vm0 }
 0x236   :  { %v2112_v4 = vadd.f32 %v2111_v50, %v2110_v19  ;;  %v2223_v29 = vadd.f32 %v2222_v44, %v2221_v42  ;;  %vm2139_vm13 = vcmp.eq.f32.partialorder %v6034_v17, 0.0  ;;  %vm2144_vm15 = vcmp.eq.f32.partialorder %v6035_v11, 0.0  ;;  %vm6037_vm2 = vmmov %vm6018_vm0  ;;  %v6041_v19 = vld [vmem:[#allocation8_spill] sm:$0xff] }
 0x237   :  { %v2198_v43 = vadd.f32 %v2197_v3, %v2196_v30  ;;  %v2201_v13 = vsel %vm6036_vm10, %v2170_v52, 0.0  ;;  %v2226_v12 = vsel %vm6037_vm2, %v2165_v60, 0.0  ;;  %v2169_v25 = vsel %vm2137_vm5, %v5989_v48, 0.0  ;;  %vm6039_vm1 = vmmov %vm6018_vm0 }
 0x238   :  { %v2113_v32 = vadd.f32 %v2112_v4, %v2041_v39  ;;  %v2174_v0 = vsel %vm2142_vm3, %v5984_v15, 0.0  ;;  %v2225_v28 = vadd.f32 %v2224_v16, %v2223_v29  ;;  %vm2141_vm6 = vcmp.eq.f32.partialorder %v6038_v56, 0.0  ;;  %vm6040_vm8 = vmmov %vm6018_vm0  ;;  %v6050_v4 = vld [vmem:[#allocation51_spill] sm:$0xff] }
 0x239   :  { %v2200_v53 = vadd.f32 %v2199_v21, %v2198_v43  ;;  %v2203_v10 = vsel %vm6039_vm1, %v2172_v33, 0.0  ;;  %v2228_v54 = vsel %vm6040_vm8, %v2167_v55, 0.0  ;;  %v2171_v8 = vsel %vm2139_vm13, %v6041_v19, 0.0  ;;  %vm6045_vm14 = vmmov %vm6018_vm0 }
 0x23a   :  { %2114 = vst.msk [vmem:[%s5252_s2 + $0x8] sm:$0x1] %vm6030_vm12, %v2113_v32  ;;  %v2176_v14 = vsel %vm2144_vm15, %v6042_v57, 0.0  ;;  %v2227_v35 = vadd.f32 %v2226_v12, %v2225_v28  ;;  %vm2143_vm11 = vcmp.eq.f32.partialorder %v6043_v23, 0.0  ;;  %vm2146_vm7 = vcmp.eq.f32.partialorder %v6044_v18, 0.0  ;;  %vm6046_vm4 = vmmov %vm6018_vm0 }
 0x23b   :  { %v2202_v22 = vadd.f32 %v2201_v13, %v2200_v53  ;;  %v2205_v15 = vsel %vm6045_vm14, %v2174_v0, 0.0  ;;  %v2230_v48 = vsel %vm6046_vm4, %v2169_v25, 0.0  ;;  %v2173_v36 = vsel %vm2141_vm6, %v5994_v1, 0.0  ;;  %vm6048_vm5 = vmmov %vm6018_vm0 }
 0x23c   :  { %v2229_v61 = vadd.f32 %v2228_v54, %v2227_v35  ;;  %vm2145_vm12 = vcmp.eq.f32.partialorder %v6047_v24, 0.0  ;;  %v2207_v26 = vsel %vm6048_vm5, %v2176_v14, 0.0  ;;  %vm6049_vm3 = vmmov %vm6018_vm0  ;;  %v2175_v38 = vsel %vm2143_vm11, %v5998_v2, 0.0 }
 0x23d   :  { %v2204_v50 = vadd.f32 %v2203_v10, %v2202_v22  ;;  %v2232_v39 = vsel %vm6049_vm3, %v2171_v8, 0.0  ;;  %v2178_v58 = vsel %vm2146_vm7, %v5996_v20, 0.0  ;;  %vm2147_vm0 = vcmp.eq.f32.partialorder %v6050_v4, 0.0  ;;  %vm6051_vm9 = vmmov %vm6039_vm1 }
 0x23e   :  { %v2231_v27 = vadd.f32 %v2230_v48, %v2229_v61  ;;  %v2234_v34 = vsel %vm6051_vm9, %v2173_v36, 0.0  ;;  %v2177_v1 = vsel %vm2145_vm12, %v6000_v37, 0.0  ;;  %vm6052_vm13 = vmmov %vm6039_vm1  ;;  %v2179_v62 = vsel %vm2147_vm0, %v5850_v49, 0.0  ;;  %v2115_v49 = vld [vmem:[%s5252_s2 + $0x9] sm:$0x1] }
 0x23f   :  { %v2206_v41 = vadd.f32 %v2205_v15, %v2204_v50  ;;  %v2209_v51 = vsel %vm6052_vm13, %v2178_v58, 0.0  ;;  %vm6053_vm15 = vmmov %vm6039_vm1  ;;  %vm6057_vm8 = vcmask 57344  }
 0x240   :  { %v2233_v63 = vadd.f32 %v2232_v39, %v2231_v27  ;;  %v2236_v59 = vsel %vm6053_vm15, %v2175_v38, 0.0  ;;  %vm6054_vm10 = vmmov %vm6039_vm1 }
 0x241   :  { %v2208_v45 = vadd.f32 %v2207_v26, %v2206_v41  ;;  %v2238_v2 = vsel %vm6054_vm10, %v2177_v1, 0.0  ;;  %vm6055_vm2 = vmmov %vm6039_vm1 }
 0x242   :  { %v2235_v9 = vadd.f32 %v2234_v34, %v2233_v63  ;;  %v2240_v47 = vsel %vm6055_vm2, %v2179_v62, 0.0  ;;  %vm6056_vm6 = vmmov %vm6039_vm1 }
 0x243   :  { %v2210_v20 = vadd.f32 %v2209_v51, %v2208_v45 }
 0x244   :  { %v2237_v32 = vadd.f32 %v2236_v59, %v2235_v9 }
 0x245   :  { %v2242_v6 = vsel %vm6056_vm6, %v2210_v20, 0.0 }
 0x246   :  { %v2239_v40 = vadd.f32 %v2238_v2, %v2237_v32 }
 0x248   :  { %v2241_v7 = vadd.f32 %v2240_v47, %v2239_v40 }
 0x24a   :  { %v2243_v37 = vsel %vm6039_vm1, %v2241_v7, 0.0 }
 0x24b   :  { %v2244_v5 = vadd.f32 %v2243_v37, %v2242_v6 }
 0x24d   :  { %v2245_v3 = vrot.slane %v2244_v5, 4 }
 0x24f   :  { %v2246_v44 = vadd.f32 %v2245_v3, %v2244_v5 }
 0x251   :  { %v2247_v60 = vrot.slane %v2246_v44, 2 }
 0x253   :  { %v2248_v52 = vadd.f32 %v2247_v60, %v2246_v44 }
 0x255   :  { %v2249_v30 = vrot.slane %v2248_v52, 1 }
 0x257   :  { %v2250_v42 = vadd.f32 %v2249_v30, %v2248_v52 }
 0x259   :  { %v2251_v46 = vadd.f32 %v2250_v42, %v2115_v49 }
 0x25b   :  { %2252 = vst.msk [vmem:[%s5252_s2 + $0x9] sm:$0x1] %vm6057_vm8, %v2251_v46 }

</bundles_post_ra>
